<compile_context>
chip_gen: v5e
topology: v5e:2x2
jax: 0.10.0
libtpu: 0.0.40
codegen_flags: <defaults>
</compile_context>

<pallas_src>
import functools

import jax
import jax.numpy as jnp
from jax.experimental import pallas as pl
from jax.experimental.pallas import tpu as pltpu


def decoder_block_kernel(gi_ref, ctx_ref, h0_ref,
                         w_if_ref, w_h_ref, b_h_ref,
                         w_a_ref, w_oc_ref, w_oh_ref,
                         out_ref, attn_ref, hfin_ref,
                         h_s, feed_s, *, tb_steps):
    tb = pl.program_id(0)
    B, S, H = ctx_ref.shape

    @pl.when(tb == 0)
    def _():
        h_s[...] = h0_ref[...]
        feed_s[...] = jnp.zeros_like(feed_s)      # init_input_feed: zeros

    # Grid-invariant operands: load once per time-block, hoisted out of the step loop.
    ctx = ctx_ref[...]                            # (B, S, H) bf16
    w_if_r, w_if_z, w_if_n = w_if_ref[0], w_if_ref[1], w_if_ref[2]
    w_h_r, w_h_z, w_h_n = w_h_ref[0], w_h_ref[1], w_h_ref[2]
    b_h_r, b_h_z, b_h_n = b_h_ref[0], b_h_ref[1], b_h_ref[2]
    w_a = w_a_ref[...]
    w_oc = w_oc_ref[...]
    w_oh = w_oh_ref[...]

    h = h_s[...]                                  # (B, H) f32 carry
    feed = feed_s[...]                            # (B, H) f32 carry

    for i in range(tb_steps):                     # short fixed trip count -> fully unrolled
        feed_b = feed.astype(jnp.bfloat16)
        h_b = h.astype(jnp.bfloat16)

        # ---- StackedGRU (1 layer) == nn.GRUCell on cat([emb_t, feed]) ------------
        # The emb part of x @ W_ih^T (+ b_ih) was precomputed outside the recurrence.
        gi_r = gi_ref[0, i] + jnp.dot(feed_b, w_if_r, preferred_element_type=jnp.float32)
        gi_z = gi_ref[1, i] + jnp.dot(feed_b, w_if_z, preferred_element_type=jnp.float32)
        gi_n = gi_ref[2, i] + jnp.dot(feed_b, w_if_n, preferred_element_type=jnp.float32)
        gh_r = jnp.dot(h_b, w_h_r, preferred_element_type=jnp.float32) + b_h_r
        gh_z = jnp.dot(h_b, w_h_z, preferred_element_type=jnp.float32) + b_h_z
        gh_n = jnp.dot(h_b, w_h_n, preferred_element_type=jnp.float32) + b_h_n
        r = jax.nn.sigmoid(gi_r + gh_r)
        z = jax.nn.sigmoid(gi_z + gh_z)
        n = jnp.tanh(gi_n + r * gh_n)
        h = (1.0 - z) * n + z * h                 # (B, H) f32

        # ---- GlobalAttention (attn_type='general'), MXU-batched ------------------
        h_b = h.astype(jnp.bfloat16)
        ht = jnp.dot(h_b, w_a, preferred_element_type=jnp.float32)       # linear_in (no bias)
        ht3 = ht.astype(jnp.bfloat16).reshape(B, 1, H)
        scores = jnp.einsum('bqh,bsh->bqs', ht3, ctx,
                            preferred_element_type=jnp.float32)          # (B, 1, S)
        m = jnp.max(scores, axis=-1, keepdims=True)
        e = jnp.exp(scores - m)
        inv = pl.reciprocal(jnp.sum(e, axis=-1, keepdims=True), approx=True)
        align3 = e * inv                                                  # softmax over src_len
        c3 = jnp.einsum('bqs,bsh->bqh', align3.astype(jnp.bfloat16), ctx,
                        preferred_element_type=jnp.float32)               # (B, 1, H)
        c = c3[:, 0, :]
        # linear_out(cat([c, h_t])) (no bias) split into two matmuls, then tanh
        attn_h = jnp.tanh(
            jnp.dot(c.astype(jnp.bfloat16), w_oc, preferred_element_type=jnp.float32)
            + jnp.dot(h_b, w_oh, preferred_element_type=jnp.float32))

        feed = attn_h                             # input feed for next step (dropout == id)
        out_ref[i] = attn_h
        attn_ref[i] = align3[:, 0, :]

    h_s[...] = h
    feed_s[...] = feed

    @pl.when(tb == pl.num_programs(0) - 1)
    def _():
        hfin_ref[0] = h                           # final hidden, written once


def _pick_time_block(T, max_tb=8):
    for tb in range(min(max_tb, T), 0, -1):
        if T % tb == 0:
            return tb
    return 1


def input_feed_decoder(emb, context, state, params):
    T, B, E = emb.shape
    S = context.shape[0]
    H = state.shape[-1]
    TB = _pick_time_block(T)

    hp = jax.lax.Precision.HIGHEST
    # Hoisted input projection: one big (T*B, E) x (E, 3H) MXU matmul outside the recurrence.
    gi_emb = (jnp.einsum('tbe,geh->gtbh', emb.astype(jnp.float32), params['w_ie'],
                         precision=hp)
              + params['b_i'][:, None, None, :])                         # (3, T, B, H) f32

    bf = jnp.bfloat16
    ctx_bt = jnp.transpose(context, (1, 0, 2)).astype(bf)                 # (B, S, H) bf16
    h0 = state[0].astype(jnp.float32)                                     # (B, H)
    w_if = params['w_if'].astype(bf)
    w_h = params['w_h'].astype(bf)
    b_h = params['b_h'].astype(jnp.float32)
    w_a = params['w_a'].astype(bf)
    w_oc = params['w_oc'].astype(bf)
    w_oh = params['w_oh'].astype(bf)

    out_shapes = (
        jax.ShapeDtypeStruct((T, B, H), jnp.float32),   # outputs
        jax.ShapeDtypeStruct((T, B, S), jnp.float32),   # attns
        jax.ShapeDtypeStruct((1, B, H), jnp.float32),   # final hidden
    )
    grid_spec = pltpu.PrefetchScalarGridSpec(
        num_scalar_prefetch=0,
        grid=(T // TB,),
        in_specs=[
            pl.BlockSpec((3, TB, B, H), lambda t: (0, t, 0, 0)),  # precomputed gi (per gate)
            pl.BlockSpec((B, S, H), lambda t: (0, 0, 0)),         # context (bf16)
            pl.BlockSpec((B, H), lambda t: (0, 0)),               # h0
            pl.BlockSpec((3, H, H), lambda t: (0, 0, 0)),         # W_ih^T feed part, per gate
            pl.BlockSpec((3, H, H), lambda t: (0, 0, 0)),         # W_hh^T, per gate
            pl.BlockSpec((3, 1, H), lambda t: (0, 0, 0)),         # b_hh, per gate
            pl.BlockSpec((H, H), lambda t: (0, 0)),               # linear_in^T
            pl.BlockSpec((H, H), lambda t: (0, 0)),               # linear_out^T (c part)
            pl.BlockSpec((H, H), lambda t: (0, 0)),               # linear_out^T (h part)
        ],
        out_specs=(
            pl.BlockSpec((TB, B, H), lambda t: (t, 0, 0)),
            pl.BlockSpec((TB, B, S), lambda t: (t, 0, 0)),
            pl.BlockSpec((1, B, H), lambda t: (0, 0, 0)),
        ),
        scratch_shapes=[pltpu.VMEM((B, H), jnp.float32),          # hidden carry
                        pltpu.VMEM((B, H), jnp.float32)],         # input-feed carry
    )
    outputs, attns, hidden = pl.pallas_call(
        functools.partial(decoder_block_kernel, tb_steps=TB),
        out_shape=out_shapes,
        grid_spec=grid_spec,
        compiler_params=pltpu.CompilerParams(
            dimension_semantics=("arbitrary",),
            vmem_limit_bytes=64 * 1024 * 1024),
    )(gi_emb, ctx_bt, h0, w_if, w_h, b_h, w_a, w_oc, w_oh)
    return outputs, hidden, attns


def init_params(key, E, H):
    """Deterministic synthetic parameters with PyTorch GRUCell / GlobalAttention shapes,
    pre-transposed and split per-gate (r, z, n) for the kernel."""
    ks = jax.random.split(key, 6)
    s = 0.1
    w_ih = s * jax.random.normal(ks[0], (3 * H, E + H), jnp.float32)   # nn.GRUCell.weight_ih
    w_hh = s * jax.random.normal(ks[1], (3 * H, H), jnp.float32)       # nn.GRUCell.weight_hh
    b_ih = s * jax.random.normal(ks[2], (3 * H,), jnp.float32)
    b_hh = s * jax.random.normal(ks[3], (3 * H,), jnp.float32)
    w_in = s * jax.random.normal(ks[4], (H, H), jnp.float32)           # GlobalAttention.linear_in
    w_out = s * jax.random.normal(ks[5], (H, 2 * H), jnp.float32)      # GlobalAttention.linear_out

    def per_gate(w):  # (3H, K) -> (3, K, H): transposed, split by gate (r, z, n)
        return jnp.stack([w[g * H:(g + 1) * H].T for g in range(3)])

    w_out_t = w_out.T                                                  # (2H, H): rows [c ; h_t]
    return {
        'w_ie': per_gate(w_ih[:, :E]),             # (3, E, H)  -- wrapper-side precompute only
        'w_if': per_gate(w_ih[:, E:]),             # (3, H, H)
        'b_i': b_ih.reshape(3, H),                 # (3, H)     -- folded into precompute
        'w_h': per_gate(w_hh),                     # (3, H, H)
        'b_h': b_hh.reshape(3, 1, H),              # (3, 1, H)
        'w_a': w_in.T,                             # (H, H)
        'w_oc': w_out_t[:H], 'w_oh': w_out_t[H:],  # (H, H) each
    }


def reference(emb, context, state, p):
    """Pure-JAX f32 mirror of the PyTorch forward (eval mode)."""
    T, B, E = emb.shape
    S, _, H = context.shape
    hp = jax.lax.Precision.HIGHEST
    ctx = jnp.transpose(context, (1, 0, 2))
    h = state[0]
    feed = jnp.zeros((B, H), jnp.float32)
    gi_emb = (jnp.einsum('tbe,geh->gtbh', emb, p['w_ie'], precision=hp)
              + p['b_i'][:, None, None, :])
    outs, atts = [], []
    for t in range(T):
        gi = [gi_emb[g, t] + jnp.dot(feed, p['w_if'][g], precision=hp) for g in range(3)]
        gh = [jnp.dot(h, p['w_h'][g], precision=hp) + p['b_h'][g] for g in range(3)]
        r = jax.nn.sigmoid(gi[0] + gh[0])
        z = jax.nn.sigmoid(gi[1] + gh[1])
        n = jnp.tanh(gi[2] + r * gh[2])
        h = (1.0 - z) * n + z * h
        ht = jnp.dot(h, p['w_a'], precision=hp)
        scores = jnp.einsum('bh,bsh->bs', ht, ctx, precision=hp)
        align = jax.nn.softmax(scores, axis=-1)
        c = jnp.einsum('bs,bsh->bh', align, ctx, precision=hp)
        attn_h = jnp.tanh(jnp.dot(c, p['w_oc'], precision=hp)
                          + jnp.dot(h, p['w_oh'], precision=hp))
        feed = attn_h
        outs.append(attn_h)
        atts.append(align)
    return jnp.stack(outs), h[None], jnp.stack(atts)


if __name__ == "__main__":
    TGT_LEN, SRC_LEN, BATCH, EMB, HID = 8, 6, 4, 16, 32

    key = jax.random.PRNGKey(0)
    k_emb, k_ctx, k_h0, k_par = jax.random.split(key, 4)
    emb = jax.random.normal(k_emb, (TGT_LEN, BATCH, EMB), jnp.float32)
    context = jax.random.normal(k_ctx, (SRC_LEN, BATCH, HID), jnp.float32)
    state = jax.random.normal(k_h0, (1, BATCH, HID), jnp.float32)
    params = init_params(k_par, EMB, HID)

    outputs, hidden, attns = input_feed_decoder(emb, context, state, params)
    jax.block_until_ready((outputs, hidden, attns))

    ref_out, ref_hid, ref_att = reference(emb, context, state, params)
    assert outputs.shape == (TGT_LEN, BATCH, HID)
    assert hidden.shape == (1, BATCH, HID)
    assert attns.shape == (TGT_LEN, BATCH, SRC_LEN)
    # kernel matmul path runs in bf16 (f32 accumulation) + approx reciprocal softmax,
    # so compare against the f32 reference with a correspondingly loose tolerance.
    assert jnp.allclose(outputs, ref_out, atol=3e-2, rtol=3e-2)
    assert jnp.allclose(hidden, ref_hid, atol=3e-2, rtol=3e-2)
    assert jnp.allclose(attns, ref_att, atol=3e-2, rtol=3e-2)

    print("KERNEL_OK")
</pallas_src>

<mosaic_0001>
module attributes {stable_mosaic.version = 11 : i64} {
  func.func @decoder_block_kernel(%arg0: i32, %arg1: memref<3x8x4x32xf32, #tpu.memory_space<vmem>>, %arg2: memref<4x6x32xbf16, #tpu.memory_space<vmem>>, %arg3: memref<4x32xf32, #tpu.memory_space<vmem>>, %arg4: memref<3x32x32xbf16, #tpu.memory_space<vmem>>, %arg5: memref<3x32x32xbf16, #tpu.memory_space<vmem>>, %arg6: memref<3x1x32xf32, #tpu.memory_space<vmem>>, %arg7: memref<32x32xbf16, #tpu.memory_space<vmem>>, %arg8: memref<32x32xbf16, #tpu.memory_space<vmem>>, %arg9: memref<32x32xbf16, #tpu.memory_space<vmem>>, %arg10: memref<8x4x32xf32, #tpu.memory_space<vmem>>, %arg11: memref<8x4x6xf32, #tpu.memory_space<vmem>>, %arg12: memref<1x4x32xf32, #tpu.memory_space<vmem>>, %arg13: memref<4x32xf32, #tpu.memory_space<vmem>>, %arg14: memref<4x32xf32, #tpu.memory_space<vmem>>) attributes {dimension_semantics = [#tpu.dimension_semantics<arbitrary>], iteration_bounds = array<i64: 1>, scalar_prefetch = 0 : i64, scratch_operands = 2 : i64, tpu.core_type = #tpu.core_type<tc>, window_params = [{transform_indices = @transform_0, window_bounds = array<i64: 3, 8, 4, 32>}, {pipeline_mode = #tpu.pipeline_mode<synchronous>, transform_indices = @transform_1, window_bounds = array<i64: 4, 6, 32>}, {pipeline_mode = #tpu.pipeline_mode<synchronous>, transform_indices = @transform_2, window_bounds = array<i64: 4, 32>}, {pipeline_mode = #tpu.pipeline_mode<synchronous>, transform_indices = @transform_3, window_bounds = array<i64: 3, 32, 32>}, {pipeline_mode = #tpu.pipeline_mode<synchronous>, transform_indices = @transform_4, window_bounds = array<i64: 3, 32, 32>}, {pipeline_mode = #tpu.pipeline_mode<synchronous>, transform_indices = @transform_5, window_bounds = array<i64: 3, 1, 32>}, {pipeline_mode = #tpu.pipeline_mode<synchronous>, transform_indices = @transform_6, window_bounds = array<i64: 32, 32>}, {pipeline_mode = #tpu.pipeline_mode<synchronous>, transform_indices = @transform_7, window_bounds = array<i64: 32, 32>}, {pipeline_mode = #tpu.pipeline_mode<synchronous>, transform_indices = @transform_8, window_bounds = array<i64: 32, 32>}, {transform_indices = @transform_9, window_bounds = array<i64: 8, 4, 32>}, {transform_indices = @transform_10, window_bounds = array<i64: 8, 4, 6>}, {pipeline_mode = #tpu.pipeline_mode<synchronous>, transform_indices = @transform_11, window_bounds = array<i64: 1, 4, 32>}]} {
    %c0_i32 = arith.constant 0 : i32
    %0 = arith.cmpi eq, %arg0, %c0_i32 : i32
    %1 = arith.extui %0 : i1 to i32
    %c0_i32_0 = arith.constant 0 : i32
    %2 = arith.cmpi ne, %1, %c0_i32_0 : i32
    scf.if %2 {
      %c0_310 = arith.constant 0 : index
      %c0_311 = arith.constant 0 : index
      %616 = vector.load %arg3[%c0_310, %c0_311] : memref<4x32xf32, #tpu.memory_space<vmem>>, vector<4x32xf32>
      %c0_312 = arith.constant 0 : index
      %c0_313 = arith.constant 0 : index
      %617 = vector.load %arg13[%c0_312, %c0_313] : memref<4x32xf32, #tpu.memory_space<vmem>>, vector<4x32xf32>
      tpu.vector_store %arg13[%c0_312, %c0_313], %616 {strides = array<i32>} : memref<4x32xf32, #tpu.memory_space<vmem>>, vector<4x32xf32>,
      %cst_314 = arith.constant 0.000000e+00 : f32
      %618 = vector.broadcast %cst_314 : f32 to vector<4x32xf32>
      %c0_315 = arith.constant 0 : index
      %c0_316 = arith.constant 0 : index
      %619 = vector.load %arg14[%c0_315, %c0_316] : memref<4x32xf32, #tpu.memory_space<vmem>>, vector<4x32xf32>
      tpu.vector_store %arg14[%c0_315, %c0_316], %618 {strides = array<i32>} : memref<4x32xf32, #tpu.memory_space<vmem>>, vector<4x32xf32>,
    } else {
    }
    %c0 = arith.constant 0 : index
    %c0_1 = arith.constant 0 : index
    %c0_2 = arith.constant 0 : index
    %3 = vector.load %arg2[%c0, %c0_1, %c0_2] : memref<4x6x32xbf16, #tpu.memory_space<vmem>>, vector<4x6x32xbf16>
    %c0_3 = arith.constant 0 : index
    %c0_4 = arith.constant 0 : index
    %c0_5 = arith.constant 0 : index
    %4 = vector.load %arg4[%c0_3, %c0_4, %c0_5] : memref<3x32x32xbf16, #tpu.memory_space<vmem>>, vector<1x32x32xbf16>
    %5 = vector.shape_cast %4 : vector<1x32x32xbf16> to vector<32x32xbf16>
    %c1 = arith.constant 1 : index
    %c0_6 = arith.constant 0 : index
    %c0_7 = arith.constant 0 : index
    %6 = vector.load %arg4[%c1, %c0_6, %c0_7] : memref<3x32x32xbf16, #tpu.memory_space<vmem>>, vector<1x32x32xbf16>
    %7 = vector.shape_cast %6 : vector<1x32x32xbf16> to vector<32x32xbf16>
    %c2 = arith.constant 2 : index
    %c0_8 = arith.constant 0 : index
    %c0_9 = arith.constant 0 : index
    %8 = vector.load %arg4[%c2, %c0_8, %c0_9] : memref<3x32x32xbf16, #tpu.memory_space<vmem>>, vector<1x32x32xbf16>
    %9 = vector.shape_cast %8 : vector<1x32x32xbf16> to vector<32x32xbf16>
    %c0_10 = arith.constant 0 : index
    %c0_11 = arith.constant 0 : index
    %c0_12 = arith.constant 0 : index
    %10 = vector.load %arg5[%c0_10, %c0_11, %c0_12] : memref<3x32x32xbf16, #tpu.memory_space<vmem>>, vector<1x32x32xbf16>
    %11 = vector.shape_cast %10 : vector<1x32x32xbf16> to vector<32x32xbf16>
    %c1_13 = arith.constant 1 : index
    %c0_14 = arith.constant 0 : index
    %c0_15 = arith.constant 0 : index
    %12 = vector.load %arg5[%c1_13, %c0_14, %c0_15] : memref<3x32x32xbf16, #tpu.memory_space<vmem>>, vector<1x32x32xbf16>
    %13 = vector.shape_cast %12 : vector<1x32x32xbf16> to vector<32x32xbf16>
    %c2_16 = arith.constant 2 : index
    %c0_17 = arith.constant 0 : index
    %c0_18 = arith.constant 0 : index
    %14 = vector.load %arg5[%c2_16, %c0_17, %c0_18] : memref<3x32x32xbf16, #tpu.memory_space<vmem>>, vector<1x32x32xbf16>
    %15 = vector.shape_cast %14 : vector<1x32x32xbf16> to vector<32x32xbf16>
    %c0_19 = arith.constant 0 : index
    %c0_20 = arith.constant 0 : index
    %c0_21 = arith.constant 0 : index
    %16 = vector.load %arg6[%c0_19, %c0_20, %c0_21] : memref<3x1x32xf32, #tpu.memory_space<vmem>>, vector<1x1x32xf32>
    %17 = vector.shape_cast %16 : vector<1x1x32xf32> to vector<1x32xf32>
    %c1_22 = arith.constant 1 : index
    %c0_23 = arith.constant 0 : index
    %c0_24 = arith.constant 0 : index
    %18 = vector.load %arg6[%c1_22, %c0_23, %c0_24] : memref<3x1x32xf32, #tpu.memory_space<vmem>>, vector<1x1x32xf32>
    %19 = vector.shape_cast %18 : vector<1x1x32xf32> to vector<1x32xf32>
    %c2_25 = arith.constant 2 : index
    %c0_26 = arith.constant 0 : index
    %c0_27 = arith.constant 0 : index
    %20 = vector.load %arg6[%c2_25, %c0_26, %c0_27] : memref<3x1x32xf32, #tpu.memory_space<vmem>>, vector<1x1x32xf32>
    %21 = vector.shape_cast %20 : vector<1x1x32xf32> to vector<1x32xf32>
    %c0_28 = arith.constant 0 : index
    %c0_29 = arith.constant 0 : index
    %22 = vector.load %arg7[%c0_28, %c0_29] : memref<32x32xbf16, #tpu.memory_space<vmem>>, vector<32x32xbf16>
    %c0_30 = arith.constant 0 : index
    %c0_31 = arith.constant 0 : index
    %23 = vector.load %arg8[%c0_30, %c0_31] : memref<32x32xbf16, #tpu.memory_space<vmem>>, vector<32x32xbf16>
    %c0_32 = arith.constant 0 : index
    %c0_33 = arith.constant 0 : index
    %24 = vector.load %arg9[%c0_32, %c0_33] : memref<32x32xbf16, #tpu.memory_space<vmem>>, vector<32x32xbf16>
    %c0_34 = arith.constant 0 : index
    %c0_35 = arith.constant 0 : index
    %25 = vector.load %arg13[%c0_34, %c0_35] : memref<4x32xf32, #tpu.memory_space<vmem>>, vector<4x32xf32>
    %c0_36 = arith.constant 0 : index
    %c0_37 = arith.constant 0 : index
    %26 = vector.load %arg14[%c0_36, %c0_37] : memref<4x32xf32, #tpu.memory_space<vmem>>, vector<4x32xf32>
    %27 = arith.truncf %26 : vector<4x32xf32> to vector<4x32xbf16>
    %28 = arith.truncf %25 : vector<4x32xf32> to vector<4x32xbf16>
    %c0_38 = arith.constant 0 : index
    %c0_39 = arith.constant 0 : index
    %c0_40 = arith.constant 0 : index
    %c0_41 = arith.constant 0 : index
    %29 = vector.load %arg1[%c0_38, %c0_39, %c0_40, %c0_41] : memref<3x8x4x32xf32, #tpu.memory_space<vmem>>, vector<1x1x4x32xf32>
    %30 = vector.shape_cast %29 : vector<1x1x4x32xf32> to vector<4x32xf32>
    %cst = arith.constant dense<0.000000e+00> : vector<4x32xf32>
    %31 = tpu.matmul %27, %5, %cst {dimension_numbers = #tpu.dot_dimension_numbers<[1], [0], [0], [1], [0, 0, 1, 1], [], []>} : vector<4x32xbf16>, vector<32x32xbf16>, vector<4x32xf32> -> vector<4x32xf32>
    %32 = arith.addf %30, %31 : vector<4x32xf32>
    %c1_42 = arith.constant 1 : index
    %c0_43 = arith.constant 0 : index
    %c0_44 = arith.constant 0 : index
    %c0_45 = arith.constant 0 : index
    %33 = vector.load %arg1[%c1_42, %c0_43, %c0_44, %c0_45] : memref<3x8x4x32xf32, #tpu.memory_space<vmem>>, vector<1x1x4x32xf32>
    %34 = vector.shape_cast %33 : vector<1x1x4x32xf32> to vector<4x32xf32>
    %cst_46 = arith.constant dense<0.000000e+00> : vector<4x32xf32>
    %35 = tpu.matmul %27, %7, %cst_46 {dimension_numbers = #tpu.dot_dimension_numbers<[1], [0], [0], [1], [0, 0, 1, 1], [], []>} : vector<4x32xbf16>, vector<32x32xbf16>, vector<4x32xf32> -> vector<4x32xf32>
    %36 = arith.addf %34, %35 : vector<4x32xf32>
    %c2_47 = arith.constant 2 : index
    %c0_48 = arith.constant 0 : index
    %c0_49 = arith.constant 0 : index
    %c0_50 = arith.constant 0 : index
    %37 = vector.load %arg1[%c2_47, %c0_48, %c0_49, %c0_50] : memref<3x8x4x32xf32, #tpu.memory_space<vmem>>, vector<1x1x4x32xf32>
    %38 = vector.shape_cast %37 : vector<1x1x4x32xf32> to vector<4x32xf32>
    %cst_51 = arith.constant dense<0.000000e+00> : vector<4x32xf32>
    %39 = tpu.matmul %27, %9, %cst_51 {dimension_numbers = #tpu.dot_dimension_numbers<[1], [0], [0], [1], [0, 0, 1, 1], [], []>} : vector<4x32xbf16>, vector<32x32xbf16>, vector<4x32xf32> -> vector<4x32xf32>
    %40 = arith.addf %38, %39 : vector<4x32xf32>
    %cst_52 = arith.constant dense<0.000000e+00> : vector<4x32xf32>
    %41 = tpu.matmul %28, %11, %cst_52 {dimension_numbers = #tpu.dot_dimension_numbers<[1], [0], [0], [1], [0, 0, 1, 1], [], []>} : vector<4x32xbf16>, vector<32x32xbf16>, vector<4x32xf32> -> vector<4x32xf32>
    %42 = vector.broadcast %17 : vector<1x32xf32> to vector<4x32xf32>
    %43 = arith.addf %41, %42 : vector<4x32xf32>
    %cst_53 = arith.constant dense<0.000000e+00> : vector<4x32xf32>
    %44 = tpu.matmul %28, %13, %cst_53 {dimension_numbers = #tpu.dot_dimension_numbers<[1], [0], [0], [1], [0, 0, 1, 1], [], []>} : vector<4x32xbf16>, vector<32x32xbf16>, vector<4x32xf32> -> vector<4x32xf32>
    %45 = vector.broadcast %19 : vector<1x32xf32> to vector<4x32xf32>
    %46 = arith.addf %44, %45 : vector<4x32xf32>
    %cst_54 = arith.constant dense<0.000000e+00> : vector<4x32xf32>
    %47 = tpu.matmul %28, %15, %cst_54 {dimension_numbers = #tpu.dot_dimension_numbers<[1], [0], [0], [1], [0, 0, 1, 1], [], []>} : vector<4x32xbf16>, vector<32x32xbf16>, vector<4x32xf32> -> vector<4x32xf32>
    %48 = vector.broadcast %21 : vector<1x32xf32> to vector<4x32xf32>
    %49 = arith.addf %47, %48 : vector<4x32xf32>
    %50 = arith.addf %32, %43 : vector<4x32xf32>
    %51 = arith.negf %50 : vector<4x32xf32>
    %52 = math.exp %51 : vector<4x32xf32>
    %cst_55 = arith.constant 1.000000e+00 : f32
    %53 = vector.broadcast %cst_55 : f32 to vector<4x32xf32>
    %54 = arith.addf %53, %52 : vector<4x32xf32>
    %55 = arith.divf %53, %54 : vector<4x32xf32>
    %56 = arith.addf %36, %46 : vector<4x32xf32>
    %57 = arith.negf %56 : vector<4x32xf32>
    %58 = math.exp %57 : vector<4x32xf32>
    %cst_56 = arith.constant 1.000000e+00 : f32
    %59 = vector.broadcast %cst_56 : f32 to vector<4x32xf32>
    %60 = arith.addf %59, %58 : vector<4x32xf32>
    %61 = arith.divf %59, %60 : vector<4x32xf32>
    %62 = arith.mulf %55, %49 : vector<4x32xf32>
    %63 = arith.addf %40, %62 : vector<4x32xf32>
    %64 = math.tanh %63 : vector<4x32xf32>
    %cst_57 = arith.constant 1.000000e+00 : f32
    %65 = vector.broadcast %cst_57 : f32 to vector<4x32xf32>
    %66 = arith.subf %65, %61 : vector<4x32xf32>
    %67 = arith.mulf %66, %64 : vector<4x32xf32>
    %68 = arith.mulf %61, %25 : vector<4x32xf32>
    %69 = arith.addf %67, %68 : vector<4x32xf32>
    %70 = arith.truncf %69 : vector<4x32xf32> to vector<4x32xbf16>
    %cst_58 = arith.constant dense<0.000000e+00> : vector<4x32xf32>
    %71 = tpu.matmul %70, %22, %cst_58 {dimension_numbers = #tpu.dot_dimension_numbers<[1], [0], [0], [1], [0, 0, 1, 1], [], []>} : vector<4x32xbf16>, vector<32x32xbf16>, vector<4x32xf32> -> vector<4x32xf32>
    %72 = arith.truncf %71 : vector<4x32xf32> to vector<4x32xbf16>
    %73 = vector.shape_cast %72 : vector<4x32xbf16> to vector<4x1x32xbf16>
    "tpu.trace_start"() <{level = 10 : i32, message = "bqh,bsh->bqs"}> : () -> ()
    %cst_59 = arith.constant dense<0.000000e+00> : vector<4x1x6xf32>
    %74 = tpu.matmul %73, %3, %cst_59 {dimension_numbers = #tpu.dot_dimension_numbers<[2], [2], [1], [1], [0, 0, 0, 1, 1, 1], [0], [0]>} : vector<4x1x32xbf16>, vector<4x6x32xbf16>, vector<4x1x6xf32> -> vector<4x1x6xf32>
    "tpu.trace_stop"() : () -> ()
    %cst_60 = arith.constant dense<0xFF800000> : vector<4x1xf32>
    %75 = vector.multi_reduction <maximumf>, %74, %cst_60 [2] : vector<4x1x6xf32> to vector<4x1xf32>
    %76 = vector.shape_cast %75 : vector<4x1xf32> to vector<4x1x1xf32>
    %77 = vector.broadcast %76 : vector<4x1x1xf32> to vector<4x1x6xf32>
    %78 = arith.subf %74, %77 : vector<4x1x6xf32>
    %79 = math.exp %78 : vector<4x1x6xf32>
    %cst_61 = arith.constant dense<0.000000e+00> : vector<4x1xf32>
    %80 = vector.multi_reduction <add>, %79, %cst_61 [2] : vector<4x1x6xf32> to vector<4x1xf32>
    %81 = vector.shape_cast %80 : vector<4x1xf32> to vector<4x1x1xf32>
    %82 = tpu.reciprocal %81 {approx = true} : vector<4x1x1xf32> -> vector<4x1x1xf32>
    %83 = vector.broadcast %82 : vector<4x1x1xf32> to vector<4x1x6xf32>
    %84 = arith.mulf %79, %83 : vector<4x1x6xf32>
    %85 = arith.truncf %84 : vector<4x1x6xf32> to vector<4x1x6xbf16>
    "tpu.trace_start"() <{level = 10 : i32, message = "bqs,bsh->bqh"}> : () -> ()
    %cst_62 = arith.constant dense<0.000000e+00> : vector<4x1x32xf32>
    %86 = tpu.matmul %85, %3, %cst_62 {dimension_numbers = #tpu.dot_dimension_numbers<[2], [1], [1], [2], [0, 0, 0, 1, 1, 2], [0], [0]>} : vector<4x1x6xbf16>, vector<4x6x32xbf16>, vector<4x1x32xf32> -> vector<4x1x32xf32>
    "tpu.trace_stop"() : () -> ()
    %87 = vector.shape_cast %86 : vector<4x1x32xf32> to vector<4x32xf32>
    %88 = arith.truncf %87 : vector<4x32xf32> to vector<4x32xbf16>
    %cst_63 = arith.constant dense<0.000000e+00> : vector<4x32xf32>
    %89 = tpu.matmul %88, %23, %cst_63 {dimension_numbers = #tpu.dot_dimension_numbers<[1], [0], [0], [1], [0, 0, 1, 1], [], []>} : vector<4x32xbf16>, vector<32x32xbf16>, vector<4x32xf32> -> vector<4x32xf32>
    %cst_64 = arith.constant dense<0.000000e+00> : vector<4x32xf32>
    %90 = tpu.matmul %70, %24, %cst_64 {dimension_numbers = #tpu.dot_dimension_numbers<[1], [0], [0], [1], [0, 0, 1, 1], [], []>} : vector<4x32xbf16>, vector<32x32xbf16>, vector<4x32xf32> -> vector<4x32xf32>
    %91 = arith.addf %89, %90 : vector<4x32xf32>
    %92 = math.tanh %91 : vector<4x32xf32>
    %c0_65 = arith.constant 0 : index
    %c0_66 = arith.constant 0 : index
    %c0_67 = arith.constant 0 : index
    %93 = vector.load %arg10[%c0_65, %c0_66, %c0_67] : memref<8x4x32xf32, #tpu.memory_space<vmem>>, vector<1x4x32xf32>
    %94 = vector.shape_cast %93 : vector<1x4x32xf32> to vector<4x32xf32>
    %95 = vector.shape_cast %92 : vector<4x32xf32> to vector<1x4x32xf32>
    tpu.vector_store %arg10[%c0_65, %c0_66, %c0_67], %95 {strides = array<i32>} : memref<8x4x32xf32, #tpu.memory_space<vmem>>, vector<1x4x32xf32>,
    %96 = vector.shape_cast %84 : vector<4x1x6xf32> to vector<4x6xf32>
    %c0_68 = arith.constant 0 : index
    %c0_69 = arith.constant 0 : index
    %c0_70 = arith.constant 0 : index
    %97 = vector.load %arg11[%c0_68, %c0_69, %c0_70] : memref<8x4x6xf32, #tpu.memory_space<vmem>>, vector<1x4x6xf32>
    %98 = vector.shape_cast %97 : vector<1x4x6xf32> to vector<4x6xf32>
    %99 = vector.shape_cast %96 : vector<4x6xf32> to vector<1x4x6xf32>
    tpu.vector_store %arg11[%c0_68, %c0_69, %c0_70], %99 {strides = array<i32>} : memref<8x4x6xf32, #tpu.memory_space<vmem>>, vector<1x4x6xf32>,
    %100 = arith.truncf %92 : vector<4x32xf32> to vector<4x32xbf16>
    %101 = arith.truncf %69 : vector<4x32xf32> to vector<4x32xbf16>
    %c0_71 = arith.constant 0 : index
    %c1_72 = arith.constant 1 : index
    %c0_73 = arith.constant 0 : index
    %c0_74 = arith.constant 0 : index
    %102 = vector.load %arg1[%c0_71, %c1_72, %c0_73, %c0_74] : memref<3x8x4x32xf32, #tpu.memory_space<vmem>>, vector<1x1x4x32xf32>
    %103 = vector.shape_cast %102 : vector<1x1x4x32xf32> to vector<4x32xf32>
    %cst_75 = arith.constant dense<0.000000e+00> : vector<4x32xf32>
    %104 = tpu.matmul %100, %5, %cst_75 {dimension_numbers = #tpu.dot_dimension_numbers<[1], [0], [0], [1], [0, 0, 1, 1], [], []>} : vector<4x32xbf16>, vector<32x32xbf16>, vector<4x32xf32> -> vector<4x32xf32>
    %105 = arith.addf %103, %104 : vector<4x32xf32>
    %c1_76 = arith.constant 1 : index
    %c1_77 = arith.constant 1 : index
    %c0_78 = arith.constant 0 : index
    %c0_79 = arith.constant 0 : index
    %106 = vector.load %arg1[%c1_76, %c1_77, %c0_78, %c0_79] : memref<3x8x4x32xf32, #tpu.memory_space<vmem>>, vector<1x1x4x32xf32>
    %107 = vector.shape_cast %106 : vector<1x1x4x32xf32> to vector<4x32xf32>
    %cst_80 = arith.constant dense<0.000000e+00> : vector<4x32xf32>
    %108 = tpu.matmul %100, %7, %cst_80 {dimension_numbers = #tpu.dot_dimension_numbers<[1], [0], [0], [1], [0, 0, 1, 1], [], []>} : vector<4x32xbf16>, vector<32x32xbf16>, vector<4x32xf32> -> vector<4x32xf32>
    %109 = arith.addf %107, %108 : vector<4x32xf32>
    %c2_81 = arith.constant 2 : index
    %c1_82 = arith.constant 1 : index
    %c0_83 = arith.constant 0 : index
    %c0_84 = arith.constant 0 : index
    %110 = vector.load %arg1[%c2_81, %c1_82, %c0_83, %c0_84] : memref<3x8x4x32xf32, #tpu.memory_space<vmem>>, vector<1x1x4x32xf32>
    %111 = vector.shape_cast %110 : vector<1x1x4x32xf32> to vector<4x32xf32>
    %cst_85 = arith.constant dense<0.000000e+00> : vector<4x32xf32>
    %112 = tpu.matmul %100, %9, %cst_85 {dimension_numbers = #tpu.dot_dimension_numbers<[1], [0], [0], [1], [0, 0, 1, 1], [], []>} : vector<4x32xbf16>, vector<32x32xbf16>, vector<4x32xf32> -> vector<4x32xf32>
    %113 = arith.addf %111, %112 : vector<4x32xf32>
    %cst_86 = arith.constant dense<0.000000e+00> : vector<4x32xf32>
    %114 = tpu.matmul %101, %11, %cst_86 {dimension_numbers = #tpu.dot_dimension_numbers<[1], [0], [0], [1], [0, 0, 1, 1], [], []>} : vector<4x32xbf16>, vector<32x32xbf16>, vector<4x32xf32> -> vector<4x32xf32>
    %115 = vector.broadcast %17 : vector<1x32xf32> to vector<4x32xf32>
    %116 = arith.addf %114, %115 : vector<4x32xf32>
    %cst_87 = arith.constant dense<0.000000e+00> : vector<4x32xf32>
    %117 = tpu.matmul %101, %13, %cst_87 {dimension_numbers = #tpu.dot_dimension_numbers<[1], [0], [0], [1], [0, 0, 1, 1], [], []>} : vector<4x32xbf16>, vector<32x32xbf16>, vector<4x32xf32> -> vector<4x32xf32>
    %118 = vector.broadcast %19 : vector<1x32xf32> to vector<4x32xf32>
    %119 = arith.addf %117, %118 : vector<4x32xf32>
    %cst_88 = arith.constant dense<0.000000e+00> : vector<4x32xf32>
    %120 = tpu.matmul %101, %15, %cst_88 {dimension_numbers = #tpu.dot_dimension_numbers<[1], [0], [0], [1], [0, 0, 1, 1], [], []>} : vector<4x32xbf16>, vector<32x32xbf16>, vector<4x32xf32> -> vector<4x32xf32>
    %121 = vector.broadcast %21 : vector<1x32xf32> to vector<4x32xf32>
    %122 = arith.addf %120, %121 : vector<4x32xf32>
    %123 = arith.addf %105, %116 : vector<4x32xf32>
    %124 = arith.negf %123 : vector<4x32xf32>
    %125 = math.exp %124 : vector<4x32xf32>
    %cst_89 = arith.constant 1.000000e+00 : f32
    %126 = vector.broadcast %cst_89 : f32 to vector<4x32xf32>
    %127 = arith.addf %126, %125 : vector<4x32xf32>
    %128 = arith.divf %126, %127 : vector<4x32xf32>
    %129 = arith.addf %109, %119 : vector<4x32xf32>
    %130 = arith.negf %129 : vector<4x32xf32>
    %131 = math.exp %130 : vector<4x32xf32>
    %cst_90 = arith.constant 1.000000e+00 : f32
    %132 = vector.broadcast %cst_90 : f32 to vector<4x32xf32>
    %133 = arith.addf %132, %131 : vector<4x32xf32>
    %134 = arith.divf %132, %133 : vector<4x32xf32>
    %135 = arith.mulf %128, %122 : vector<4x32xf32>
    %136 = arith.addf %113, %135 : vector<4x32xf32>
    %137 = math.tanh %136 : vector<4x32xf32>
    %cst_91 = arith.constant 1.000000e+00 : f32
    %138 = vector.broadcast %cst_91 : f32 to vector<4x32xf32>
    %139 = arith.subf %138, %134 : vector<4x32xf32>
    %140 = arith.mulf %139, %137 : vector<4x32xf32>
    %141 = arith.mulf %134, %69 : vector<4x32xf32>
    %142 = arith.addf %140, %141 : vector<4x32xf32>
    %143 = arith.truncf %142 : vector<4x32xf32> to vector<4x32xbf16>
    %cst_92 = arith.constant dense<0.000000e+00> : vector<4x32xf32>
    %144 = tpu.matmul %143, %22, %cst_92 {dimension_numbers = #tpu.dot_dimension_numbers<[1], [0], [0], [1], [0, 0, 1, 1], [], []>} : vector<4x32xbf16>, vector<32x32xbf16>, vector<4x32xf32> -> vector<4x32xf32>
    %145 = arith.truncf %144 : vector<4x32xf32> to vector<4x32xbf16>
    %146 = vector.shape_cast %145 : vector<4x32xbf16> to vector<4x1x32xbf16>
    "tpu.trace_start"() <{level = 10 : i32, message = "bqh,bsh->bqs"}> : () -> ()
    %cst_93 = arith.constant dense<0.000000e+00> : vector<4x1x6xf32>
    %147 = tpu.matmul %146, %3, %cst_93 {dimension_numbers = #tpu.dot_dimension_numbers<[2], [2], [1], [1], [0, 0, 0, 1, 1, 1], [0], [0]>} : vector<4x1x32xbf16>, vector<4x6x32xbf16>, vector<4x1x6xf32> -> vector<4x1x6xf32>
    "tpu.trace_stop"() : () -> ()
    %cst_94 = arith.constant dense<0xFF800000> : vector<4x1xf32>
    %148 = vector.multi_reduction <maximumf>, %147, %cst_94 [2] : vector<4x1x6xf32> to vector<4x1xf32>
    %149 = vector.shape_cast %148 : vector<4x1xf32> to vector<4x1x1xf32>
    %150 = vector.broadcast %149 : vector<4x1x1xf32> to vector<4x1x6xf32>
    %151 = arith.subf %147, %150 : vector<4x1x6xf32>
    %152 = math.exp %151 : vector<4x1x6xf32>
    %cst_95 = arith.constant dense<0.000000e+00> : vector<4x1xf32>
    %153 = vector.multi_reduction <add>, %152, %cst_95 [2] : vector<4x1x6xf32> to vector<4x1xf32>
    %154 = vector.shape_cast %153 : vector<4x1xf32> to vector<4x1x1xf32>
    %155 = tpu.reciprocal %154 {approx = true} : vector<4x1x1xf32> -> vector<4x1x1xf32>
    %156 = vector.broadcast %155 : vector<4x1x1xf32> to vector<4x1x6xf32>
    %157 = arith.mulf %152, %156 : vector<4x1x6xf32>
    %158 = arith.truncf %157 : vector<4x1x6xf32> to vector<4x1x6xbf16>
    "tpu.trace_start"() <{level = 10 : i32, message = "bqs,bsh->bqh"}> : () -> ()
    %cst_96 = arith.constant dense<0.000000e+00> : vector<4x1x32xf32>
    %159 = tpu.matmul %158, %3, %cst_96 {dimension_numbers = #tpu.dot_dimension_numbers<[2], [1], [1], [2], [0, 0, 0, 1, 1, 2], [0], [0]>} : vector<4x1x6xbf16>, vector<4x6x32xbf16>, vector<4x1x32xf32> -> vector<4x1x32xf32>
    "tpu.trace_stop"() : () -> ()
    %160 = vector.shape_cast %159 : vector<4x1x32xf32> to vector<4x32xf32>
    %161 = arith.truncf %160 : vector<4x32xf32> to vector<4x32xbf16>
    %cst_97 = arith.constant dense<0.000000e+00> : vector<4x32xf32>
    %162 = tpu.matmul %161, %23, %cst_97 {dimension_numbers = #tpu.dot_dimension_numbers<[1], [0], [0], [1], [0, 0, 1, 1], [], []>} : vector<4x32xbf16>, vector<32x32xbf16>, vector<4x32xf32> -> vector<4x32xf32>
    %cst_98 = arith.constant dense<0.000000e+00> : vector<4x32xf32>
    %163 = tpu.matmul %143, %24, %cst_98 {dimension_numbers = #tpu.dot_dimension_numbers<[1], [0], [0], [1], [0, 0, 1, 1], [], []>} : vector<4x32xbf16>, vector<32x32xbf16>, vector<4x32xf32> -> vector<4x32xf32>
    %164 = arith.addf %162, %163 : vector<4x32xf32>
    %165 = math.tanh %164 : vector<4x32xf32>
    %c1_99 = arith.constant 1 : index
    %c0_100 = arith.constant 0 : index
    %c0_101 = arith.constant 0 : index
    %166 = vector.load %arg10[%c1_99, %c0_100, %c0_101] : memref<8x4x32xf32, #tpu.memory_space<vmem>>, vector<1x4x32xf32>
    %167 = vector.shape_cast %166 : vector<1x4x32xf32> to vector<4x32xf32>
    %168 = vector.shape_cast %165 : vector<4x32xf32> to vector<1x4x32xf32>
    tpu.vector_store %arg10[%c1_99, %c0_100, %c0_101], %168 {strides = array<i32>} : memref<8x4x32xf32, #tpu.memory_space<vmem>>, vector<1x4x32xf32>,
    %169 = vector.shape_cast %157 : vector<4x1x6xf32> to vector<4x6xf32>
    %c1_102 = arith.constant 1 : index
    %c0_103 = arith.constant 0 : index
    %c0_104 = arith.constant 0 : index
    %170 = vector.load %arg11[%c1_102, %c0_103, %c0_104] : memref<8x4x6xf32, #tpu.memory_space<vmem>>, vector<1x4x6xf32>
    %171 = vector.shape_cast %170 : vector<1x4x6xf32> to vector<4x6xf32>
    %172 = vector.shape_cast %169 : vector<4x6xf32> to vector<1x4x6xf32>
    tpu.vector_store %arg11[%c1_102, %c0_103, %c0_104], %172 {strides = array<i32>} : memref<8x4x6xf32, #tpu.memory_space<vmem>>, vector<1x4x6xf32>,
    %173 = arith.truncf %165 : vector<4x32xf32> to vector<4x32xbf16>
    %174 = arith.truncf %142 : vector<4x32xf32> to vector<4x32xbf16>
    %c0_105 = arith.constant 0 : index
    %c2_106 = arith.constant 2 : index
    %c0_107 = arith.constant 0 : index
    %c0_108 = arith.constant 0 : index
    %175 = vector.load %arg1[%c0_105, %c2_106, %c0_107, %c0_108] : memref<3x8x4x32xf32, #tpu.memory_space<vmem>>, vector<1x1x4x32xf32>
    %176 = vector.shape_cast %175 : vector<1x1x4x32xf32> to vector<4x32xf32>
    %cst_109 = arith.constant dense<0.000000e+00> : vector<4x32xf32>
    %177 = tpu.matmul %173, %5, %cst_109 {dimension_numbers = #tpu.dot_dimension_numbers<[1], [0], [0], [1], [0, 0, 1, 1], [], []>} : vector<4x32xbf16>, vector<32x32xbf16>, vector<4x32xf32> -> vector<4x32xf32>
    %178 = arith.addf %176, %177 : vector<4x32xf32>
    %c1_110 = arith.constant 1 : index
    %c2_111 = arith.constant 2 : index
    %c0_112 = arith.constant 0 : index
    %c0_113 = arith.constant 0 : index
    %179 = vector.load %arg1[%c1_110, %c2_111, %c0_112, %c0_113] : memref<3x8x4x32xf32, #tpu.memory_space<vmem>>, vector<1x1x4x32xf32>
    %180 = vector.shape_cast %179 : vector<1x1x4x32xf32> to vector<4x32xf32>
    %cst_114 = arith.constant dense<0.000000e+00> : vector<4x32xf32>
    %181 = tpu.matmul %173, %7, %cst_114 {dimension_numbers = #tpu.dot_dimension_numbers<[1], [0], [0], [1], [0, 0, 1, 1], [], []>} : vector<4x32xbf16>, vector<32x32xbf16>, vector<4x32xf32> -> vector<4x32xf32>
    %182 = arith.addf %180, %181 : vector<4x32xf32>
    %c2_115 = arith.constant 2 : index
    %c2_116 = arith.constant 2 : index
    %c0_117 = arith.constant 0 : index
    %c0_118 = arith.constant 0 : index
    %183 = vector.load %arg1[%c2_115, %c2_116, %c0_117, %c0_118] : memref<3x8x4x32xf32, #tpu.memory_space<vmem>>, vector<1x1x4x32xf32>
    %184 = vector.shape_cast %183 : vector<1x1x4x32xf32> to vector<4x32xf32>
    %cst_119 = arith.constant dense<0.000000e+00> : vector<4x32xf32>
    %185 = tpu.matmul %173, %9, %cst_119 {dimension_numbers = #tpu.dot_dimension_numbers<[1], [0], [0], [1], [0, 0, 1, 1], [], []>} : vector<4x32xbf16>, vector<32x32xbf16>, vector<4x32xf32> -> vector<4x32xf32>
    %186 = arith.addf %184, %185 : vector<4x32xf32>
    %cst_120 = arith.constant dense<0.000000e+00> : vector<4x32xf32>
    %187 = tpu.matmul %174, %11, %cst_120 {dimension_numbers = #tpu.dot_dimension_numbers<[1], [0], [0], [1], [0, 0, 1, 1], [], []>} : vector<4x32xbf16>, vector<32x32xbf16>, vector<4x32xf32> -> vector<4x32xf32>
    %188 = vector.broadcast %17 : vector<1x32xf32> to vector<4x32xf32>
    %189 = arith.addf %187, %188 : vector<4x32xf32>
    %cst_121 = arith.constant dense<0.000000e+00> : vector<4x32xf32>
    %190 = tpu.matmul %174, %13, %cst_121 {dimension_numbers = #tpu.dot_dimension_numbers<[1], [0], [0], [1], [0, 0, 1, 1], [], []>} : vector<4x32xbf16>, vector<32x32xbf16>, vector<4x32xf32> -> vector<4x32xf32>
    %191 = vector.broadcast %19 : vector<1x32xf32> to vector<4x32xf32>
    %192 = arith.addf %190, %191 : vector<4x32xf32>
    %cst_122 = arith.constant dense<0.000000e+00> : vector<4x32xf32>
    %193 = tpu.matmul %174, %15, %cst_122 {dimension_numbers = #tpu.dot_dimension_numbers<[1], [0], [0], [1], [0, 0, 1, 1], [], []>} : vector<4x32xbf16>, vector<32x32xbf16>, vector<4x32xf32> -> vector<4x32xf32>
    %194 = vector.broadcast %21 : vector<1x32xf32> to vector<4x32xf32>
    %195 = arith.addf %193, %194 : vector<4x32xf32>
    %196 = arith.addf %178, %189 : vector<4x32xf32>
    %197 = arith.negf %196 : vector<4x32xf32>
    %198 = math.exp %197 : vector<4x32xf32>
    %cst_123 = arith.constant 1.000000e+00 : f32
    %199 = vector.broadcast %cst_123 : f32 to vector<4x32xf32>
    %200 = arith.addf %199, %198 : vector<4x32xf32>
    %201 = arith.divf %199, %200 : vector<4x32xf32>
    %202 = arith.addf %182, %192 : vector<4x32xf32>
    %203 = arith.negf %202 : vector<4x32xf32>
    %204 = math.exp %203 : vector<4x32xf32>
    %cst_124 = arith.constant 1.000000e+00 : f32
    %205 = vector.broadcast %cst_124 : f32 to vector<4x32xf32>
    %206 = arith.addf %205, %204 : vector<4x32xf32>
    %207 = arith.divf %205, %206 : vector<4x32xf32>
    %208 = arith.mulf %201, %195 : vector<4x32xf32>
    %209 = arith.addf %186, %208 : vector<4x32xf32>
    %210 = math.tanh %209 : vector<4x32xf32>
    %cst_125 = arith.constant 1.000000e+00 : f32
    %211 = vector.broadcast %cst_125 : f32 to vector<4x32xf32>
    %212 = arith.subf %211, %207 : vector<4x32xf32>
    %213 = arith.mulf %212, %210 : vector<4x32xf32>
    %214 = arith.mulf %207, %142 : vector<4x32xf32>
    %215 = arith.addf %213, %214 : vector<4x32xf32>
    %216 = arith.truncf %215 : vector<4x32xf32> to vector<4x32xbf16>
    %cst_126 = arith.constant dense<0.000000e+00> : vector<4x32xf32>
    %217 = tpu.matmul %216, %22, %cst_126 {dimension_numbers = #tpu.dot_dimension_numbers<[1], [0], [0], [1], [0, 0, 1, 1], [], []>} : vector<4x32xbf16>, vector<32x32xbf16>, vector<4x32xf32> -> vector<4x32xf32>
    %218 = arith.truncf %217 : vector<4x32xf32> to vector<4x32xbf16>
    %219 = vector.shape_cast %218 : vector<4x32xbf16> to vector<4x1x32xbf16>
    "tpu.trace_start"() <{level = 10 : i32, message = "bqh,bsh->bqs"}> : () -> ()
    %cst_127 = arith.constant dense<0.000000e+00> : vector<4x1x6xf32>
    %220 = tpu.matmul %219, %3, %cst_127 {dimension_numbers = #tpu.dot_dimension_numbers<[2], [2], [1], [1], [0, 0, 0, 1, 1, 1], [0], [0]>} : vector<4x1x32xbf16>, vector<4x6x32xbf16>, vector<4x1x6xf32> -> vector<4x1x6xf32>
    "tpu.trace_stop"() : () -> ()
    %cst_128 = arith.constant dense<0xFF800000> : vector<4x1xf32>
    %221 = vector.multi_reduction <maximumf>, %220, %cst_128 [2] : vector<4x1x6xf32> to vector<4x1xf32>
    %222 = vector.shape_cast %221 : vector<4x1xf32> to vector<4x1x1xf32>
    %223 = vector.broadcast %222 : vector<4x1x1xf32> to vector<4x1x6xf32>
    %224 = arith.subf %220, %223 : vector<4x1x6xf32>
    %225 = math.exp %224 : vector<4x1x6xf32>
    %cst_129 = arith.constant dense<0.000000e+00> : vector<4x1xf32>
    %226 = vector.multi_reduction <add>, %225, %cst_129 [2] : vector<4x1x6xf32> to vector<4x1xf32>
    %227 = vector.shape_cast %226 : vector<4x1xf32> to vector<4x1x1xf32>
    %228 = tpu.reciprocal %227 {approx = true} : vector<4x1x1xf32> -> vector<4x1x1xf32>
    %229 = vector.broadcast %228 : vector<4x1x1xf32> to vector<4x1x6xf32>
    %230 = arith.mulf %225, %229 : vector<4x1x6xf32>
    %231 = arith.truncf %230 : vector<4x1x6xf32> to vector<4x1x6xbf16>
    "tpu.trace_start"() <{level = 10 : i32, message = "bqs,bsh->bqh"}> : () -> ()
    %cst_130 = arith.constant dense<0.000000e+00> : vector<4x1x32xf32>
    %232 = tpu.matmul %231, %3, %cst_130 {dimension_numbers = #tpu.dot_dimension_numbers<[2], [1], [1], [2], [0, 0, 0, 1, 1, 2], [0], [0]>} : vector<4x1x6xbf16>, vector<4x6x32xbf16>, vector<4x1x32xf32> -> vector<4x1x32xf32>
    "tpu.trace_stop"() : () -> ()
    %233 = vector.shape_cast %232 : vector<4x1x32xf32> to vector<4x32xf32>
    %234 = arith.truncf %233 : vector<4x32xf32> to vector<4x32xbf16>
    %cst_131 = arith.constant dense<0.000000e+00> : vector<4x32xf32>
    %235 = tpu.matmul %234, %23, %cst_131 {dimension_numbers = #tpu.dot_dimension_numbers<[1], [0], [0], [1], [0, 0, 1, 1], [], []>} : vector<4x32xbf16>, vector<32x32xbf16>, vector<4x32xf32> -> vector<4x32xf32>
    %cst_132 = arith.constant dense<0.000000e+00> : vector<4x32xf32>
    %236 = tpu.matmul %216, %24, %cst_132 {dimension_numbers = #tpu.dot_dimension_numbers<[1], [0], [0], [1], [0, 0, 1, 1], [], []>} : vector<4x32xbf16>, vector<32x32xbf16>, vector<4x32xf32> -> vector<4x32xf32>
    %237 = arith.addf %235, %236 : vector<4x32xf32>
    %238 = math.tanh %237 : vector<4x32xf32>
    %c2_133 = arith.constant 2 : index
    %c0_134 = arith.constant 0 : index
    %c0_135 = arith.constant 0 : index
    %239 = vector.load %arg10[%c2_133, %c0_134, %c0_135] : memref<8x4x32xf32, #tpu.memory_space<vmem>>, vector<1x4x32xf32>
    %240 = vector.shape_cast %239 : vector<1x4x32xf32> to vector<4x32xf32>
    %241 = vector.shape_cast %238 : vector<4x32xf32> to vector<1x4x32xf32>
    tpu.vector_store %arg10[%c2_133, %c0_134, %c0_135], %241 {strides = array<i32>} : memref<8x4x32xf32, #tpu.memory_space<vmem>>, vector<1x4x32xf32>,
    %242 = vector.shape_cast %230 : vector<4x1x6xf32> to vector<4x6xf32>
    %c2_136 = arith.constant 2 : index
    %c0_137 = arith.constant 0 : index
    %c0_138 = arith.constant 0 : index
    %243 = vector.load %arg11[%c2_136, %c0_137, %c0_138] : memref<8x4x6xf32, #tpu.memory_space<vmem>>, vector<1x4x6xf32>
    %244 = vector.shape_cast %243 : vector<1x4x6xf32> to vector<4x6xf32>
    %245 = vector.shape_cast %242 : vector<4x6xf32> to vector<1x4x6xf32>
    tpu.vector_store %arg11[%c2_136, %c0_137, %c0_138], %245 {strides = array<i32>} : memref<8x4x6xf32, #tpu.memory_space<vmem>>, vector<1x4x6xf32>,
    %246 = arith.truncf %238 : vector<4x32xf32> to vector<4x32xbf16>
    %247 = arith.truncf %215 : vector<4x32xf32> to vector<4x32xbf16>
    %c0_139 = arith.constant 0 : index
    %c3 = arith.constant 3 : index
    %c0_140 = arith.constant 0 : index
    %c0_141 = arith.constant 0 : index
    %248 = vector.load %arg1[%c0_139, %c3, %c0_140, %c0_141] : memref<3x8x4x32xf32, #tpu.memory_space<vmem>>, vector<1x1x4x32xf32>
    %249 = vector.shape_cast %248 : vector<1x1x4x32xf32> to vector<4x32xf32>
    %cst_142 = arith.constant dense<0.000000e+00> : vector<4x32xf32>
    %250 = tpu.matmul %246, %5, %cst_142 {dimension_numbers = #tpu.dot_dimension_numbers<[1], [0], [0], [1], [0, 0, 1, 1], [], []>} : vector<4x32xbf16>, vector<32x32xbf16>, vector<4x32xf32> -> vector<4x32xf32>
    %251 = arith.addf %249, %250 : vector<4x32xf32>
    %c1_143 = arith.constant 1 : index
    %c3_144 = arith.constant 3 : index
    %c0_145 = arith.constant 0 : index
    %c0_146 = arith.constant 0 : index
    %252 = vector.load %arg1[%c1_143, %c3_144, %c0_145, %c0_146] : memref<3x8x4x32xf32, #tpu.memory_space<vmem>>, vector<1x1x4x32xf32>
    %253 = vector.shape_cast %252 : vector<1x1x4x32xf32> to vector<4x32xf32>
    %cst_147 = arith.constant dense<0.000000e+00> : vector<4x32xf32>
    %254 = tpu.matmul %246, %7, %cst_147 {dimension_numbers = #tpu.dot_dimension_numbers<[1], [0], [0], [1], [0, 0, 1, 1], [], []>} : vector<4x32xbf16>, vector<32x32xbf16>, vector<4x32xf32> -> vector<4x32xf32>
    %255 = arith.addf %253, %254 : vector<4x32xf32>
    %c2_148 = arith.constant 2 : index
    %c3_149 = arith.constant 3 : index
    %c0_150 = arith.constant 0 : index
    %c0_151 = arith.constant 0 : index
    %256 = vector.load %arg1[%c2_148, %c3_149, %c0_150, %c0_151] : memref<3x8x4x32xf32, #tpu.memory_space<vmem>>, vector<1x1x4x32xf32>
    %257 = vector.shape_cast %256 : vector<1x1x4x32xf32> to vector<4x32xf32>
    %cst_152 = arith.constant dense<0.000000e+00> : vector<4x32xf32>
    %258 = tpu.matmul %246, %9, %cst_152 {dimension_numbers = #tpu.dot_dimension_numbers<[1], [0], [0], [1], [0, 0, 1, 1], [], []>} : vector<4x32xbf16>, vector<32x32xbf16>, vector<4x32xf32> -> vector<4x32xf32>
    %259 = arith.addf %257, %258 : vector<4x32xf32>
    %cst_153 = arith.constant dense<0.000000e+00> : vector<4x32xf32>
    %260 = tpu.matmul %247, %11, %cst_153 {dimension_numbers = #tpu.dot_dimension_numbers<[1], [0], [0], [1], [0, 0, 1, 1], [], []>} : vector<4x32xbf16>, vector<32x32xbf16>, vector<4x32xf32> -> vector<4x32xf32>
    %261 = vector.broadcast %17 : vector<1x32xf32> to vector<4x32xf32>
    %262 = arith.addf %260, %261 : vector<4x32xf32>
    %cst_154 = arith.constant dense<0.000000e+00> : vector<4x32xf32>
    %263 = tpu.matmul %247, %13, %cst_154 {dimension_numbers = #tpu.dot_dimension_numbers<[1], [0], [0], [1], [0, 0, 1, 1], [], []>} : vector<4x32xbf16>, vector<32x32xbf16>, vector<4x32xf32> -> vector<4x32xf32>
    %264 = vector.broadcast %19 : vector<1x32xf32> to vector<4x32xf32>
    %265 = arith.addf %263, %264 : vector<4x32xf32>
    %cst_155 = arith.constant dense<0.000000e+00> : vector<4x32xf32>
    %266 = tpu.matmul %247, %15, %cst_155 {dimension_numbers = #tpu.dot_dimension_numbers<[1], [0], [0], [1], [0, 0, 1, 1], [], []>} : vector<4x32xbf16>, vector<32x32xbf16>, vector<4x32xf32> -> vector<4x32xf32>
    %267 = vector.broadcast %21 : vector<1x32xf32> to vector<4x32xf32>
    %268 = arith.addf %266, %267 : vector<4x32xf32>
    %269 = arith.addf %251, %262 : vector<4x32xf32>
    %270 = arith.negf %269 : vector<4x32xf32>
    %271 = math.exp %270 : vector<4x32xf32>
    %cst_156 = arith.constant 1.000000e+00 : f32
    %272 = vector.broadcast %cst_156 : f32 to vector<4x32xf32>
    %273 = arith.addf %272, %271 : vector<4x32xf32>
    %274 = arith.divf %272, %273 : vector<4x32xf32>
    %275 = arith.addf %255, %265 : vector<4x32xf32>
    %276 = arith.negf %275 : vector<4x32xf32>
    %277 = math.exp %276 : vector<4x32xf32>
    %cst_157 = arith.constant 1.000000e+00 : f32
    %278 = vector.broadcast %cst_157 : f32 to vector<4x32xf32>
    %279 = arith.addf %278, %277 : vector<4x32xf32>
    %280 = arith.divf %278, %279 : vector<4x32xf32>
    %281 = arith.mulf %274, %268 : vector<4x32xf32>
    %282 = arith.addf %259, %281 : vector<4x32xf32>
    %283 = math.tanh %282 : vector<4x32xf32>
    %cst_158 = arith.constant 1.000000e+00 : f32
    %284 = vector.broadcast %cst_158 : f32 to vector<4x32xf32>
    %285 = arith.subf %284, %280 : vector<4x32xf32>
    %286 = arith.mulf %285, %283 : vector<4x32xf32>
    %287 = arith.mulf %280, %215 : vector<4x32xf32>
    %288 = arith.addf %286, %287 : vector<4x32xf32>
    %289 = arith.truncf %288 : vector<4x32xf32> to vector<4x32xbf16>
    %cst_159 = arith.constant dense<0.000000e+00> : vector<4x32xf32>
    %290 = tpu.matmul %289, %22, %cst_159 {dimension_numbers = #tpu.dot_dimension_numbers<[1], [0], [0], [1], [0, 0, 1, 1], [], []>} : vector<4x32xbf16>, vector<32x32xbf16>, vector<4x32xf32> -> vector<4x32xf32>
    %291 = arith.truncf %290 : vector<4x32xf32> to vector<4x32xbf16>
    %292 = vector.shape_cast %291 : vector<4x32xbf16> to vector<4x1x32xbf16>
    "tpu.trace_start"() <{level = 10 : i32, message = "bqh,bsh->bqs"}> : () -> ()
    %cst_160 = arith.constant dense<0.000000e+00> : vector<4x1x6xf32>
    %293 = tpu.matmul %292, %3, %cst_160 {dimension_numbers = #tpu.dot_dimension_numbers<[2], [2], [1], [1], [0, 0, 0, 1, 1, 1], [0], [0]>} : vector<4x1x32xbf16>, vector<4x6x32xbf16>, vector<4x1x6xf32> -> vector<4x1x6xf32>
    "tpu.trace_stop"() : () -> ()
    %cst_161 = arith.constant dense<0xFF800000> : vector<4x1xf32>
    %294 = vector.multi_reduction <maximumf>, %293, %cst_161 [2] : vector<4x1x6xf32> to vector<4x1xf32>
    %295 = vector.shape_cast %294 : vector<4x1xf32> to vector<4x1x1xf32>
    %296 = vector.broadcast %295 : vector<4x1x1xf32> to vector<4x1x6xf32>
    %297 = arith.subf %293, %296 : vector<4x1x6xf32>
    %298 = math.exp %297 : vector<4x1x6xf32>
    %cst_162 = arith.constant dense<0.000000e+00> : vector<4x1xf32>
    %299 = vector.multi_reduction <add>, %298, %cst_162 [2] : vector<4x1x6xf32> to vector<4x1xf32>
    %300 = vector.shape_cast %299 : vector<4x1xf32> to vector<4x1x1xf32>
    %301 = tpu.reciprocal %300 {approx = true} : vector<4x1x1xf32> -> vector<4x1x1xf32>
    %302 = vector.broadcast %301 : vector<4x1x1xf32> to vector<4x1x6xf32>
    %303 = arith.mulf %298, %302 : vector<4x1x6xf32>
    %304 = arith.truncf %303 : vector<4x1x6xf32> to vector<4x1x6xbf16>
    "tpu.trace_start"() <{level = 10 : i32, message = "bqs,bsh->bqh"}> : () -> ()
    %cst_163 = arith.constant dense<0.000000e+00> : vector<4x1x32xf32>
    %305 = tpu.matmul %304, %3, %cst_163 {dimension_numbers = #tpu.dot_dimension_numbers<[2], [1], [1], [2], [0, 0, 0, 1, 1, 2], [0], [0]>} : vector<4x1x6xbf16>, vector<4x6x32xbf16>, vector<4x1x32xf32> -> vector<4x1x32xf32>
    "tpu.trace_stop"() : () -> ()
    %306 = vector.shape_cast %305 : vector<4x1x32xf32> to vector<4x32xf32>
    %307 = arith.truncf %306 : vector<4x32xf32> to vector<4x32xbf16>
    %cst_164 = arith.constant dense<0.000000e+00> : vector<4x32xf32>
    %308 = tpu.matmul %307, %23, %cst_164 {dimension_numbers = #tpu.dot_dimension_numbers<[1], [0], [0], [1], [0, 0, 1, 1], [], []>} : vector<4x32xbf16>, vector<32x32xbf16>, vector<4x32xf32> -> vector<4x32xf32>
    %cst_165 = arith.constant dense<0.000000e+00> : vector<4x32xf32>
    %309 = tpu.matmul %289, %24, %cst_165 {dimension_numbers = #tpu.dot_dimension_numbers<[1], [0], [0], [1], [0, 0, 1, 1], [], []>} : vector<4x32xbf16>, vector<32x32xbf16>, vector<4x32xf32> -> vector<4x32xf32>
    %310 = arith.addf %308, %309 : vector<4x32xf32>
    %311 = math.tanh %310 : vector<4x32xf32>
    %c3_166 = arith.constant 3 : index
    %c0_167 = arith.constant 0 : index
    %c0_168 = arith.constant 0 : index
    %312 = vector.load %arg10[%c3_166, %c0_167, %c0_168] : memref<8x4x32xf32, #tpu.memory_space<vmem>>, vector<1x4x32xf32>
    %313 = vector.shape_cast %312 : vector<1x4x32xf32> to vector<4x32xf32>
    %314 = vector.shape_cast %311 : vector<4x32xf32> to vector<1x4x32xf32>
    tpu.vector_store %arg10[%c3_166, %c0_167, %c0_168], %314 {strides = array<i32>} : memref<8x4x32xf32, #tpu.memory_space<vmem>>, vector<1x4x32xf32>,
    %315 = vector.shape_cast %303 : vector<4x1x6xf32> to vector<4x6xf32>
    %c3_169 = arith.constant 3 : index
    %c0_170 = arith.constant 0 : index
    %c0_171 = arith.constant 0 : index
    %316 = vector.load %arg11[%c3_169, %c0_170, %c0_171] : memref<8x4x6xf32, #tpu.memory_space<vmem>>, vector<1x4x6xf32>
    %317 = vector.shape_cast %316 : vector<1x4x6xf32> to vector<4x6xf32>
    %318 = vector.shape_cast %315 : vector<4x6xf32> to vector<1x4x6xf32>
    tpu.vector_store %arg11[%c3_169, %c0_170, %c0_171], %318 {strides = array<i32>} : memref<8x4x6xf32, #tpu.memory_space<vmem>>, vector<1x4x6xf32>,
    %319 = arith.truncf %311 : vector<4x32xf32> to vector<4x32xbf16>
    %320 = arith.truncf %288 : vector<4x32xf32> to vector<4x32xbf16>
    %c0_172 = arith.constant 0 : index
    %c4 = arith.constant 4 : index
    %c0_173 = arith.constant 0 : index
    %c0_174 = arith.constant 0 : index
    %321 = vector.load %arg1[%c0_172, %c4, %c0_173, %c0_174] : memref<3x8x4x32xf32, #tpu.memory_space<vmem>>, vector<1x1x4x32xf32>
    %322 = vector.shape_cast %321 : vector<1x1x4x32xf32> to vector<4x32xf32>
    %cst_175 = arith.constant dense<0.000000e+00> : vector<4x32xf32>
    %323 = tpu.matmul %319, %5, %cst_175 {dimension_numbers = #tpu.dot_dimension_numbers<[1], [0], [0], [1], [0, 0, 1, 1], [], []>} : vector<4x32xbf16>, vector<32x32xbf16>, vector<4x32xf32> -> vector<4x32xf32>
    %324 = arith.addf %322, %323 : vector<4x32xf32>
    %c1_176 = arith.constant 1 : index
    %c4_177 = arith.constant 4 : index
    %c0_178 = arith.constant 0 : index
    %c0_179 = arith.constant 0 : index
    %325 = vector.load %arg1[%c1_176, %c4_177, %c0_178, %c0_179] : memref<3x8x4x32xf32, #tpu.memory_space<vmem>>, vector<1x1x4x32xf32>
    %326 = vector.shape_cast %325 : vector<1x1x4x32xf32> to vector<4x32xf32>
    %cst_180 = arith.constant dense<0.000000e+00> : vector<4x32xf32>
    %327 = tpu.matmul %319, %7, %cst_180 {dimension_numbers = #tpu.dot_dimension_numbers<[1], [0], [0], [1], [0, 0, 1, 1], [], []>} : vector<4x32xbf16>, vector<32x32xbf16>, vector<4x32xf32> -> vector<4x32xf32>
    %328 = arith.addf %326, %327 : vector<4x32xf32>
    %c2_181 = arith.constant 2 : index
    %c4_182 = arith.constant 4 : index
    %c0_183 = arith.constant 0 : index
    %c0_184 = arith.constant 0 : index
    %329 = vector.load %arg1[%c2_181, %c4_182, %c0_183, %c0_184] : memref<3x8x4x32xf32, #tpu.memory_space<vmem>>, vector<1x1x4x32xf32>
    %330 = vector.shape_cast %329 : vector<1x1x4x32xf32> to vector<4x32xf32>
    %cst_185 = arith.constant dense<0.000000e+00> : vector<4x32xf32>
    %331 = tpu.matmul %319, %9, %cst_185 {dimension_numbers = #tpu.dot_dimension_numbers<[1], [0], [0], [1], [0, 0, 1, 1], [], []>} : vector<4x32xbf16>, vector<32x32xbf16>, vector<4x32xf32> -> vector<4x32xf32>
    %332 = arith.addf %330, %331 : vector<4x32xf32>
    %cst_186 = arith.constant dense<0.000000e+00> : vector<4x32xf32>
    %333 = tpu.matmul %320, %11, %cst_186 {dimension_numbers = #tpu.dot_dimension_numbers<[1], [0], [0], [1], [0, 0, 1, 1], [], []>} : vector<4x32xbf16>, vector<32x32xbf16>, vector<4x32xf32> -> vector<4x32xf32>
    %334 = vector.broadcast %17 : vector<1x32xf32> to vector<4x32xf32>
    %335 = arith.addf %333, %334 : vector<4x32xf32>
    %cst_187 = arith.constant dense<0.000000e+00> : vector<4x32xf32>
    %336 = tpu.matmul %320, %13, %cst_187 {dimension_numbers = #tpu.dot_dimension_numbers<[1], [0], [0], [1], [0, 0, 1, 1], [], []>} : vector<4x32xbf16>, vector<32x32xbf16>, vector<4x32xf32> -> vector<4x32xf32>
    %337 = vector.broadcast %19 : vector<1x32xf32> to vector<4x32xf32>
    %338 = arith.addf %336, %337 : vector<4x32xf32>
    %cst_188 = arith.constant dense<0.000000e+00> : vector<4x32xf32>
    %339 = tpu.matmul %320, %15, %cst_188 {dimension_numbers = #tpu.dot_dimension_numbers<[1], [0], [0], [1], [0, 0, 1, 1], [], []>} : vector<4x32xbf16>, vector<32x32xbf16>, vector<4x32xf32> -> vector<4x32xf32>
    %340 = vector.broadcast %21 : vector<1x32xf32> to vector<4x32xf32>
    %341 = arith.addf %339, %340 : vector<4x32xf32>
    %342 = arith.addf %324, %335 : vector<4x32xf32>
    %343 = arith.negf %342 : vector<4x32xf32>
    %344 = math.exp %343 : vector<4x32xf32>
    %cst_189 = arith.constant 1.000000e+00 : f32
    %345 = vector.broadcast %cst_189 : f32 to vector<4x32xf32>
    %346 = arith.addf %345, %344 : vector<4x32xf32>
    %347 = arith.divf %345, %346 : vector<4x32xf32>
    %348 = arith.addf %328, %338 : vector<4x32xf32>
    %349 = arith.negf %348 : vector<4x32xf32>
    %350 = math.exp %349 : vector<4x32xf32>
    %cst_190 = arith.constant 1.000000e+00 : f32
    %351 = vector.broadcast %cst_190 : f32 to vector<4x32xf32>
    %352 = arith.addf %351, %350 : vector<4x32xf32>
    %353 = arith.divf %351, %352 : vector<4x32xf32>
    %354 = arith.mulf %347, %341 : vector<4x32xf32>
    %355 = arith.addf %332, %354 : vector<4x32xf32>
    %356 = math.tanh %355 : vector<4x32xf32>
    %cst_191 = arith.constant 1.000000e+00 : f32
    %357 = vector.broadcast %cst_191 : f32 to vector<4x32xf32>
    %358 = arith.subf %357, %353 : vector<4x32xf32>
    %359 = arith.mulf %358, %356 : vector<4x32xf32>
    %360 = arith.mulf %353, %288 : vector<4x32xf32>
    %361 = arith.addf %359, %360 : vector<4x32xf32>
    %362 = arith.truncf %361 : vector<4x32xf32> to vector<4x32xbf16>
    %cst_192 = arith.constant dense<0.000000e+00> : vector<4x32xf32>
    %363 = tpu.matmul %362, %22, %cst_192 {dimension_numbers = #tpu.dot_dimension_numbers<[1], [0], [0], [1], [0, 0, 1, 1], [], []>} : vector<4x32xbf16>, vector<32x32xbf16>, vector<4x32xf32> -> vector<4x32xf32>
    %364 = arith.truncf %363 : vector<4x32xf32> to vector<4x32xbf16>
    %365 = vector.shape_cast %364 : vector<4x32xbf16> to vector<4x1x32xbf16>
    "tpu.trace_start"() <{level = 10 : i32, message = "bqh,bsh->bqs"}> : () -> ()
    %cst_193 = arith.constant dense<0.000000e+00> : vector<4x1x6xf32>
    %366 = tpu.matmul %365, %3, %cst_193 {dimension_numbers = #tpu.dot_dimension_numbers<[2], [2], [1], [1], [0, 0, 0, 1, 1, 1], [0], [0]>} : vector<4x1x32xbf16>, vector<4x6x32xbf16>, vector<4x1x6xf32> -> vector<4x1x6xf32>
    "tpu.trace_stop"() : () -> ()
    %cst_194 = arith.constant dense<0xFF800000> : vector<4x1xf32>
    %367 = vector.multi_reduction <maximumf>, %366, %cst_194 [2] : vector<4x1x6xf32> to vector<4x1xf32>
    %368 = vector.shape_cast %367 : vector<4x1xf32> to vector<4x1x1xf32>
    %369 = vector.broadcast %368 : vector<4x1x1xf32> to vector<4x1x6xf32>
    %370 = arith.subf %366, %369 : vector<4x1x6xf32>
    %371 = math.exp %370 : vector<4x1x6xf32>
    %cst_195 = arith.constant dense<0.000000e+00> : vector<4x1xf32>
    %372 = vector.multi_reduction <add>, %371, %cst_195 [2] : vector<4x1x6xf32> to vector<4x1xf32>
    %373 = vector.shape_cast %372 : vector<4x1xf32> to vector<4x1x1xf32>
    %374 = tpu.reciprocal %373 {approx = true} : vector<4x1x1xf32> -> vector<4x1x1xf32>
    %375 = vector.broadcast %374 : vector<4x1x1xf32> to vector<4x1x6xf32>
    %376 = arith.mulf %371, %375 : vector<4x1x6xf32>
    %377 = arith.truncf %376 : vector<4x1x6xf32> to vector<4x1x6xbf16>
    "tpu.trace_start"() <{level = 10 : i32, message = "bqs,bsh->bqh"}> : () -> ()
    %cst_196 = arith.constant dense<0.000000e+00> : vector<4x1x32xf32>
    %378 = tpu.matmul %377, %3, %cst_196 {dimension_numbers = #tpu.dot_dimension_numbers<[2], [1], [1], [2], [0, 0, 0, 1, 1, 2], [0], [0]>} : vector<4x1x6xbf16>, vector<4x6x32xbf16>, vector<4x1x32xf32> -> vector<4x1x32xf32>
    "tpu.trace_stop"() : () -> ()
    %379 = vector.shape_cast %378 : vector<4x1x32xf32> to vector<4x32xf32>
    %380 = arith.truncf %379 : vector<4x32xf32> to vector<4x32xbf16>
    %cst_197 = arith.constant dense<0.000000e+00> : vector<4x32xf32>
    %381 = tpu.matmul %380, %23, %cst_197 {dimension_numbers = #tpu.dot_dimension_numbers<[1], [0], [0], [1], [0, 0, 1, 1], [], []>} : vector<4x32xbf16>, vector<32x32xbf16>, vector<4x32xf32> -> vector<4x32xf32>
    %cst_198 = arith.constant dense<0.000000e+00> : vector<4x32xf32>
    %382 = tpu.matmul %362, %24, %cst_198 {dimension_numbers = #tpu.dot_dimension_numbers<[1], [0], [0], [1], [0, 0, 1, 1], [], []>} : vector<4x32xbf16>, vector<32x32xbf16>, vector<4x32xf32> -> vector<4x32xf32>
    %383 = arith.addf %381, %382 : vector<4x32xf32>
    %384 = math.tanh %383 : vector<4x32xf32>
    %c4_199 = arith.constant 4 : index
    %c0_200 = arith.constant 0 : index
    %c0_201 = arith.constant 0 : index
    %385 = vector.load %arg10[%c4_199, %c0_200, %c0_201] : memref<8x4x32xf32, #tpu.memory_space<vmem>>, vector<1x4x32xf32>
    %386 = vector.shape_cast %385 : vector<1x4x32xf32> to vector<4x32xf32>
    %387 = vector.shape_cast %384 : vector<4x32xf32> to vector<1x4x32xf32>
    tpu.vector_store %arg10[%c4_199, %c0_200, %c0_201], %387 {strides = array<i32>} : memref<8x4x32xf32, #tpu.memory_space<vmem>>, vector<1x4x32xf32>,
    %388 = vector.shape_cast %376 : vector<4x1x6xf32> to vector<4x6xf32>
    %c4_202 = arith.constant 4 : index
    %c0_203 = arith.constant 0 : index
    %c0_204 = arith.constant 0 : index
    %389 = vector.load %arg11[%c4_202, %c0_203, %c0_204] : memref<8x4x6xf32, #tpu.memory_space<vmem>>, vector<1x4x6xf32>
    %390 = vector.shape_cast %389 : vector<1x4x6xf32> to vector<4x6xf32>
    %391 = vector.shape_cast %388 : vector<4x6xf32> to vector<1x4x6xf32>
    tpu.vector_store %arg11[%c4_202, %c0_203, %c0_204], %391 {strides = array<i32>} : memref<8x4x6xf32, #tpu.memory_space<vmem>>, vector<1x4x6xf32>,
    %392 = arith.truncf %384 : vector<4x32xf32> to vector<4x32xbf16>
    %393 = arith.truncf %361 : vector<4x32xf32> to vector<4x32xbf16>
    %c0_205 = arith.constant 0 : index
    %c5 = arith.constant 5 : index
    %c0_206 = arith.constant 0 : index
    %c0_207 = arith.constant 0 : index
    %394 = vector.load %arg1[%c0_205, %c5, %c0_206, %c0_207] : memref<3x8x4x32xf32, #tpu.memory_space<vmem>>, vector<1x1x4x32xf32>
    %395 = vector.shape_cast %394 : vector<1x1x4x32xf32> to vector<4x32xf32>
    %cst_208 = arith.constant dense<0.000000e+00> : vector<4x32xf32>
    %396 = tpu.matmul %392, %5, %cst_208 {dimension_numbers = #tpu.dot_dimension_numbers<[1], [0], [0], [1], [0, 0, 1, 1], [], []>} : vector<4x32xbf16>, vector<32x32xbf16>, vector<4x32xf32> -> vector<4x32xf32>
    %397 = arith.addf %395, %396 : vector<4x32xf32>
    %c1_209 = arith.constant 1 : index
    %c5_210 = arith.constant 5 : index
    %c0_211 = arith.constant 0 : index
    %c0_212 = arith.constant 0 : index
    %398 = vector.load %arg1[%c1_209, %c5_210, %c0_211, %c0_212] : memref<3x8x4x32xf32, #tpu.memory_space<vmem>>, vector<1x1x4x32xf32>
    %399 = vector.shape_cast %398 : vector<1x1x4x32xf32> to vector<4x32xf32>
    %cst_213 = arith.constant dense<0.000000e+00> : vector<4x32xf32>
    %400 = tpu.matmul %392, %7, %cst_213 {dimension_numbers = #tpu.dot_dimension_numbers<[1], [0], [0], [1], [0, 0, 1, 1], [], []>} : vector<4x32xbf16>, vector<32x32xbf16>, vector<4x32xf32> -> vector<4x32xf32>
    %401 = arith.addf %399, %400 : vector<4x32xf32>
    %c2_214 = arith.constant 2 : index
    %c5_215 = arith.constant 5 : index
    %c0_216 = arith.constant 0 : index
    %c0_217 = arith.constant 0 : index
    %402 = vector.load %arg1[%c2_214, %c5_215, %c0_216, %c0_217] : memref<3x8x4x32xf32, #tpu.memory_space<vmem>>, vector<1x1x4x32xf32>
    %403 = vector.shape_cast %402 : vector<1x1x4x32xf32> to vector<4x32xf32>
    %cst_218 = arith.constant dense<0.000000e+00> : vector<4x32xf32>
    %404 = tpu.matmul %392, %9, %cst_218 {dimension_numbers = #tpu.dot_dimension_numbers<[1], [0], [0], [1], [0, 0, 1, 1], [], []>} : vector<4x32xbf16>, vector<32x32xbf16>, vector<4x32xf32> -> vector<4x32xf32>
    %405 = arith.addf %403, %404 : vector<4x32xf32>
    %cst_219 = arith.constant dense<0.000000e+00> : vector<4x32xf32>
    %406 = tpu.matmul %393, %11, %cst_219 {dimension_numbers = #tpu.dot_dimension_numbers<[1], [0], [0], [1], [0, 0, 1, 1], [], []>} : vector<4x32xbf16>, vector<32x32xbf16>, vector<4x32xf32> -> vector<4x32xf32>
    %407 = vector.broadcast %17 : vector<1x32xf32> to vector<4x32xf32>
    %408 = arith.addf %406, %407 : vector<4x32xf32>
    %cst_220 = arith.constant dense<0.000000e+00> : vector<4x32xf32>
    %409 = tpu.matmul %393, %13, %cst_220 {dimension_numbers = #tpu.dot_dimension_numbers<[1], [0], [0], [1], [0, 0, 1, 1], [], []>} : vector<4x32xbf16>, vector<32x32xbf16>, vector<4x32xf32> -> vector<4x32xf32>
    %410 = vector.broadcast %19 : vector<1x32xf32> to vector<4x32xf32>
    %411 = arith.addf %409, %410 : vector<4x32xf32>
    %cst_221 = arith.constant dense<0.000000e+00> : vector<4x32xf32>
    %412 = tpu.matmul %393, %15, %cst_221 {dimension_numbers = #tpu.dot_dimension_numbers<[1], [0], [0], [1], [0, 0, 1, 1], [], []>} : vector<4x32xbf16>, vector<32x32xbf16>, vector<4x32xf32> -> vector<4x32xf32>
    %413 = vector.broadcast %21 : vector<1x32xf32> to vector<4x32xf32>
    %414 = arith.addf %412, %413 : vector<4x32xf32>
    %415 = arith.addf %397, %408 : vector<4x32xf32>
    %416 = arith.negf %415 : vector<4x32xf32>
    %417 = math.exp %416 : vector<4x32xf32>
    %cst_222 = arith.constant 1.000000e+00 : f32
    %418 = vector.broadcast %cst_222 : f32 to vector<4x32xf32>
    %419 = arith.addf %418, %417 : vector<4x32xf32>
    %420 = arith.divf %418, %419 : vector<4x32xf32>
    %421 = arith.addf %401, %411 : vector<4x32xf32>
    %422 = arith.negf %421 : vector<4x32xf32>
    %423 = math.exp %422 : vector<4x32xf32>
    %cst_223 = arith.constant 1.000000e+00 : f32
    %424 = vector.broadcast %cst_223 : f32 to vector<4x32xf32>
    %425 = arith.addf %424, %423 : vector<4x32xf32>
    %426 = arith.divf %424, %425 : vector<4x32xf32>
    %427 = arith.mulf %420, %414 : vector<4x32xf32>
    %428 = arith.addf %405, %427 : vector<4x32xf32>
    %429 = math.tanh %428 : vector<4x32xf32>
    %cst_224 = arith.constant 1.000000e+00 : f32
    %430 = vector.broadcast %cst_224 : f32 to vector<4x32xf32>
    %431 = arith.subf %430, %426 : vector<4x32xf32>
    %432 = arith.mulf %431, %429 : vector<4x32xf32>
    %433 = arith.mulf %426, %361 : vector<4x32xf32>
    %434 = arith.addf %432, %433 : vector<4x32xf32>
    %435 = arith.truncf %434 : vector<4x32xf32> to vector<4x32xbf16>
    %cst_225 = arith.constant dense<0.000000e+00> : vector<4x32xf32>
    %436 = tpu.matmul %435, %22, %cst_225 {dimension_numbers = #tpu.dot_dimension_numbers<[1], [0], [0], [1], [0, 0, 1, 1], [], []>} : vector<4x32xbf16>, vector<32x32xbf16>, vector<4x32xf32> -> vector<4x32xf32>
    %437 = arith.truncf %436 : vector<4x32xf32> to vector<4x32xbf16>
    %438 = vector.shape_cast %437 : vector<4x32xbf16> to vector<4x1x32xbf16>
    "tpu.trace_start"() <{level = 10 : i32, message = "bqh,bsh->bqs"}> : () -> ()
    %cst_226 = arith.constant dense<0.000000e+00> : vector<4x1x6xf32>
    %439 = tpu.matmul %438, %3, %cst_226 {dimension_numbers = #tpu.dot_dimension_numbers<[2], [2], [1], [1], [0, 0, 0, 1, 1, 1], [0], [0]>} : vector<4x1x32xbf16>, vector<4x6x32xbf16>, vector<4x1x6xf32> -> vector<4x1x6xf32>
    "tpu.trace_stop"() : () -> ()
    %cst_227 = arith.constant dense<0xFF800000> : vector<4x1xf32>
    %440 = vector.multi_reduction <maximumf>, %439, %cst_227 [2] : vector<4x1x6xf32> to vector<4x1xf32>
    %441 = vector.shape_cast %440 : vector<4x1xf32> to vector<4x1x1xf32>
    %442 = vector.broadcast %441 : vector<4x1x1xf32> to vector<4x1x6xf32>
    %443 = arith.subf %439, %442 : vector<4x1x6xf32>
    %444 = math.exp %443 : vector<4x1x6xf32>
    %cst_228 = arith.constant dense<0.000000e+00> : vector<4x1xf32>
    %445 = vector.multi_reduction <add>, %444, %cst_228 [2] : vector<4x1x6xf32> to vector<4x1xf32>
    %446 = vector.shape_cast %445 : vector<4x1xf32> to vector<4x1x1xf32>
    %447 = tpu.reciprocal %446 {approx = true} : vector<4x1x1xf32> -> vector<4x1x1xf32>
    %448 = vector.broadcast %447 : vector<4x1x1xf32> to vector<4x1x6xf32>
    %449 = arith.mulf %444, %448 : vector<4x1x6xf32>
    %450 = arith.truncf %449 : vector<4x1x6xf32> to vector<4x1x6xbf16>
    "tpu.trace_start"() <{level = 10 : i32, message = "bqs,bsh->bqh"}> : () -> ()
    %cst_229 = arith.constant dense<0.000000e+00> : vector<4x1x32xf32>
    %451 = tpu.matmul %450, %3, %cst_229 {dimension_numbers = #tpu.dot_dimension_numbers<[2], [1], [1], [2], [0, 0, 0, 1, 1, 2], [0], [0]>} : vector<4x1x6xbf16>, vector<4x6x32xbf16>, vector<4x1x32xf32> -> vector<4x1x32xf32>
    "tpu.trace_stop"() : () -> ()
    %452 = vector.shape_cast %451 : vector<4x1x32xf32> to vector<4x32xf32>
    %453 = arith.truncf %452 : vector<4x32xf32> to vector<4x32xbf16>
    %cst_230 = arith.constant dense<0.000000e+00> : vector<4x32xf32>
    %454 = tpu.matmul %453, %23, %cst_230 {dimension_numbers = #tpu.dot_dimension_numbers<[1], [0], [0], [1], [0, 0, 1, 1], [], []>} : vector<4x32xbf16>, vector<32x32xbf16>, vector<4x32xf32> -> vector<4x32xf32>
    %cst_231 = arith.constant dense<0.000000e+00> : vector<4x32xf32>
    %455 = tpu.matmul %435, %24, %cst_231 {dimension_numbers = #tpu.dot_dimension_numbers<[1], [0], [0], [1], [0, 0, 1, 1], [], []>} : vector<4x32xbf16>, vector<32x32xbf16>, vector<4x32xf32> -> vector<4x32xf32>
    %456 = arith.addf %454, %455 : vector<4x32xf32>
    %457 = math.tanh %456 : vector<4x32xf32>
    %c5_232 = arith.constant 5 : index
    %c0_233 = arith.constant 0 : index
    %c0_234 = arith.constant 0 : index
    %458 = vector.load %arg10[%c5_232, %c0_233, %c0_234] : memref<8x4x32xf32, #tpu.memory_space<vmem>>, vector<1x4x32xf32>
    %459 = vector.shape_cast %458 : vector<1x4x32xf32> to vector<4x32xf32>
    %460 = vector.shape_cast %457 : vector<4x32xf32> to vector<1x4x32xf32>
    tpu.vector_store %arg10[%c5_232, %c0_233, %c0_234], %460 {strides = array<i32>} : memref<8x4x32xf32, #tpu.memory_space<vmem>>, vector<1x4x32xf32>,
    %461 = vector.shape_cast %449 : vector<4x1x6xf32> to vector<4x6xf32>
    %c5_235 = arith.constant 5 : index
    %c0_236 = arith.constant 0 : index
    %c0_237 = arith.constant 0 : index
    %462 = vector.load %arg11[%c5_235, %c0_236, %c0_237] : memref<8x4x6xf32, #tpu.memory_space<vmem>>, vector<1x4x6xf32>
    %463 = vector.shape_cast %462 : vector<1x4x6xf32> to vector<4x6xf32>
    %464 = vector.shape_cast %461 : vector<4x6xf32> to vector<1x4x6xf32>
    tpu.vector_store %arg11[%c5_235, %c0_236, %c0_237], %464 {strides = array<i32>} : memref<8x4x6xf32, #tpu.memory_space<vmem>>, vector<1x4x6xf32>,
    %465 = arith.truncf %457 : vector<4x32xf32> to vector<4x32xbf16>
    %466 = arith.truncf %434 : vector<4x32xf32> to vector<4x32xbf16>
    %c0_238 = arith.constant 0 : index
    %c6 = arith.constant 6 : index
    %c0_239 = arith.constant 0 : index
    %c0_240 = arith.constant 0 : index
    %467 = vector.load %arg1[%c0_238, %c6, %c0_239, %c0_240] : memref<3x8x4x32xf32, #tpu.memory_space<vmem>>, vector<1x1x4x32xf32>
    %468 = vector.shape_cast %467 : vector<1x1x4x32xf32> to vector<4x32xf32>
    %cst_241 = arith.constant dense<0.000000e+00> : vector<4x32xf32>
    %469 = tpu.matmul %465, %5, %cst_241 {dimension_numbers = #tpu.dot_dimension_numbers<[1], [0], [0], [1], [0, 0, 1, 1], [], []>} : vector<4x32xbf16>, vector<32x32xbf16>, vector<4x32xf32> -> vector<4x32xf32>
    %470 = arith.addf %468, %469 : vector<4x32xf32>
    %c1_242 = arith.constant 1 : index
    %c6_243 = arith.constant 6 : index
    %c0_244 = arith.constant 0 : index
    %c0_245 = arith.constant 0 : index
    %471 = vector.load %arg1[%c1_242, %c6_243, %c0_244, %c0_245] : memref<3x8x4x32xf32, #tpu.memory_space<vmem>>, vector<1x1x4x32xf32>
    %472 = vector.shape_cast %471 : vector<1x1x4x32xf32> to vector<4x32xf32>
    %cst_246 = arith.constant dense<0.000000e+00> : vector<4x32xf32>
    %473 = tpu.matmul %465, %7, %cst_246 {dimension_numbers = #tpu.dot_dimension_numbers<[1], [0], [0], [1], [0, 0, 1, 1], [], []>} : vector<4x32xbf16>, vector<32x32xbf16>, vector<4x32xf32> -> vector<4x32xf32>
    %474 = arith.addf %472, %473 : vector<4x32xf32>
    %c2_247 = arith.constant 2 : index
    %c6_248 = arith.constant 6 : index
    %c0_249 = arith.constant 0 : index
    %c0_250 = arith.constant 0 : index
    %475 = vector.load %arg1[%c2_247, %c6_248, %c0_249, %c0_250] : memref<3x8x4x32xf32, #tpu.memory_space<vmem>>, vector<1x1x4x32xf32>
    %476 = vector.shape_cast %475 : vector<1x1x4x32xf32> to vector<4x32xf32>
    %cst_251 = arith.constant dense<0.000000e+00> : vector<4x32xf32>
    %477 = tpu.matmul %465, %9, %cst_251 {dimension_numbers = #tpu.dot_dimension_numbers<[1], [0], [0], [1], [0, 0, 1, 1], [], []>} : vector<4x32xbf16>, vector<32x32xbf16>, vector<4x32xf32> -> vector<4x32xf32>
    %478 = arith.addf %476, %477 : vector<4x32xf32>
    %cst_252 = arith.constant dense<0.000000e+00> : vector<4x32xf32>
    %479 = tpu.matmul %466, %11, %cst_252 {dimension_numbers = #tpu.dot_dimension_numbers<[1], [0], [0], [1], [0, 0, 1, 1], [], []>} : vector<4x32xbf16>, vector<32x32xbf16>, vector<4x32xf32> -> vector<4x32xf32>
    %480 = vector.broadcast %17 : vector<1x32xf32> to vector<4x32xf32>
    %481 = arith.addf %479, %480 : vector<4x32xf32>
    %cst_253 = arith.constant dense<0.000000e+00> : vector<4x32xf32>
    %482 = tpu.matmul %466, %13, %cst_253 {dimension_numbers = #tpu.dot_dimension_numbers<[1], [0], [0], [1], [0, 0, 1, 1], [], []>} : vector<4x32xbf16>, vector<32x32xbf16>, vector<4x32xf32> -> vector<4x32xf32>
    %483 = vector.broadcast %19 : vector<1x32xf32> to vector<4x32xf32>
    %484 = arith.addf %482, %483 : vector<4x32xf32>
    %cst_254 = arith.constant dense<0.000000e+00> : vector<4x32xf32>
    %485 = tpu.matmul %466, %15, %cst_254 {dimension_numbers = #tpu.dot_dimension_numbers<[1], [0], [0], [1], [0, 0, 1, 1], [], []>} : vector<4x32xbf16>, vector<32x32xbf16>, vector<4x32xf32> -> vector<4x32xf32>
    %486 = vector.broadcast %21 : vector<1x32xf32> to vector<4x32xf32>
    %487 = arith.addf %485, %486 : vector<4x32xf32>
    %488 = arith.addf %470, %481 : vector<4x32xf32>
    %489 = arith.negf %488 : vector<4x32xf32>
    %490 = math.exp %489 : vector<4x32xf32>
    %cst_255 = arith.constant 1.000000e+00 : f32
    %491 = vector.broadcast %cst_255 : f32 to vector<4x32xf32>
    %492 = arith.addf %491, %490 : vector<4x32xf32>
    %493 = arith.divf %491, %492 : vector<4x32xf32>
    %494 = arith.addf %474, %484 : vector<4x32xf32>
    %495 = arith.negf %494 : vector<4x32xf32>
    %496 = math.exp %495 : vector<4x32xf32>
    %cst_256 = arith.constant 1.000000e+00 : f32
    %497 = vector.broadcast %cst_256 : f32 to vector<4x32xf32>
    %498 = arith.addf %497, %496 : vector<4x32xf32>
    %499 = arith.divf %497, %498 : vector<4x32xf32>
    %500 = arith.mulf %493, %487 : vector<4x32xf32>
    %501 = arith.addf %478, %500 : vector<4x32xf32>
    %502 = math.tanh %501 : vector<4x32xf32>
    %cst_257 = arith.constant 1.000000e+00 : f32
    %503 = vector.broadcast %cst_257 : f32 to vector<4x32xf32>
    %504 = arith.subf %503, %499 : vector<4x32xf32>
    %505 = arith.mulf %504, %502 : vector<4x32xf32>
    %506 = arith.mulf %499, %434 : vector<4x32xf32>
    %507 = arith.addf %505, %506 : vector<4x32xf32>
    %508 = arith.truncf %507 : vector<4x32xf32> to vector<4x32xbf16>
    %cst_258 = arith.constant dense<0.000000e+00> : vector<4x32xf32>
    %509 = tpu.matmul %508, %22, %cst_258 {dimension_numbers = #tpu.dot_dimension_numbers<[1], [0], [0], [1], [0, 0, 1, 1], [], []>} : vector<4x32xbf16>, vector<32x32xbf16>, vector<4x32xf32> -> vector<4x32xf32>
    %510 = arith.truncf %509 : vector<4x32xf32> to vector<4x32xbf16>
    %511 = vector.shape_cast %510 : vector<4x32xbf16> to vector<4x1x32xbf16>
    "tpu.trace_start"() <{level = 10 : i32, message = "bqh,bsh->bqs"}> : () -> ()
    %cst_259 = arith.constant dense<0.000000e+00> : vector<4x1x6xf32>
    %512 = tpu.matmul %511, %3, %cst_259 {dimension_numbers = #tpu.dot_dimension_numbers<[2], [2], [1], [1], [0, 0, 0, 1, 1, 1], [0], [0]>} : vector<4x1x32xbf16>, vector<4x6x32xbf16>, vector<4x1x6xf32> -> vector<4x1x6xf32>
    "tpu.trace_stop"() : () -> ()
    %cst_260 = arith.constant dense<0xFF800000> : vector<4x1xf32>
    %513 = vector.multi_reduction <maximumf>, %512, %cst_260 [2] : vector<4x1x6xf32> to vector<4x1xf32>
    %514 = vector.shape_cast %513 : vector<4x1xf32> to vector<4x1x1xf32>
    %515 = vector.broadcast %514 : vector<4x1x1xf32> to vector<4x1x6xf32>
    %516 = arith.subf %512, %515 : vector<4x1x6xf32>
    %517 = math.exp %516 : vector<4x1x6xf32>
    %cst_261 = arith.constant dense<0.000000e+00> : vector<4x1xf32>
    %518 = vector.multi_reduction <add>, %517, %cst_261 [2] : vector<4x1x6xf32> to vector<4x1xf32>
    %519 = vector.shape_cast %518 : vector<4x1xf32> to vector<4x1x1xf32>
    %520 = tpu.reciprocal %519 {approx = true} : vector<4x1x1xf32> -> vector<4x1x1xf32>
    %521 = vector.broadcast %520 : vector<4x1x1xf32> to vector<4x1x6xf32>
    %522 = arith.mulf %517, %521 : vector<4x1x6xf32>
    %523 = arith.truncf %522 : vector<4x1x6xf32> to vector<4x1x6xbf16>
    "tpu.trace_start"() <{level = 10 : i32, message = "bqs,bsh->bqh"}> : () -> ()
    %cst_262 = arith.constant dense<0.000000e+00> : vector<4x1x32xf32>
    %524 = tpu.matmul %523, %3, %cst_262 {dimension_numbers = #tpu.dot_dimension_numbers<[2], [1], [1], [2], [0, 0, 0, 1, 1, 2], [0], [0]>} : vector<4x1x6xbf16>, vector<4x6x32xbf16>, vector<4x1x32xf32> -> vector<4x1x32xf32>
    "tpu.trace_stop"() : () -> ()
    %525 = vector.shape_cast %524 : vector<4x1x32xf32> to vector<4x32xf32>
    %526 = arith.truncf %525 : vector<4x32xf32> to vector<4x32xbf16>
    %cst_263 = arith.constant dense<0.000000e+00> : vector<4x32xf32>
    %527 = tpu.matmul %526, %23, %cst_263 {dimension_numbers = #tpu.dot_dimension_numbers<[1], [0], [0], [1], [0, 0, 1, 1], [], []>} : vector<4x32xbf16>, vector<32x32xbf16>, vector<4x32xf32> -> vector<4x32xf32>
    %cst_264 = arith.constant dense<0.000000e+00> : vector<4x32xf32>
    %528 = tpu.matmul %508, %24, %cst_264 {dimension_numbers = #tpu.dot_dimension_numbers<[1], [0], [0], [1], [0, 0, 1, 1], [], []>} : vector<4x32xbf16>, vector<32x32xbf16>, vector<4x32xf32> -> vector<4x32xf32>
    %529 = arith.addf %527, %528 : vector<4x32xf32>
    %530 = math.tanh %529 : vector<4x32xf32>
    %c6_265 = arith.constant 6 : index
    %c0_266 = arith.constant 0 : index
    %c0_267 = arith.constant 0 : index
    %531 = vector.load %arg10[%c6_265, %c0_266, %c0_267] : memref<8x4x32xf32, #tpu.memory_space<vmem>>, vector<1x4x32xf32>
    %532 = vector.shape_cast %531 : vector<1x4x32xf32> to vector<4x32xf32>
    %533 = vector.shape_cast %530 : vector<4x32xf32> to vector<1x4x32xf32>
    tpu.vector_store %arg10[%c6_265, %c0_266, %c0_267], %533 {strides = array<i32>} : memref<8x4x32xf32, #tpu.memory_space<vmem>>, vector<1x4x32xf32>,
    %534 = vector.shape_cast %522 : vector<4x1x6xf32> to vector<4x6xf32>
    %c6_268 = arith.constant 6 : index
    %c0_269 = arith.constant 0 : index
    %c0_270 = arith.constant 0 : index
    %535 = vector.load %arg11[%c6_268, %c0_269, %c0_270] : memref<8x4x6xf32, #tpu.memory_space<vmem>>, vector<1x4x6xf32>
    %536 = vector.shape_cast %535 : vector<1x4x6xf32> to vector<4x6xf32>
    %537 = vector.shape_cast %534 : vector<4x6xf32> to vector<1x4x6xf32>
    tpu.vector_store %arg11[%c6_268, %c0_269, %c0_270], %537 {strides = array<i32>} : memref<8x4x6xf32, #tpu.memory_space<vmem>>, vector<1x4x6xf32>,
    %538 = arith.truncf %530 : vector<4x32xf32> to vector<4x32xbf16>
    %539 = arith.truncf %507 : vector<4x32xf32> to vector<4x32xbf16>
    %c0_271 = arith.constant 0 : index
    %c7 = arith.constant 7 : index
    %c0_272 = arith.constant 0 : index
    %c0_273 = arith.constant 0 : index
    %540 = vector.load %arg1[%c0_271, %c7, %c0_272, %c0_273] : memref<3x8x4x32xf32, #tpu.memory_space<vmem>>, vector<1x1x4x32xf32>
    %541 = vector.shape_cast %540 : vector<1x1x4x32xf32> to vector<4x32xf32>
    %cst_274 = arith.constant dense<0.000000e+00> : vector<4x32xf32>
    %542 = tpu.matmul %538, %5, %cst_274 {dimension_numbers = #tpu.dot_dimension_numbers<[1], [0], [0], [1], [0, 0, 1, 1], [], []>} : vector<4x32xbf16>, vector<32x32xbf16>, vector<4x32xf32> -> vector<4x32xf32>
    %543 = arith.addf %541, %542 : vector<4x32xf32>
    %c1_275 = arith.constant 1 : index
    %c7_276 = arith.constant 7 : index
    %c0_277 = arith.constant 0 : index
    %c0_278 = arith.constant 0 : index
    %544 = vector.load %arg1[%c1_275, %c7_276, %c0_277, %c0_278] : memref<3x8x4x32xf32, #tpu.memory_space<vmem>>, vector<1x1x4x32xf32>
    %545 = vector.shape_cast %544 : vector<1x1x4x32xf32> to vector<4x32xf32>
    %cst_279 = arith.constant dense<0.000000e+00> : vector<4x32xf32>
    %546 = tpu.matmul %538, %7, %cst_279 {dimension_numbers = #tpu.dot_dimension_numbers<[1], [0], [0], [1], [0, 0, 1, 1], [], []>} : vector<4x32xbf16>, vector<32x32xbf16>, vector<4x32xf32> -> vector<4x32xf32>
    %547 = arith.addf %545, %546 : vector<4x32xf32>
    %c2_280 = arith.constant 2 : index
    %c7_281 = arith.constant 7 : index
    %c0_282 = arith.constant 0 : index
    %c0_283 = arith.constant 0 : index
    %548 = vector.load %arg1[%c2_280, %c7_281, %c0_282, %c0_283] : memref<3x8x4x32xf32, #tpu.memory_space<vmem>>, vector<1x1x4x32xf32>
    %549 = vector.shape_cast %548 : vector<1x1x4x32xf32> to vector<4x32xf32>
    %cst_284 = arith.constant dense<0.000000e+00> : vector<4x32xf32>
    %550 = tpu.matmul %538, %9, %cst_284 {dimension_numbers = #tpu.dot_dimension_numbers<[1], [0], [0], [1], [0, 0, 1, 1], [], []>} : vector<4x32xbf16>, vector<32x32xbf16>, vector<4x32xf32> -> vector<4x32xf32>
    %551 = arith.addf %549, %550 : vector<4x32xf32>
    %cst_285 = arith.constant dense<0.000000e+00> : vector<4x32xf32>
    %552 = tpu.matmul %539, %11, %cst_285 {dimension_numbers = #tpu.dot_dimension_numbers<[1], [0], [0], [1], [0, 0, 1, 1], [], []>} : vector<4x32xbf16>, vector<32x32xbf16>, vector<4x32xf32> -> vector<4x32xf32>
    %553 = vector.broadcast %17 : vector<1x32xf32> to vector<4x32xf32>
    %554 = arith.addf %552, %553 : vector<4x32xf32>
    %cst_286 = arith.constant dense<0.000000e+00> : vector<4x32xf32>
    %555 = tpu.matmul %539, %13, %cst_286 {dimension_numbers = #tpu.dot_dimension_numbers<[1], [0], [0], [1], [0, 0, 1, 1], [], []>} : vector<4x32xbf16>, vector<32x32xbf16>, vector<4x32xf32> -> vector<4x32xf32>
    %556 = vector.broadcast %19 : vector<1x32xf32> to vector<4x32xf32>
    %557 = arith.addf %555, %556 : vector<4x32xf32>
    %cst_287 = arith.constant dense<0.000000e+00> : vector<4x32xf32>
    %558 = tpu.matmul %539, %15, %cst_287 {dimension_numbers = #tpu.dot_dimension_numbers<[1], [0], [0], [1], [0, 0, 1, 1], [], []>} : vector<4x32xbf16>, vector<32x32xbf16>, vector<4x32xf32> -> vector<4x32xf32>
    %559 = vector.broadcast %21 : vector<1x32xf32> to vector<4x32xf32>
    %560 = arith.addf %558, %559 : vector<4x32xf32>
    %561 = arith.addf %543, %554 : vector<4x32xf32>
    %562 = arith.negf %561 : vector<4x32xf32>
    %563 = math.exp %562 : vector<4x32xf32>
    %cst_288 = arith.constant 1.000000e+00 : f32
    %564 = vector.broadcast %cst_288 : f32 to vector<4x32xf32>
    %565 = arith.addf %564, %563 : vector<4x32xf32>
    %566 = arith.divf %564, %565 : vector<4x32xf32>
    %567 = arith.addf %547, %557 : vector<4x32xf32>
    %568 = arith.negf %567 : vector<4x32xf32>
    %569 = math.exp %568 : vector<4x32xf32>
    %cst_289 = arith.constant 1.000000e+00 : f32
    %570 = vector.broadcast %cst_289 : f32 to vector<4x32xf32>
    %571 = arith.addf %570, %569 : vector<4x32xf32>
    %572 = arith.divf %570, %571 : vector<4x32xf32>
    %573 = arith.mulf %566, %560 : vector<4x32xf32>
    %574 = arith.addf %551, %573 : vector<4x32xf32>
    %575 = math.tanh %574 : vector<4x32xf32>
    %cst_290 = arith.constant 1.000000e+00 : f32
    %576 = vector.broadcast %cst_290 : f32 to vector<4x32xf32>
    %577 = arith.subf %576, %572 : vector<4x32xf32>
    %578 = arith.mulf %577, %575 : vector<4x32xf32>
    %579 = arith.mulf %572, %507 : vector<4x32xf32>
    %580 = arith.addf %578, %579 : vector<4x32xf32>
    %581 = arith.truncf %580 : vector<4x32xf32> to vector<4x32xbf16>
    %cst_291 = arith.constant dense<0.000000e+00> : vector<4x32xf32>
    %582 = tpu.matmul %581, %22, %cst_291 {dimension_numbers = #tpu.dot_dimension_numbers<[1], [0], [0], [1], [0, 0, 1, 1], [], []>} : vector<4x32xbf16>, vector<32x32xbf16>, vector<4x32xf32> -> vector<4x32xf32>
    %583 = arith.truncf %582 : vector<4x32xf32> to vector<4x32xbf16>
    %584 = vector.shape_cast %583 : vector<4x32xbf16> to vector<4x1x32xbf16>
    "tpu.trace_start"() <{level = 10 : i32, message = "bqh,bsh->bqs"}> : () -> ()
    %cst_292 = arith.constant dense<0.000000e+00> : vector<4x1x6xf32>
    %585 = tpu.matmul %584, %3, %cst_292 {dimension_numbers = #tpu.dot_dimension_numbers<[2], [2], [1], [1], [0, 0, 0, 1, 1, 1], [0], [0]>} : vector<4x1x32xbf16>, vector<4x6x32xbf16>, vector<4x1x6xf32> -> vector<4x1x6xf32>
    "tpu.trace_stop"() : () -> ()
    %cst_293 = arith.constant dense<0xFF800000> : vector<4x1xf32>
    %586 = vector.multi_reduction <maximumf>, %585, %cst_293 [2] : vector<4x1x6xf32> to vector<4x1xf32>
    %587 = vector.shape_cast %586 : vector<4x1xf32> to vector<4x1x1xf32>
    %588 = vector.broadcast %587 : vector<4x1x1xf32> to vector<4x1x6xf32>
    %589 = arith.subf %585, %588 : vector<4x1x6xf32>
    %590 = math.exp %589 : vector<4x1x6xf32>
    %cst_294 = arith.constant dense<0.000000e+00> : vector<4x1xf32>
    %591 = vector.multi_reduction <add>, %590, %cst_294 [2] : vector<4x1x6xf32> to vector<4x1xf32>
    %592 = vector.shape_cast %591 : vector<4x1xf32> to vector<4x1x1xf32>
    %593 = tpu.reciprocal %592 {approx = true} : vector<4x1x1xf32> -> vector<4x1x1xf32>
    %594 = vector.broadcast %593 : vector<4x1x1xf32> to vector<4x1x6xf32>
    %595 = arith.mulf %590, %594 : vector<4x1x6xf32>
    %596 = arith.truncf %595 : vector<4x1x6xf32> to vector<4x1x6xbf16>
    "tpu.trace_start"() <{level = 10 : i32, message = "bqs,bsh->bqh"}> : () -> ()
    %cst_295 = arith.constant dense<0.000000e+00> : vector<4x1x32xf32>
    %597 = tpu.matmul %596, %3, %cst_295 {dimension_numbers = #tpu.dot_dimension_numbers<[2], [1], [1], [2], [0, 0, 0, 1, 1, 2], [0], [0]>} : vector<4x1x6xbf16>, vector<4x6x32xbf16>, vector<4x1x32xf32> -> vector<4x1x32xf32>
    "tpu.trace_stop"() : () -> ()
    %598 = vector.shape_cast %597 : vector<4x1x32xf32> to vector<4x32xf32>
    %599 = arith.truncf %598 : vector<4x32xf32> to vector<4x32xbf16>
    %cst_296 = arith.constant dense<0.000000e+00> : vector<4x32xf32>
    %600 = tpu.matmul %599, %23, %cst_296 {dimension_numbers = #tpu.dot_dimension_numbers<[1], [0], [0], [1], [0, 0, 1, 1], [], []>} : vector<4x32xbf16>, vector<32x32xbf16>, vector<4x32xf32> -> vector<4x32xf32>
    %cst_297 = arith.constant dense<0.000000e+00> : vector<4x32xf32>
    %601 = tpu.matmul %581, %24, %cst_297 {dimension_numbers = #tpu.dot_dimension_numbers<[1], [0], [0], [1], [0, 0, 1, 1], [], []>} : vector<4x32xbf16>, vector<32x32xbf16>, vector<4x32xf32> -> vector<4x32xf32>
    %602 = arith.addf %600, %601 : vector<4x32xf32>
    %603 = math.tanh %602 : vector<4x32xf32>
    %c7_298 = arith.constant 7 : index
    %c0_299 = arith.constant 0 : index
    %c0_300 = arith.constant 0 : index
    %604 = vector.load %arg10[%c7_298, %c0_299, %c0_300] : memref<8x4x32xf32, #tpu.memory_space<vmem>>, vector<1x4x32xf32>
    %605 = vector.shape_cast %604 : vector<1x4x32xf32> to vector<4x32xf32>
    %606 = vector.shape_cast %603 : vector<4x32xf32> to vector<1x4x32xf32>
    tpu.vector_store %arg10[%c7_298, %c0_299, %c0_300], %606 {strides = array<i32>} : memref<8x4x32xf32, #tpu.memory_space<vmem>>, vector<1x4x32xf32>,
    %607 = vector.shape_cast %595 : vector<4x1x6xf32> to vector<4x6xf32>
    %c7_301 = arith.constant 7 : index
    %c0_302 = arith.constant 0 : index
    %c0_303 = arith.constant 0 : index
    %608 = vector.load %arg11[%c7_301, %c0_302, %c0_303] : memref<8x4x6xf32, #tpu.memory_space<vmem>>, vector<1x4x6xf32>
    %609 = vector.shape_cast %608 : vector<1x4x6xf32> to vector<4x6xf32>
    %610 = vector.shape_cast %607 : vector<4x6xf32> to vector<1x4x6xf32>
    tpu.vector_store %arg11[%c7_301, %c0_302, %c0_303], %610 {strides = array<i32>} : memref<8x4x6xf32, #tpu.memory_space<vmem>>, vector<1x4x6xf32>,
    %c0_304 = arith.constant 0 : index
    %c0_305 = arith.constant 0 : index
    %611 = vector.load %arg13[%c0_304, %c0_305] : memref<4x32xf32, #tpu.memory_space<vmem>>, vector<4x32xf32>
    tpu.vector_store %arg13[%c0_304, %c0_305], %580 {strides = array<i32>} : memref<4x32xf32, #tpu.memory_space<vmem>>, vector<4x32xf32>,
    %c0_306 = arith.constant 0 : index
    %c0_307 = arith.constant 0 : index
    %612 = vector.load %arg14[%c0_306, %c0_307] : memref<4x32xf32, #tpu.memory_space<vmem>>, vector<4x32xf32>
    tpu.vector_store %arg14[%c0_306, %c0_307], %603 {strides = array<i32>} : memref<4x32xf32, #tpu.memory_space<vmem>>, vector<4x32xf32>,
    %c0_i32_308 = arith.constant 0 : i32
    %613 = arith.cmpi eq, %arg0, %c0_i32_308 : i32
    %614 = arith.extui %613 : i1 to i32
    %c0_i32_309 = arith.constant 0 : i32
    %615 = arith.cmpi ne, %614, %c0_i32_309 : i32
    scf.if %615 {
      %c0_310 = arith.constant 0 : index
      %c0_311 = arith.constant 0 : index
      %c0_312 = arith.constant 0 : index
      %616 = vector.load %arg12[%c0_310, %c0_311, %c0_312] : memref<1x4x32xf32, #tpu.memory_space<vmem>>, vector<1x4x32xf32>
      %617 = vector.shape_cast %616 : vector<1x4x32xf32> to vector<4x32xf32>
      %618 = vector.shape_cast %580 : vector<4x32xf32> to vector<1x4x32xf32>
      tpu.vector_store %arg12[%c0_310, %c0_311, %c0_312], %618 {strides = array<i32>} : memref<1x4x32xf32, #tpu.memory_space<vmem>>, vector<1x4x32xf32>,
    } else {
    }
    return
  }
  func.func @transform_0(%arg0: i32) -> (i32, i32, i32, i32) {
    %c0_i32 = arith.constant 0 : i32
    %c0_i32_0 = arith.constant 0 : i32
    %c0_i32_1 = arith.constant 0 : i32
    %c0_i32_2 = arith.constant 0 : i32
    return %c0_i32, %arg0, %c0_i32_0, %c0_i32_1 : i32, i32, i32, i32
  }
  func.func @transform_1(%arg0: i32) -> (i32, i32, i32) {
    %c0_i32 = arith.constant 0 : i32
    %c0_i32_0 = arith.constant 0 : i32
    %c0_i32_1 = arith.constant 0 : i32
    %c0_i32_2 = arith.constant 0 : i32
    return %c0_i32, %c0_i32_0, %c0_i32_1 : i32, i32, i32
  }
  func.func @transform_2(%arg0: i32) -> (i32, i32) {
    %c0_i32 = arith.constant 0 : i32
    %c0_i32_0 = arith.constant 0 : i32
    %c0_i32_1 = arith.constant 0 : i32
    return %c0_i32, %c0_i32_0 : i32, i32
  }
  func.func @transform_3(%arg0: i32) -> (i32, i32, i32) {
    %c0_i32 = arith.constant 0 : i32
    %c0_i32_0 = arith.constant 0 : i32
    %c0_i32_1 = arith.constant 0 : i32
    %c0_i32_2 = arith.constant 0 : i32
    return %c0_i32, %c0_i32_0, %c0_i32_1 : i32, i32, i32
  }
  func.func @transform_4(%arg0: i32) -> (i32, i32, i32) {
    %c0_i32 = arith.constant 0 : i32
    %c0_i32_0 = arith.constant 0 : i32
    %c0_i32_1 = arith.constant 0 : i32
    %c0_i32_2 = arith.constant 0 : i32
    return %c0_i32, %c0_i32_0, %c0_i32_1 : i32, i32, i32
  }
  func.func @transform_5(%arg0: i32) -> (i32, i32, i32) {
    %c0_i32 = arith.constant 0 : i32
    %c0_i32_0 = arith.constant 0 : i32
    %c0_i32_1 = arith.constant 0 : i32
    %c0_i32_2 = arith.constant 0 : i32
    return %c0_i32, %c0_i32_0, %c0_i32_1 : i32, i32, i32
  }
  func.func @transform_6(%arg0: i32) -> (i32, i32) {
    %c0_i32 = arith.constant 0 : i32
    %c0_i32_0 = arith.constant 0 : i32
    %c0_i32_1 = arith.constant 0 : i32
    return %c0_i32, %c0_i32_0 : i32, i32
  }
  func.func @transform_7(%arg0: i32) -> (i32, i32) {
    %c0_i32 = arith.constant 0 : i32
    %c0_i32_0 = arith.constant 0 : i32
    %c0_i32_1 = arith.constant 0 : i32
    return %c0_i32, %c0_i32_0 : i32, i32
  }
  func.func @transform_8(%arg0: i32) -> (i32, i32) {
    %c0_i32 = arith.constant 0 : i32
    %c0_i32_0 = arith.constant 0 : i32
    %c0_i32_1 = arith.constant 0 : i32
    return %c0_i32, %c0_i32_0 : i32, i32
  }
  func.func @transform_9(%arg0: i32) -> (i32, i32, i32) {
    %c0_i32 = arith.constant 0 : i32
    %c0_i32_0 = arith.constant 0 : i32
    %c0_i32_1 = arith.constant 0 : i32
    return %arg0, %c0_i32, %c0_i32_0 : i32, i32, i32
  }
  func.func @transform_10(%arg0: i32) -> (i32, i32, i32) {
    %c0_i32 = arith.constant 0 : i32
    %c0_i32_0 = arith.constant 0 : i32
    %c0_i32_1 = arith.constant 0 : i32
    return %arg0, %c0_i32, %c0_i32_0 : i32, i32, i32
  }
  func.func @transform_11(%arg0: i32) -> (i32, i32, i32) {
    %c0_i32 = arith.constant 0 : i32
    %c0_i32_0 = arith.constant 0 : i32
    %c0_i32_1 = arith.constant 0 : i32
    %c0_i32_2 = arith.constant 0 : i32
    return %c0_i32, %c0_i32_0, %c0_i32_1 : i32, i32, i32
  }
}

</mosaic_0001>

<bundles_post_ra>
// kernel: tpu_custom_call.1
= control target key start
LH: loop header
LB: loop body
LE: loop exit
PB: predicated region body
PF: predicated region fallthrough
CT: control target
= control target key end

     0   :  { %17 = vsyncpa [#allocation5], 0  ;;  %s5428_s0 = inlined_call_operand.hbm [shape: f32[3,8,4,32], index: 0, kind: input, shape index: {}]   ;;  %s5429_s1 = inlined_call_operand.vmem [shape: bf16[4,6,32], index: 1, kind: input, shape index: {}]   ;;  %s5430_s2 = inlined_call_operand.hbm [shape: f32[4,32], index: 2, kind: input, shape index: {}]   ;;  %s5431_s3 = inlined_call_operand.hbm [shape: bf16[3,32,32], index: 3, kind: input, shape index: {}]   ;;  %s5432_s4 = inlined_call_operand.hbm [shape: bf16[3,32,32], index: 4, kind: input, shape index: {}]   ;;  %s5433_s5 = inlined_call_operand.hbm [shape: f32[3,1,32], index: 5, kind: input, shape index: {}]   ;;  %s5434_s6 = inlined_call_operand.vmem [shape: bf16[32,32], index: 6, kind: input, shape index: {}]   ;;  %s5435_s7 = inlined_call_operand.vmem [shape: bf16[32,32], index: 7, kind: input, shape index: {}]   ;;  %s5436_s8 = inlined_call_operand.hbm [shape: bf16[32,32], index: 8, kind: input, shape index: {}]   ;;  %s5437_s9 = inlined_call_operand.hbm [shape: f32[8,4,32], index: 9, kind: output, shape index: {0}]   ;;  %s5438_s10 = inlined_call_operand.vmem [shape: f32[8,4,6], index: 10, kind: output, shape index: {1}]   ;;  %s5439_s11 = inlined_call_operand.hbm [shape: f32[1,4,32], index: 11, kind: output, shape index: {2}]  }
   0x1   :  { %18 = vsyncpa [#allocation8], 0 }
   0x2   :  { %19 = vsyncpa [#allocation11], 0 }
   0x3   :  { %20 = vsyncpa [#allocation14], 0 }
   0x4   :  { %21 = vsyncpa [#allocation6], 0  ;;  %s43_s19 = sshll.u32 %s5430_s2, 4  ;;  %s44_s19 = int_to_ptr.hbm [resolvable:$true] %s43_s19 }
   0x5   :  { %22 = vsyncpa [#allocation17], 0  ;;  %s4472_s20 = smov [#allocation7]   ;;  %s66_s24 = sshll.u32 %s5432_s4, 4  ;;  %s67_s24 = int_to_ptr.hbm [resolvable:$true] %s66_s24 }
   0x6   :  { %s45_s21 = sshll.u32 %s4472_s20, 4  ;;  %s4473_s25 = smov [#allocation10]   ;;  %s46_s21 = int_to_ptr.vmem [resolvable:$true] %s45_s21 }
   0x7   :  { %48 = dma.hbm_to_vmem [thread:$0]  %s44_s19, 64, %s46_s21, [#allocation8]  }
   0x8   :  { %s68_s26 = sshll.u32 %s4473_s25, 4  ;;  %s27_s29 = sshll.u32 %s5428_s0, 4  ;;  %s69_s26 = int_to_ptr.vmem [resolvable:$true] %s68_s26  ;;  %s28_s29 = int_to_ptr.hbm [resolvable:$true] %s27_s29 }
   0x9   :  { %s4474_s2 = smov 64   ;;  %s4475_s30 = smov 4  }
   0xa   :  { %74 = dma.hbm_to_vmem [thread:$0]  %s67_s24, 768, %s69_s26, [#allocation11], %s4474_s2, %s4474_s2, %s4475_s30  }
   0xb   :  { %s53_s14 = sshll.u32 %s5431_s3, 4  ;;  %s4476_s4 = smov [#allocation4]   ;;  %s54_s14 = int_to_ptr.hbm [resolvable:$true] %s53_s14 }
   0xc   :  { %s29_s15 = sshll.u32 %s4476_s4, 4  ;;  %s4477_s0 = smov [#allocation9]   ;;  %s30_s15 = int_to_ptr.vmem [resolvable:$true] %s29_s15 }
   0xd   :  { %35 = dma.hbm_to_vmem [thread:$0]  %s28_s29, 1536, %s30_s15, [#allocation5], %s4474_s2, %s4474_s2, %s4475_s30  }
   0xe   :  { %s55_s16 = sshll.u32 %s4477_s0, 4  ;;  %s79_s19 = sshll.u32 %s5433_s5, 4  ;;  %s56_s16 = int_to_ptr.vmem [resolvable:$true] %s55_s16  ;;  %s80_s19 = int_to_ptr.hbm [resolvable:$true] %s79_s19 }
   0xf   :  { %61 = dma.hbm_to_vmem [thread:$0]  %s54_s14, 768, %s56_s16, [#allocation8], %s4474_s2, %s4474_s2, %s4475_s30  }
  0x10   :  { %s4478_s3 = smov [#allocation12]   ;;  %s96_s23 = sshll.u32 %s5436_s8, 4  ;;  %s97_s23 = int_to_ptr.hbm [resolvable:$true] %s96_s23 }
  0x11   :  { %s81_s20 = sshll.u32 %s4478_s3, 4  ;;  %s4479_s24 = smov 16   ;;  %s82_s20 = int_to_ptr.vmem [resolvable:$true] %s81_s20 }
  0x12   :  { %s4480_s25 = smov 1   ;;  %s4481_s26 = smov [#allocation13]  }
  0x13   :  { %87 = dma.hbm_to_vmem [thread:$0]  %s80_s19, 48, %s82_s20, [#allocation11], %s4479_s24, %s4479_s24, %s4480_s25  }
  0x14   :  { %s98_s27 = sshll.u32 %s4481_s26, 4  ;;  %s99_s27 = int_to_ptr.vmem [resolvable:$true] %s98_s27 }
  0x15   :  { %104 = dma.hbm_to_vmem [thread:$0]  %s97_s23, 256, %s99_s27, [#allocation14], %s4474_s2, %s4474_s2, %s4475_s30  }
  0x16   :  { %4460 = dma.done.wait [#allocation5], 1536  }
  0x17   :  { %4461 = vsyncadd [#allocation5], 4294965760 }
  0x18   :  { %4462 = dma.done.wait [#allocation8], 832  }
  0x19   :  { %4463 = vsyncadd [#allocation8], 4294966464 }
  0x1a   :  { %4464 = dma.done.wait [#allocation11], 816  }
  0x1b   :  { %4465 = vsyncadd [#allocation11], 4294966480 }
  0x1c   :  { %4466 = dma.done.wait [#allocation14], 256  }
  0x1d   :  { %4467 = vsyncadd [#allocation14], 4294967040  ;;  %vm135_vm0 = vcmask 257024   ;;  %v4482_v0 = vmov 0.0   ;;  %v4576_v1 = vld [vmem:[#allocation9 + $0x8] sm:$0xff]  ;;  %v4578_v2 = vld [vmem:[#allocation10 + $0x8] sm:$0xff] }
  0x1e   :  { %137 = vst.msk [vmem:[#allocation3] sm:$0xf] %vm135_vm0, %v4482_v0  ;;  %v4580_v3 = vld [vmem:[#allocation9] sm:$0xff]  ;;  %v4582_v4 = vld [vmem:[#allocation10] sm:$0xff]  ;;  %214 = vmatpush.bf16.msra.mxu0 %v4576_v1  ;;  %302 = vmatpush.bf16.msra.mxu3 %v4578_v2  ;;  %v4586_v6 = vld [vmem:[#allocation9 + $0x18] sm:$0xff]  ;;  %vm204_vm1 = vcmask 261120  }
  0x1f   :  { %v134_v7 = vld [vmem:[#allocation7] sm:$0xf]  ;;  %v4588_v8 = vld [vmem:[#allocation10 + $0x18] sm:$0xff]  ;;  %242 = vmatpush.bf16.msra.mxu1 %v4586_v6  ;;  %v4594_v10 = vld [vmem:[#allocation9 + $0x10] sm:$0xff]  ;;  %vm444_vm10 = vcmask 1040384   ;;  %vm449_vm11 = vcmask 1041409  }
  0x20   :  { %136 = vst.msk [vmem:[#allocation2] sm:$0xf] %vm135_vm0, %v134_v7  ;;  %v4591_v9 = vld [vmem:[#allocation9 + $0x28] sm:$0xff]  ;;  %v4596_v11 = vld [vmem:[#allocation10 + $0x28] sm:$0xff]  ;;  %v4601_v13 = vld [vmem:[#allocation9 + $0x20] sm:$0xff]  ;;  %vm541_vm12 = vcmask 40960  }
  0x21   :  { %270 = vmatpush.bf16.msra.mxu2 %v4591_v9  ;;  %v4604_v14 = vld [vmem:[#allocation10 + $0x10] sm:$0xff]  ;;  %v4612_v16 = vld [vmem:[#allocation10 + $0x20] sm:$0xff]  ;;  %v191_v21 = vld [vmem:[#allocation4] sm:$0xf]  ;;  %vm594_vm13 = vcmask 1042432   ;;  %vm590_vm14 = vcmask 48128  }
  0x22   :  { %215 = vmatpush.bf16.msra.mxu0 %v4580_v3  ;;  %303 = vmatpush.bf16.msra.mxu3 %v4582_v4  ;;  %v4623_v20 = vld [vmem:[#allocation12] ss:$0 sm:$0xff]  ;;  %v223_v28 = vld [vmem:[#allocation4 + $0x20] sm:$0xf]  ;;  %v4626_v30 = vld [vmem:[#allocation12 + $0x1] ss:$0 sm:$0xff] }
  0x23   :  { %243 = vmatpush.bf16.msra.mxu1 %v4594_v10  ;;  %v4632_v39 = vld [vmem:[%s5434_s6 + $0x8] sm:$0xff]  ;;  %v4638_v42 = vld [vmem:[%s5434_s6] sm:$0xff]  ;;  %vm704_vm15 = vcmask 1042434   ;;  %s3701_s8 = sshll.u32 %s5439_s11, 4  ;;  %s4484_s28 = smov [#allocation15]   ;;  %s3702_s8 = int_to_ptr.hbm [resolvable:$true] %s3701_s8 }
  0x24   :  { %v4644_v46 = vld [vmem:[%s5429_s1] sm:$0x7]  ;;  %v4651_v52 = vld [vmem:[#allocation12 + $0x2] ss:$0 sm:$0xff]  ;;  %v251_v58 = vld [vmem:[#allocation4 + $0x40] sm:$0xf] }
  0x25   :  { %v188_v5 = vld [vmem:[#allocation3] sm:$0xf]  ;;  %271 = vmatpush.bf16.msra.mxu2 %v4601_v13  ;;  %v4648_v48 = vsel %vm204_vm1, %v4644_v46, 0  ;;  %s3683_s29 = sshll.u32 %s4484_s28, 4  ;;  %s3685_s14 = sshll.u32 %s5437_s9, 4  ;;  %s3684_s29 = int_to_ptr.vmem [resolvable:$true] %s3683_s29  ;;  %s3686_s14 = int_to_ptr.hbm [resolvable:$true] %s3685_s14 }
  0x26   :  { %v189_v12 = vpack.c.bf16 %v188_v5, %v188_v5  ;;  %330 = vmatpush.bf16.msrb.mxu0 %v4588_v8  ;;  %472 = vmatpush.bf16.xpose.msrb.mxu3 %v4648_v48 }
  0x27   :  { %358 = vmatpush.bf16.msrb.mxu1 %v4596_v11  ;;  %v4609_v15 = vld [vmem:[#allocation2] sm:$0xf] }
  0x28   :  { %3729 = vmatmul.msk.bf16.vlgmr.msra.gmra.mxu0 %vm204_vm1, %v189_v12  ;;  %v190_v17 = vpack.c.bf16 %v4609_v15, %v4609_v15  ;;  %3738 = vmatmul.msk.bf16.vlgmr.msra.gmra.mxu1 %vm204_vm1, %v189_v12 }
  0x29   :  { %3747 = vmatmul.msk.bf16.vlgmr.msra.gmra.mxu2 %vm204_vm1, %v189_v12 }
  0x2a   :  { %331 = vmatpush.bf16.msrb.mxu0 %v4604_v14  ;;  %3756 = vmatmul.msk.bf16.vlgmr.msra.gmra.mxu3 %vm204_vm1, %v190_v17 }
  0x2b   :  { %359 = vmatpush.bf16.msrb.mxu1 %v4612_v16  ;;  %434 = vmatpush.bf16.msrb.mxu2 %v4632_v39 }
  0x2f   :  { %435 = vmatpush.bf16.msrb.mxu2 %v4638_v42 }
  0x38   :  { %3765 = vmatmul.msk.bf16.vlgmr.msrb.gmra.mxu0 %vm204_vm1, %v190_v17  ;;  %3774 = vmatmul.msk.bf16.vlgmr.msrb.gmra.mxu1 %vm204_vm1, %v190_v17 }
  0xa5   :  { %v217_v18 = vpop.f32.mrf.mxu0  ;;  %v245_v19 = vpop.f32.mrf.mxu1 }
  0xa6   :  { %v221_v25 = vadd.f32 %v217_v18, %v191_v21  ;;  %v249_v32 = vadd.f32 %v245_v19, %v223_v28 }
  0xac   :  { %v273_v27 = vpop.f32.mrf.mxu2 }
  0xad   :  { %v219_v22 = vpop.f32.mrf.mxu0  ;;  %v305_v23 = vpop.f32.mrf.mxu3  ;;  %v277_v5 = vadd.f32 %v273_v27, %v251_v58 }
  0xae   :  { %v247_v24 = vpop.f32.mrf.mxu1  ;;  %v306_v26 = vadd.f32 %v4623_v20, %v305_v23 }
  0xb0   :  { %v365_v29 = vadd.f32 %v306_v26, %v221_v25 }
  0xb2   :  { %v3775_v31 = vmul.f32 -1.442695, %v365_v29 }
  0xb4   :  { %4002 = vpow2.f32 %v3775_v31  ;;  %v275_v38 = vpop.f32.mrf.mxu2 }
  0xb5   :  { %v333_v33 = vpop.f32.mrf.mxu0  ;;  %v307_v35 = vpop.f32.mrf.mxu3 }
  0xb6   :  { %v334_v34 = vadd.f32 %v4626_v30, %v333_v33  ;;  %v361_v36 = vpop.f32.mrf.mxu1  ;;  %v4666_v33 = vld [vmem:[%s5429_s1 + $0x4] sm:$0x7] }
  0xb7   :  { %v362_v60 = vadd.f32 %v4651_v52, %v361_v36  ;;  %v4684_v36 = vld [vmem:[%s5429_s1 + $0xc] sm:$0x7] }
  0xb8   :  { %v385_v37 = vadd.f32 %v334_v34, %v249_v32  ;;  %v4671_v34 = vld [vmem:[%s5429_s1 + $0x8] sm:$0x7] }
  0xb9   :  { %v4679_v35 = vsel %vm204_vm1, %v4671_v34, 0 }
  0xba   :  { %v3776_v40 = vmul.f32 -1.442695, %v385_v37  ;;  %v4003_v41 = vpop.eup %4002  ;;  %514 = vmatpush.bf16.xpose.msra.mxu1 %v4679_v35  ;;  %v4690_v37 = vsel %vm204_vm1, %v4684_v36, 0 }
  0xbb   :  { %v369_v43 = vadd.f32 1.0, %v4003_v41  ;;  %535 = vmatpush.bf16.xpose.msra.mxu2 %v4690_v37 }
  0xbc   :  { %4004 = vpow2.f32 %v3776_v40 }
  0xbd   :  { %v335_v44 = vpop.f32.mrf.mxu0  ;;  %4006 = vrcp.f32 %v369_v43  ;;  %v381_v54 = vand.u32 2147483648, %v369_v43  ;;  %v379_v56 = vand.u32 2147483647, %v369_v43  ;;  %vm375_vm3 = vweird.f32 %v369_v43 }
  0xbe   :  { %v363_v45 = vpop.f32.mrf.mxu1 }
  0xbf   :  { %v382_v62 = vor.u32 1.1754944e-38, %v381_v54  ;;  %vm380_vm5 = vcmp.eq.f32.partialorder %v379_v56, 8.507059e+37 }
  0xc2   :  { %v4005_v47 = vpop.eup %4004 }
  0xc3   :  { %v389_v49 = vadd.f32 1.0, %v4005_v47  ;;  %v4007_v50 = vpop.eup %4006 }
  0xc4   :  { %v371_v51 = vmul.f32 %v4007_v50, %v369_v43  ;;  %vm376_vm2 = vweird.f32 %v4007_v50 }
  0xc5   :  { %4008 = vrcp.f32 %v389_v49  ;;  %vm377_vm4 = vmor %vm375_vm3, %vm376_vm2  ;;  %v401_v7 = vand.u32 2147483648, %v389_v49  ;;  %v399_v19 = vand.u32 2147483647, %v389_v49  ;;  %vm395_vm7 = vweird.f32 %v389_v49 }
  0xc6   :  { %v372_v53 = vsub.f32 1.0, %v371_v51  ;;  %vm707_vm2 = vcmask 1043459   ;;  %vm752_vm3 = vcmask 44032  }
  0xc7   :  { %v402_v23 = vor.u32 1.1754944e-38, %v401_v7  ;;  %vm400_vm9 = vcmp.eq.f32.partialorder %v399_v19, 8.507059e+37 }
  0xc8   :  { %v373_v55 = vmul.f32 %v4007_v50, %v372_v53 }
  0xca   :  { %v374_v61 = vadd.f32 %v4007_v50, %v373_v55 }
  0xcb   :  { %v4009_v57 = vpop.eup %4008 }
  0xcc   :  { %v391_v59 = vmul.f32 %v4009_v57, %v389_v49  ;;  %v378_v0 = vsel %vm377_vm4, %v4007_v50, %v374_v61  ;;  %vm396_vm6 = vweird.f32 %v4009_v57 }
  0xcd   :  { %v383_v12 = vsel %vm380_vm5, %v382_v62, %v378_v0  ;;  %vm397_vm8 = vmor %vm395_vm7, %vm396_vm6 }
  0xce   :  { %v392_v63 = vsub.f32 1.0, %v391_v59  ;;  %v405_v18 = vmul.f32 %v383_v12, %v362_v60 }
  0xd0   :  { %v393_v17 = vmul.f32 %v4009_v57, %v392_v63  ;;  %v406_v22 = vadd.f32 %v405_v18, %v277_v5 }
  0xd2   :  { %v394_v21 = vadd.f32 %v4009_v57, %v393_v17  ;;  %4010 = vtanh.f32 %v406_v22 }
  0xd4   :  { %v398_v24 = vsel %vm397_vm8, %v4009_v57, %v394_v21 }
  0xd5   :  { %v403_v25 = vsel %vm400_vm9, %v402_v23, %v398_v24 }
  0xd6   :  { %v408_v26 = vsub.f32 1.0, %v403_v25  ;;  %v410_v27 = vmul.f32 %v403_v25, %v4609_v15  ;;  %v4675_v15 = vsel %vm204_vm1, %v4666_v33, 0 }
  0xd7   :  { %493 = vmatpush.bf16.xpose.msra.mxu0 %v4675_v15 }
  0xd8   :  { %v4011_v28 = vpop.eup %4010 }
  0xd9   :  { %v409_v29 = vmul.f32 %v4011_v28, %v408_v26 }
  0xdb   :  { %v4655_v31 = vadd.f32 %v410_v27, %v409_v29 }
  0xdd   :  { %v4659_v32 = vpack.c.bf16 %v4655_v31, %v4655_v31 }
  0xdf   :  { %3785 = vmatmul.msk.bf16.vlgmr.msrb.gmra.mxu2 %vm204_vm1, %v4659_v32 }
 0x162   :  { %v437_v38 = vpop.f32.mrf.mxu2 }
 0x163   :  { %v441_v40 = vpack.c.bf16 %v437_v38, %v437_v38 }
 0x165   :  { %v443_v41 = vrot.slane %v441_v40, 3 }
 0x167   :  { %v447_v43 = vsel %vm444_vm10, %v441_v40, %v443_v41  ;;  %v450_v44 = vsel %vm449_vm11, %v441_v40, %v443_v41 }
 0x168   :  { %v452_v45 = vrot.slane %v450_v44, 1  ;;  %v454_v47 = vunpack.i.h.s16 %v447_v43  ;;  %v3786_v49 = vpack.i.b16 %v447_v43, %v447_v43 }
 0x16a   :  { %v456_v50 = vunpack.i.h.s16 %v452_v45  ;;  %v458_v51 = vperm.slane %v3786_v49, 0  ;;  %v478_v53 = vpack.i.b16 %v454_v47, %v454_v47  ;;  %v3789_v54 = vpack.i.b16 %v452_v45, %v452_v45  ;;  %v439_v55 = vpop.f32.mrf.mxu2 }
 0x16b   :  { %v4708_v55 = vsel %vm594_vm13, %v4666_v33, 0  ;;  %v4730_v33 = vld [vmem:[#allocation13] sm:$0xff] }
 0x16c   :  { %v479_v56 = vperm.slane %v478_v53, 0  ;;  %v500_v57 = vperm.slane %v3789_v54, 0  ;;  %v520_v58 = vpack.i.b16 %v456_v50, %v456_v50  ;;  %3787 = vmatmul.msk.bf16.vlgmr.msrb.gmra.mxu3 %vm204_vm1, %v458_v51  ;;  %622 = vmatpush.bf16.msrb.mxu0 %v4708_v55 }
 0x16e   :  { %v521_v59 = vperm.slane %v520_v58, 0  ;;  %3788 = vmatmul.msk.bf16.vlgmr.msra.gmra.mxu0 %vm204_vm1, %v479_v56  ;;  %3790 = vmatmul.msk.bf16.vlgmr.msra.gmra.mxu1 %vm204_vm1, %v500_v57  ;;  %v4712_v56 = vsel %vm594_vm13, %v4644_v46, 0  ;;  %v4716_v57 = vsel %vm594_vm13, %v4684_v36, 0  ;;  %v4721_v58 = vsel %vm594_vm13, %v4671_v34, 0  ;;  %v4727_v46 = vld [vmem:[#allocation13 + $0x8] sm:$0xff] }
 0x16f   :  { %604 = vmatpush.bf16.msra.mxu3 %v4712_v56  ;;  %658 = vmatpush.bf16.msrb.mxu2 %v4716_v57 }
 0x170   :  { %3791 = vmatmul.msk.bf16.vlgmr.msra.gmra.mxu2 %vm204_vm1, %v521_v59  ;;  %640 = vmatpush.bf16.msrb.mxu1 %v4721_v58 }
 0x173   :  { %782 = vmatpush.bf16.msra.mxu2 %v4586_v6  ;;  %686 = vmatpush.bf16.msrb.mxu3 %v4727_v46 }
 0x174   :  { %766 = vmatpush.bf16.msra.mxu1 %v4576_v1 }
 0x177   :  { %783 = vmatpush.bf16.msra.mxu2 %v4594_v10  ;;  %687 = vmatpush.bf16.msrb.mxu3 %v4730_v33 }
 0x178   :  { %767 = vmatpush.bf16.msra.mxu1 %v4580_v3 }
 0x1eb   :  { %v495_v60 = vpop.f32.mrf.mxu0  ;;  %v516_v61 = vpop.f32.mrf.mxu1 }
 0x1ec   :  { %v545_v62 = vsel %vm541_vm12, %v495_v60, -inf  ;;  %v548_v17 = vsel %vm541_vm12, %v516_v61, -inf }
 0x1ed   :  { %546 = vmax.xlane.f32.xlu1 %v545_v62 }
 0x1ef   :  { %v474_v63 = vpop.f32.mrf.mxu3 }
 0x1f0   :  { %v542_v0 = vsel %vm541_vm12, %v474_v63, -inf }
 0x1f1   :  { %543 = vmax.xlane.f32.xlu0 %v542_v0 }
 0x1f3   :  { %v497_v5 = vpop.f32.mrf.mxu0  ;;  %v518_v7 = vpop.f32.mrf.mxu1 }
 0x1f4   :  { %v537_v12 = vpop.f32.mrf.mxu2 }
 0x1f5   :  { %549 = vmax.xlane.f32.xlu1 %v548_v17  ;;  %v551_v19 = vsel %vm541_vm12, %v537_v12, -inf }
 0x1f7   :  { %v476_v18 = vpop.f32.mrf.mxu3 }
 0x1f9   :  { %552 = vmax.xlane.f32.xlu0 %v551_v19 }
 0x1fc   :  { %v539_v21 = vpop.f32.mrf.mxu2 }
 0x260   :  { %v547_v22 = vpop.xlane.xlu1 %546 }
 0x261   :  { %v555_v23 = vsub.f32 %v495_v60, %v547_v22 }
 0x263   :  { %v560_v24 = vmul.f32 1.442695, %v555_v23 }
 0x264   :  { %v544_v25 = vpop.xlane.xlu0 %543 }
 0x265   :  { %4012 = vpow2.f32 %v560_v24  ;;  %v554_v26 = vsub.f32 %v474_v63, %v544_v25 }
 0x267   :  { %v558_v28 = vmul.f32 1.442695, %v554_v26 }
 0x268   :  { %v550_v29 = vpop.xlane.xlu1 %549 }
 0x269   :  { %4014 = vpow2.f32 %v558_v28  ;;  %v556_v27 = vsub.f32 %v516_v61, %v550_v29 }
 0x26b   :  { %v4013_v38 = vpop.eup %4012  ;;  %v562_v40 = vmul.f32 1.442695, %v556_v27  ;;  %v4757_v27 = vld [vmem:[%s5435_s7 + $0x8] sm:$0xff] }
 0x26c   :  { %v553_v41 = vpop.xlane.xlu0 %552  ;;  %v569_v43 = vsel %vm541_vm12, %v4013_v38, 0.0  ;;  %731 = vmatpush.bf16.msra.mxu0 %v4757_v27 }
 0x26d   :  { %4016 = vpow2.f32 %v562_v40  ;;  %v557_v44 = vsub.f32 %v537_v12, %v553_v41  ;;  %570 = vadd.xlane.f32.xlu0 %v569_v43 }
 0x26f   :  { %v4015_v45 = vpop.eup %4014  ;;  %v564_v47 = vmul.f32 1.442695, %v557_v44 }
 0x270   :  { %v566_v49 = vsel %vm541_vm12, %v4015_v45, 0.0 }
 0x271   :  { %4018 = vpow2.f32 %v564_v47  ;;  %567 = vadd.xlane.f32.xlu2 %v566_v49 }
 0x273   :  { %v4017_v50 = vpop.eup %4016 }
 0x274   :  { %v572_v51 = vsel %vm541_vm12, %v4017_v50, 0.0 }
 0x275   :  { %573 = vadd.xlane.f32.xlu1 %v572_v51 }
 0x277   :  { %v4019_v53 = vpop.eup %4018 }
 0x278   :  { %v575_v54 = vsel %vm541_vm12, %v4019_v53, 0.0 }
 0x279   :  { %576 = vadd.xlane.f32.xlu2 %v575_v54 }
 0x2e0   :  { %v571_v36 = vpop.xlane.xlu0 %570 }
 0x2e1   :  { %4020 = vrcp.f32 %v571_v36 }
 0x2e4   :  { %v568_v34 = vpop.xlane.xlu2 %567 }
 0x2e5   :  { %4022 = vrcp.f32 %v568_v34 }
 0x2e7   :  { %v4021_v59 = vpop.eup %4020 }
 0x2e8   :  { %v583_v60 = vmul.f32 %v4021_v59, %v4013_v38  ;;  %v574_v61 = vpop.xlane.xlu1 %573  ;;  %v4763_v38 = vld [vmem:[%s5435_s7] sm:$0xff] }
 0x2e9   :  { %4024 = vrcp.f32 %v574_v61  ;;  %732 = vmatpush.bf16.msra.mxu0 %v4763_v38 }
 0x2ea   :  { %v587_v62 = vpack.c.bf16 %v583_v60, %v583_v60  ;;  %v745_v22 = vrot.slane %v583_v60, 7 }
 0x2eb   :  { %v4023_v63 = vpop.eup %4022 }
 0x2ec   :  { %v582_v0 = vmul.f32 %v4023_v63, %v4015_v45  ;;  %v577_v5 = vpop.xlane.xlu2 %576  ;;  %3793 = vmatmul.msk.bf16.vlgmr.msrb.gmra.mxu0 %vm590_vm14, %v587_v62 }
 0x2ed   :  { %4026 = vrcp.f32 %v577_v5  ;;  %812 = vmatpush.bf16.msrb.mxu0 %v4578_v2 }
 0x2ee   :  { %v586_v7 = vpack.c.bf16 %v582_v0, %v582_v0  ;;  %v746_v24 = vsel %vm449_vm11, %v745_v22, %v582_v0 }
 0x2ef   :  { %v4025_v12 = vpop.eup %4024 }
 0x2f0   :  { %v584_v17 = vmul.f32 %v4025_v12, %v4017_v50  ;;  %3792 = vmatmul.msk.bf16.vlgmr.msra.gmra.mxu3 %vm590_vm14, %v586_v7 }
 0x2f1   :  { %798 = vmatpush.bf16.msra.mxu3 %v4591_v9  ;;  %813 = vmatpush.bf16.msrb.mxu0 %v4582_v4 }
 0x2f2   :  { %v588_v18 = vpack.c.bf16 %v584_v17, %v584_v17  ;;  %v747_v21 = vrot.slane %v584_v17, 6 }
 0x2f3   :  { %v4027_v19 = vpop.eup %4026 }
 0x2f4   :  { %v585_v23 = vmul.f32 %v4027_v19, %v4019_v53  ;;  %3794 = vmatmul.msk.bf16.vlgmr.msrb.gmra.mxu1 %vm590_vm14, %v588_v18  ;;  %v748_v28 = vsel %vm704_vm15, %v747_v21, %v746_v24 }
 0x2f5   :  { %799 = vmatpush.bf16.msra.mxu3 %v4601_v13  ;;  %825 = vmatpush.bf16.msrb.mxu1 %v4588_v8 }
 0x2f6   :  { %v589_v25 = vpack.c.bf16 %v585_v23, %v585_v23  ;;  %v749_v26 = vrot.slane %v585_v23, 5 }
 0x2f8   :  { %v750_v29 = vsel %vm707_vm2, %v749_v26, %v748_v28  ;;  %3795 = vmatmul.msk.bf16.vlgmr.msrb.gmra.mxu2 %vm590_vm14, %v589_v25 }
 0x2f9   :  { %753 = vst.msk [vmem:[%s5438_s10] sm:$0xf] %vm752_vm3, %v750_v29  ;;  %826 = vmatpush.bf16.msrb.mxu1 %v4604_v14  ;;  %838 = vmatpush.bf16.msrb.mxu2 %v4596_v11  ;;  %v756_v29 = vld [vmem:[#allocation4 + $0x4] sm:$0xf] }
 0x2fd   :  { %839 = vmatpush.bf16.msrb.mxu2 %v4612_v16 }
 0x300   :  { %3804 = vmatmul.msk.bf16.vlgmr.msrb.gmra.mxu3 %vm204_vm1, %v4659_v32 }
 0x301   :  { %902 = vmatpush.bf16.msrb.mxu3 %v4632_v39 }
 0x305   :  { %903 = vmatpush.bf16.msrb.mxu3 %v4638_v42 }
 0x369   :  { %v624_v40 = vpop.f32.mrf.mxu0 }
 0x36a   :  { %v665_v45 = vpack.c.bf16 %v624_v40, %v624_v40 }
 0x36c   :  { %v698_v50 = vunpack.c.l.b16 %v665_v45 }
 0x36e   :  { %v701_v59 = vrot.slane %v698_v50, 7 }
 0x371   :  { %v626_v41 = vpop.f32.mrf.mxu0  ;;  %v642_v43 = vpop.f32.mrf.mxu1 }
 0x372   :  { %v666_v47 = vpack.c.bf16 %v642_v43, %v642_v43 }
 0x373   :  { %v606_v44 = vpop.f32.mrf.mxu3 }
 0x374   :  { %v664_v49 = vpack.c.bf16 %v606_v44, %v606_v44  ;;  %v699_v51 = vunpack.c.l.b16 %v666_v47 }
 0x376   :  { %v697_v54 = vunpack.c.l.b16 %v664_v49  ;;  %v703_v61 = vrot.slane %v699_v51, 6 }
 0x378   :  { %v702_v62 = vsel %vm449_vm11, %v701_v59, %v697_v54  ;;  %v775_v54 = vld [vmem:[#allocation4 + $0x24] sm:$0xf] }
 0x379   :  { %v644_v53 = vpop.f32.mrf.mxu1  ;;  %v705_v5 = vsel %vm704_vm15, %v703_v61, %v702_v62 }
 0x37b   :  { %v608_v36 = vpop.f32.mrf.mxu3  ;;  %v660_v34 = vpop.f32.mrf.mxu2 }
 0x37c   :  { %v667_v60 = vpack.c.bf16 %v660_v34, %v660_v34 }
 0x37e   :  { %v700_v63 = vunpack.c.l.b16 %v667_v60 }
 0x380   :  { %v706_v0 = vrot.slane %v700_v63, 5 }
 0x382   :  { %v708_v7 = vsel %vm707_vm2, %v706_v0, %v705_v5 }
 0x383   :  { %v709_v12 = vpack.c.b16 %v708_v7, %v708_v7  ;;  %v662_v17 = vpop.f32.mrf.mxu2  ;;  %v689_v18 = vpop.f32.mrf.mxu3 }
 0x385   :  { %3813 = vmatmul.msk.bf16.vlgmr.msra.gmra.mxu0 %vm204_vm1, %v709_v12 }
 0x386   :  { %935 = vmatpush.bf16.xpose.msra.mxu0 %v4648_v48 }
 0x38b   :  { %v691_v19 = vpop.f32.mrf.mxu3 }
 0x395   :  { %3817 = vmatmul.msk.bf16.vlgmr.msrb.gmra.mxu0 %vm204_vm1, %v4659_v32 }
 0x396   :  { %1053 = vmatpush.bf16.msrb.mxu0 %v4712_v56 }
 0x402   :  { %v734_v21 = vpop.f32.mrf.mxu0 }
 0x403   :  { %v735_v22 = vadd.f32 %v734_v21, %v689_v18 }
 0x405   :  { %4028 = vtanh.f32 %v735_v22 }
 0x40a   :  { %v736_v23 = vpop.f32.mrf.mxu0 }
 0x40b   :  { %v4029_v24 = vpop.eup %4028 }
 0x40c   :  { %740 = vst.msk [vmem:[#allocation15] sm:$0xf] %vm135_vm0, %v4029_v24  ;;  %v754_v25 = vpack.c.bf16 %v4029_v24, %v4029_v24 }
 0x40e   :  { %3814 = vmatmul.msk.bf16.vlgmr.msra.gmra.mxu1 %vm204_vm1, %v754_v25  ;;  %3815 = vmatmul.msk.bf16.vlgmr.msra.gmra.mxu2 %vm204_vm1, %v754_v25 }
 0x40f   :  { %3816 = vmatmul.msk.bf16.vlgmr.msra.gmra.mxu3 %vm204_vm1, %v754_v25  ;;  %971 = vmatpush.bf16.xpose.msra.mxu2 %v4679_v35 }
 0x410   :  { %989 = vmatpush.bf16.xpose.msra.mxu3 %v4690_v37  ;;  %953 = vmatpush.bf16.xpose.msra.mxu1 %v4675_v15 }
 0x412   :  { %v815_v26 = vpop.f32.mrf.mxu0 }
 0x413   :  { %v816_v41 = vadd.f32 %v4623_v20, %v815_v26 }
 0x41a   :  { %v817_v28 = vpop.f32.mrf.mxu0 }
 0x41e   :  { %3818 = vmatmul.msk.bf16.vlgmr.msrb.gmra.mxu1 %vm204_vm1, %v4659_v32  ;;  %3819 = vmatmul.msk.bf16.vlgmr.msrb.gmra.mxu2 %vm204_vm1, %v4659_v32 }
 0x41f   :  { %1085 = vmatpush.bf16.msrb.mxu2 %v4721_v58  ;;  %1069 = vmatpush.bf16.msrb.mxu1 %v4708_v55 }
 0x48b   :  { %v769_v40 = vpop.f32.mrf.mxu1 }
 0x48c   :  { %v773_v43 = vadd.f32 %v769_v40, %v756_v29  ;;  %v791_v29 = vld [vmem:[#allocation4 + $0x44] sm:$0xf] }
 0x48e   :  { %v845_v44 = vadd.f32 %v816_v41, %v773_v43 }
 0x490   :  { %v3820_v45 = vmul.f32 -1.442695, %v845_v44 }
 0x491   :  { %v785_v47 = vpop.f32.mrf.mxu2 }
 0x492   :  { %4030 = vpow2.f32 %v3820_v45  ;;  %v801_v49 = vpop.f32.mrf.mxu3  ;;  %v789_v59 = vadd.f32 %v785_v47, %v775_v54 }
 0x493   :  { %v771_v50 = vpop.f32.mrf.mxu1  ;;  %v805_v43 = vadd.f32 %v801_v49, %v791_v29 }
 0x498   :  { %v4031_v51 = vpop.eup %4030 }
 0x499   :  { %v849_v53 = vadd.f32 1.0, %v4031_v51  ;;  %v787_v36 = vpop.f32.mrf.mxu2 }
 0x49a   :  { %v803_v32 = vpop.f32.mrf.mxu3 }
 0x49b   :  { %4032 = vrcp.f32 %v849_v53  ;;  %v828_v34 = vpop.f32.mrf.mxu1  ;;  %v861_v18 = vand.u32 2147483648, %v849_v53  ;;  %v859_v19 = vand.u32 2147483647, %v849_v53  ;;  %vm855_vm5 = vweird.f32 %v849_v53 }
 0x49c   :  { %v829_v60 = vadd.f32 %v4626_v30, %v828_v34 }
 0x49d   :  { %v862_v30 = vor.u32 1.1754944e-38, %v861_v18  ;;  %vm860_vm7 = vcmp.eq.f32.partialorder %v859_v19, 8.507059e+37 }
 0x49e   :  { %v865_v61 = vadd.f32 %v829_v60, %v789_v59 }
 0x4a0   :  { %v3821_v62 = vmul.f32 -1.442695, %v865_v61 }
 0x4a1   :  { %v4033_v63 = vpop.eup %4032  ;;  %v841_v0 = vpop.f32.mrf.mxu2 }
 0x4a2   :  { %4034 = vpow2.f32 %v3821_v62  ;;  %v851_v5 = vmul.f32 %v4033_v63, %v849_v53  ;;  %vm856_vm4 = vweird.f32 %v4033_v63  ;;  %v842_v28 = vadd.f32 %v4651_v52, %v841_v0 }
 0x4a3   :  { %v830_v7 = vpop.f32.mrf.mxu1  ;;  %vm857_vm6 = vmor %vm855_vm5, %vm856_vm4 }
 0x4a4   :  { %v852_v12 = vsub.f32 1.0, %v851_v5 }
 0x4a6   :  { %v853_v17 = vmul.f32 %v4033_v63, %v852_v12 }
 0x4a8   :  { %v4035_v21 = vpop.eup %4034  ;;  %v854_v22 = vadd.f32 %v4033_v63, %v853_v17 }
 0x4a9   :  { %v869_v23 = vadd.f32 1.0, %v4035_v21  ;;  %v843_v24 = vpop.f32.mrf.mxu2 }
 0x4aa   :  { %v858_v25 = vsel %vm857_vm6, %v4033_v63, %v854_v22 }
 0x4ab   :  { %4036 = vrcp.f32 %v869_v23  ;;  %v863_v26 = vsel %vm860_vm7, %v862_v30, %v858_v25  ;;  %v881_v50 = vand.u32 2147483648, %v869_v23  ;;  %v879_v53 = vand.u32 2147483647, %v869_v23 }
 0x4ac   :  { %v885_v40 = vmul.f32 %v863_v26, %v842_v28  ;;  %vm875_vm9 = vweird.f32 %v869_v23 }
 0x4ad   :  { %v882_v36 = vor.u32 1.1754944e-38, %v881_v50  ;;  %vm880_vm4 = vcmp.eq.f32.partialorder %v879_v53, 8.507059e+37 }
 0x4ae   :  { %v886_v45 = vadd.f32 %v885_v40, %v805_v43 }
 0x4b0   :  { %4038 = vtanh.f32 %v886_v45 }
 0x4b1   :  { %v4037_v41 = vpop.eup %4036 }
 0x4b2   :  { %v871_v44 = vmul.f32 %v4037_v41, %v869_v23  ;;  %vm876_vm8 = vweird.f32 %v4037_v41 }
 0x4b3   :  { %vm877_vm13 = vmor %vm875_vm9, %vm876_vm8 }
 0x4b4   :  { %v872_v47 = vsub.f32 1.0, %v871_v44 }
 0x4b6   :  { %v873_v51 = vmul.f32 %v4037_v41, %v872_v47  ;;  %v4039_v60 = vpop.eup %4038 }
 0x4b8   :  { %v874_v54 = vadd.f32 %v4037_v41, %v873_v51 }
 0x4ba   :  { %v878_v32 = vsel %vm877_vm13, %v4037_v41, %v874_v54 }
 0x4bb   :  { %v883_v34 = vsel %vm880_vm4, %v882_v36, %v878_v32 }
 0x4bc   :  { %v888_v59 = vsub.f32 1.0, %v883_v34  ;;  %v890_v49 = vmul.f32 %v883_v34, %v4655_v31 }
 0x4be   :  { %v889_v61 = vmul.f32 %v4039_v60, %v888_v59 }
 0x4c0   :  { %v4793_v62 = vadd.f32 %v890_v49, %v889_v61 }
 0x4c2   :  { %v4797_v63 = vpack.c.bf16 %v4793_v62, %v4793_v62 }
 0x4c4   :  { %3822 = vmatmul.msk.bf16.vlgmr.msrb.gmra.mxu3 %vm204_vm1, %v4797_v63 }
 0x4c5   :  { %1101 = vmatpush.bf16.msrb.mxu3 %v4716_v57 }
 0x547   :  { %v905_v0 = vpop.f32.mrf.mxu3 }
 0x548   :  { %v909_v5 = vpack.c.bf16 %v905_v0, %v905_v0 }
 0x54a   :  { %v911_v7 = vrot.slane %v909_v5, 3 }
 0x54c   :  { %v914_v12 = vsel %vm444_vm10, %v909_v5, %v911_v7  ;;  %v916_v17 = vsel %vm449_vm11, %v909_v5, %v911_v7 }
 0x54d   :  { %v918_v18 = vrot.slane %v916_v17, 1  ;;  %v920_v31 = vunpack.i.h.s16 %v914_v12  ;;  %v3823_v19 = vpack.i.b16 %v914_v12, %v914_v12 }
 0x54f   :  { %v922_v21 = vunpack.i.h.s16 %v918_v18  ;;  %v924_v22 = vperm.slane %v3823_v19, 0  ;;  %v941_v23 = vpack.i.b16 %v920_v31, %v920_v31  ;;  %v3826_v24 = vpack.i.b16 %v918_v18, %v918_v18  ;;  %v907_v25 = vpop.f32.mrf.mxu3 }
 0x551   :  { %v942_v30 = vperm.slane %v941_v23, 0  ;;  %v960_v26 = vperm.slane %v3826_v24, 0  ;;  %v977_v28 = vpack.i.b16 %v922_v21, %v922_v21  ;;  %3824 = vmatmul.msk.bf16.vlgmr.msra.gmra.mxu0 %vm204_vm1, %v924_v22 }
 0x552   :  { %1117 = vmatpush.bf16.msra.mxu0 %v4727_v46 }
 0x553   :  { %v978_v29 = vperm.slane %v977_v28, 0  ;;  %3825 = vmatmul.msk.bf16.vlgmr.msra.gmra.mxu1 %vm204_vm1, %v942_v30  ;;  %3827 = vmatmul.msk.bf16.vlgmr.msra.gmra.mxu2 %vm204_vm1, %v960_v26 }
 0x554   :  { %1148 = vmatpush.bf16.msra.mxu1 %v4757_v27  ;;  %1183 = vmatpush.bf16.msra.mxu2 %v4576_v1 }
 0x555   :  { %3828 = vmatmul.msk.bf16.vlgmr.msra.gmra.mxu3 %vm204_vm1, %v978_v29 }
 0x556   :  { %1118 = vmatpush.bf16.msra.mxu0 %v4730_v33  ;;  %1199 = vmatpush.bf16.msra.mxu3 %v4586_v6 }
 0x558   :  { %1149 = vmatpush.bf16.msra.mxu1 %v4763_v38  ;;  %1184 = vmatpush.bf16.msra.mxu2 %v4580_v3 }
 0x55a   :  { %1200 = vmatpush.bf16.msra.mxu3 %v4594_v10 }
 0x5ce   :  { %v937_v40 = vpop.f32.mrf.mxu0 }
 0x5cf   :  { %v995_v3 = vsel %vm541_vm12, %v937_v40, -inf }
 0x5d0   :  { %v955_v41 = vpop.f32.mrf.mxu1 }
 0x5d1   :  { %v998_v43 = vsel %vm541_vm12, %v955_v41, -inf }
 0x5d2   :  { %999 = vmax.xlane.f32.xlu1 %v998_v43 }
 0x5d6   :  { %v939_v44 = vpop.f32.mrf.mxu0  ;;  %v973_v45 = vpop.f32.mrf.mxu2 }
 0x5d7   :  { %v1001_v1 = vsel %vm541_vm12, %v973_v45, -inf }
 0x5d8   :  { %1002 = vmax.xlane.f32.xlu2 %v1001_v1  ;;  %v957_v47 = vpop.f32.mrf.mxu1  ;;  %v991_v50 = vpop.f32.mrf.mxu3 }
 0x5d9   :  { %v1004_v6 = vsel %vm541_vm12, %v991_v50, -inf }
 0x5da   :  { %1005 = vmax.xlane.f32.xlu0 %v1004_v6 }
 0x5de   :  { %v975_v51 = vpop.f32.mrf.mxu2 }
 0x5e0   :  { %996 = vmax.xlane.f32.xlu2 %v995_v3  ;;  %v993_v10 = vpop.f32.mrf.mxu3 }
 0x645   :  { %v1000_v53 = vpop.xlane.xlu1 %999 }
 0x646   :  { %v1008_v54 = vsub.f32 %v955_v41, %v1000_v53 }
 0x648   :  { %v1013_v36 = vmul.f32 1.442695, %v1008_v54 }
 0x64a   :  { %4040 = vpow2.f32 %v1013_v36 }
 0x64b   :  { %v1003_v32 = vpop.xlane.xlu2 %1002 }
 0x64c   :  { %v1009_v34 = vsub.f32 %v973_v45, %v1003_v32 }
 0x64d   :  { %v1006_v59 = vpop.xlane.xlu0 %1005 }
 0x64e   :  { %v1015_v60 = vmul.f32 1.442695, %v1009_v34  ;;  %v1010_v61 = vsub.f32 %v991_v50, %v1006_v59 }
 0x650   :  { %v4041_v49 = vpop.eup %4040  ;;  %4042 = vpow2.f32 %v1015_v60  ;;  %v1017_v0 = vmul.f32 1.442695, %v1010_v61 }
 0x651   :  { %v1022_v5 = vsel %vm541_vm12, %v4041_v49, 0.0 }
 0x652   :  { %4044 = vpow2.f32 %v1017_v0  ;;  %1023 = vadd.xlane.f32.xlu2 %v1022_v5 }
 0x653   :  { %v997_v7 = vpop.xlane.xlu2 %996 }
 0x654   :  { %v1007_v12 = vsub.f32 %v937_v40, %v997_v7 }
 0x656   :  { %v4043_v17 = vpop.eup %4042  ;;  %v1011_v18 = vmul.f32 1.442695, %v1007_v12 }
 0x657   :  { %v1025_v31 = vsel %vm541_vm12, %v4043_v17, 0.0 }
 0x658   :  { %v4045_v19 = vpop.eup %4044  ;;  %4046 = vpow2.f32 %v1011_v18  ;;  %1026 = vadd.xlane.f32.xlu0 %v1025_v31 }
 0x659   :  { %v1028_v21 = vsel %vm541_vm12, %v4045_v19, 0.0 }
 0x65a   :  { %1029 = vadd.xlane.f32.xlu1 %v1028_v21 }
 0x65e   :  { %v4047_v22 = vpop.eup %4046 }
 0x65f   :  { %v1019_v23 = vsel %vm541_vm12, %v4047_v22, 0.0 }
 0x660   :  { %1020 = vadd.xlane.f32.xlu0 %v1019_v23 }
 0x6c5   :  { %v1024_v24 = vpop.xlane.xlu2 %1023 }
 0x6c6   :  { %4048 = vrcp.f32 %v1024_v24 }
 0x6cb   :  { %v1027_v25 = vpop.xlane.xlu0 %1026 }
 0x6cc   :  { %v4049_v30 = vpop.eup %4048  ;;  %4050 = vrcp.f32 %v1027_v25 }
 0x6cd   :  { %v1036_v26 = vmul.f32 %v4049_v30, %v4041_v49  ;;  %v1030_v28 = vpop.xlane.xlu1 %1029 }
 0x6ce   :  { %4052 = vrcp.f32 %v1030_v28 }
 0x6cf   :  { %v1040_v29 = vpack.c.bf16 %v1036_v26, %v1036_v26  ;;  %v1162_v6 = vrot.slane %v1036_v26, 7 }
 0x6d1   :  { %3830 = vmatmul.msk.bf16.vlgmr.msrb.gmra.mxu1 %vm590_vm14, %v1040_v29 }
 0x6d2   :  { %v4051_v40 = vpop.eup %4050  ;;  %1229 = vmatpush.bf16.msrb.mxu1 %v4578_v2 }
 0x6d3   :  { %v1037_v41 = vmul.f32 %v4051_v40, %v4043_v17  ;;  %v1021_v43 = vpop.xlane.xlu0 %1020 }
 0x6d4   :  { %v4053_v44 = vpop.eup %4052  ;;  %4054 = vrcp.f32 %v1021_v43 }
 0x6d5   :  { %v1041_v45 = vpack.c.bf16 %v1037_v41, %v1037_v41  ;;  %v1038_v1 = vmul.f32 %v4053_v44, %v4045_v19  ;;  %v1164_v51 = vrot.slane %v1037_v41, 6  ;;  %v1173_v41 = vld [vmem:[#allocation4 + $0x8] sm:$0xf] }
 0x6d6   :  { %1230 = vmatpush.bf16.msrb.mxu1 %v4582_v4 }
 0x6d7   :  { %v1042_v47 = vpack.c.bf16 %v1038_v1, %v1038_v1  ;;  %3831 = vmatmul.msk.bf16.vlgmr.msrb.gmra.mxu2 %vm590_vm14, %v1041_v45  ;;  %v1166_v3 = vrot.slane %v1038_v1, 5 }
 0x6d8   :  { %1242 = vmatpush.bf16.msrb.mxu2 %v4588_v8 }
 0x6d9   :  { %3832 = vmatmul.msk.bf16.vlgmr.msrb.gmra.mxu3 %vm590_vm14, %v1042_v47 }
 0x6da   :  { %v4055_v50 = vpop.eup %4054  ;;  %1255 = vmatpush.bf16.msrb.mxu3 %v4596_v11 }
 0x6db   :  { %v1035_v2 = vmul.f32 %v4055_v50, %v4047_v22 }
 0x6dc   :  { %1243 = vmatpush.bf16.msrb.mxu2 %v4604_v14 }
 0x6dd   :  { %v1039_v10 = vpack.c.bf16 %v1035_v2, %v1035_v2  ;;  %v1163_v53 = vsel %vm449_vm11, %v1162_v6, %v1035_v2 }
 0x6de   :  { %v1165_v4 = vsel %vm704_vm15, %v1164_v51, %v1163_v53  ;;  %1256 = vmatpush.bf16.msrb.mxu3 %v4612_v16 }
 0x6df   :  { %v1167_v8 = vsel %vm707_vm2, %v1166_v3, %v1165_v4  ;;  %3829 = vmatmul.msk.bf16.vlgmr.msrb.gmra.mxu0 %vm590_vm14, %v1039_v10 }
 0x6e0   :  { %3835 = vst.msk [vmem:[%s5438_s10 + $0x4] sm:$0xf] %vm752_vm3, %v1167_v8  ;;  %1215 = vmatpush.bf16.msrb.mxu0 %v4591_v9 }
 0x6e4   :  { %1216 = vmatpush.bf16.msrb.mxu0 %v4601_v13 }
 0x6ef   :  { %3833 = vmatmul.msk.bf16.vlgmr.msra.gmra.mxu0 %vm204_vm1, %v4797_v63 }
 0x6f0   :  { %1319 = vmatpush.bf16.msra.mxu0 %v4632_v39 }
 0x6f4   :  { %1320 = vmatpush.bf16.msra.mxu0 %v4638_v42 }
 0x74e   :  { %v1071_v11 = vpop.f32.mrf.mxu1 }
 0x74f   :  { %v1108_v16 = vpack.c.bf16 %v1071_v11, %v1071_v11  ;;  %v4869_v11 = vld [vmem:[#allocation12 + $0x1] ss:$0 sm:$0xff] }
 0x751   :  { %v1129_v36 = vunpack.c.l.b16 %v1108_v16 }
 0x753   :  { %v1132_v49 = vrot.slane %v1129_v36, 7 }
 0x756   :  { %v1073_v14 = vpop.f32.mrf.mxu1 }
 0x75a   :  { %v1087_v54 = vpop.f32.mrf.mxu2 }
 0x75b   :  { %v1109_v32 = vpack.c.bf16 %v1087_v54, %v1087_v54 }
 0x75c   :  { %v1055_v34 = vpop.f32.mrf.mxu0  ;;  %v1103_v59 = vpop.f32.mrf.mxu3 }
 0x75d   :  { %v1130_v60 = vunpack.c.l.b16 %v1109_v32  ;;  %v1107_v61 = vpack.c.bf16 %v1055_v34, %v1055_v34  ;;  %v1110_v9 = vpack.c.bf16 %v1103_v59, %v1103_v59 }
 0x75f   :  { %v1134_v13 = vrot.slane %v1130_v60, 6  ;;  %v1128_v0 = vunpack.c.l.b16 %v1107_v61  ;;  %v1131_v5 = vunpack.c.l.b16 %v1110_v9 }
 0x761   :  { %v1133_v7 = vsel %vm449_vm11, %v1132_v49, %v1128_v0  ;;  %v1136_v39 = vrot.slane %v1131_v5, 5 }
 0x762   :  { %v1135_v42 = vsel %vm704_vm15, %v1134_v13, %v1133_v7  ;;  %v1089_v12 = vpop.f32.mrf.mxu2 }
 0x763   :  { %v1137_v17 = vsel %vm707_vm2, %v1136_v39, %v1135_v42  ;;  %v1208_v12 = vld [vmem:[#allocation4 + $0x48] sm:$0xf] }
 0x764   :  { %v1138_v18 = vpack.c.b16 %v1137_v17, %v1137_v17  ;;  %v1057_v31 = vpop.f32.mrf.mxu0  ;;  %v1105_v19 = vpop.f32.mrf.mxu3 }
 0x766   :  { %3834 = vmatmul.msk.bf16.vlgmr.msra.gmra.mxu1 %vm204_vm1, %v1138_v18 }
 0x767   :  { %1352 = vmatpush.bf16.xpose.msra.mxu1 %v4648_v48 }
 0x76c   :  { %v1120_v21 = vpop.f32.mrf.mxu0 }
 0x774   :  { %v1122_v22 = vpop.f32.mrf.mxu0 }
 0x776   :  { %3839 = vmatmul.msk.bf16.vlgmr.msrb.gmra.mxu1 %vm204_vm1, %v4797_v63 }
 0x777   :  { %1470 = vmatpush.bf16.msrb.mxu1 %v4712_v56 }
 0x7e3   :  { %v1151_v23 = vpop.f32.mrf.mxu1 }
 0x7e4   :  { %v1152_v24 = vadd.f32 %v1151_v23, %v1120_v21 }
 0x7e6   :  { %4056 = vtanh.f32 %v1152_v24 }
 0x7eb   :  { %v1153_v25 = vpop.f32.mrf.mxu1 }
 0x7ec   :  { %v4057_v30 = vpop.eup %4056 }
 0x7ed   :  { %1157 = vst.msk [vmem:[#allocation15 + $0x4] sm:$0xf] %vm135_vm0, %v4057_v30  ;;  %v1171_v26 = vpack.c.bf16 %v4057_v30, %v4057_v30 }
 0x7ef   :  { %3836 = vmatmul.msk.bf16.vlgmr.msra.gmra.mxu2 %vm204_vm1, %v1171_v26  ;;  %3837 = vmatmul.msk.bf16.vlgmr.msra.gmra.mxu3 %vm204_vm1, %v1171_v26 }
 0x7f0   :  { %3838 = vmatmul.msk.bf16.vlgmr.msrb.gmra.mxu0 %vm204_vm1, %v1171_v26  ;;  %1370 = vmatpush.bf16.xpose.msra.mxu2 %v4675_v15 }
 0x7f1   :  { %1388 = vmatpush.bf16.xpose.msra.mxu3 %v4679_v35  ;;  %1406 = vmatpush.bf16.xpose.msrb.mxu0 %v4690_v37 }
 0x7f3   :  { %v1232_v28 = vpop.f32.mrf.mxu1 }
 0x7f4   :  { %v1233_v45 = vadd.f32 %v4623_v20, %v1232_v28 }
 0x7fb   :  { %v1234_v29 = vpop.f32.mrf.mxu1 }
 0x7ff   :  { %3840 = vmatmul.msk.bf16.vlgmr.msrb.gmra.mxu2 %vm204_vm1, %v4797_v63  ;;  %3841 = vmatmul.msk.bf16.vlgmr.msrb.gmra.mxu3 %vm204_vm1, %v4797_v63  ;;  %v1192_v63 = vld [vmem:[#allocation4 + $0x28] sm:$0xf] }
 0x800   :  { %1486 = vmatpush.bf16.msrb.mxu2 %v4708_v55  ;;  %1502 = vmatpush.bf16.msrb.mxu3 %v4721_v58 }
 0x86d   :  { %v1218_v40 = vpop.f32.mrf.mxu0 }
 0x86e   :  { %v1222_v31 = vadd.f32 %v1218_v40, %v1208_v12 }
 0x872   :  { %v1186_v43 = vpop.f32.mrf.mxu2  ;;  %v1202_v44 = vpop.f32.mrf.mxu3 }
 0x873   :  { %v1190_v1 = vadd.f32 %v1186_v43, %v1173_v41  ;;  %v1206_v8 = vadd.f32 %v1202_v44, %v1192_v63 }
 0x875   :  { %v1262_v47 = vadd.f32 %v1233_v45, %v1190_v1  ;;  %v1220_v50 = vpop.f32.mrf.mxu0 }
 0x877   :  { %v3842_v6 = vmul.f32 -1.442695, %v1262_v47 }
 0x879   :  { %4058 = vpow2.f32 %v3842_v6 }
 0x87a   :  { %v1188_v2 = vpop.f32.mrf.mxu2  ;;  %v1204_v51 = vpop.f32.mrf.mxu3 }
 0x87f   :  { %v4059_v3 = vpop.eup %4058 }
 0x880   :  { %v1266_v10 = vadd.f32 1.0, %v4059_v3 }
 0x882   :  { %4060 = vrcp.f32 %v1266_v10  ;;  %v1245_v53 = vpop.f32.mrf.mxu2  ;;  %v1258_v4 = vpop.f32.mrf.mxu3  ;;  %v1278_v61 = vand.u32 2147483648, %v1266_v10  ;;  %v1276_v9 = vand.u32 2147483647, %v1266_v10  ;;  %vm1272_vm6 = vweird.f32 %v1266_v10 }
 0x883   :  { %v1246_v14 = vadd.f32 %v4869_v11, %v1245_v53  ;;  %v1259_v42 = vadd.f32 %v4651_v52, %v1258_v4 }
 0x884   :  { %v1279_v7 = vor.u32 1.1754944e-38, %v1278_v61  ;;  %vm1277_vm8 = vcmp.eq.f32.partialorder %v1276_v9, 8.507059e+37 }
 0x885   :  { %v1282_v16 = vadd.f32 %v1246_v14, %v1206_v8 }
 0x887   :  { %v3843_v20 = vmul.f32 -1.442695, %v1282_v16 }
 0x888   :  { %v4061_v54 = vpop.eup %4060 }
 0x889   :  { %4062 = vpow2.f32 %v3843_v20  ;;  %v1268_v36 = vmul.f32 %v4061_v54, %v1266_v10  ;;  %vm1273_vm5 = vweird.f32 %v4061_v54 }
 0x88a   :  { %v1247_v32 = vpop.f32.mrf.mxu2  ;;  %v1260_v34 = vpop.f32.mrf.mxu3  ;;  %vm1274_vm7 = vmor %vm1272_vm6, %vm1273_vm5 }
 0x88b   :  { %v1269_v59 = vsub.f32 1.0, %v1268_v36  ;;  %v4890_v36 = vld [vmem:[#allocation9 + $0x8] sm:$0xff]  ;;  %v4895_v32 = vld [vmem:[#allocation9 + $0x18] sm:$0xff]  ;;  %v4902_v34 = vld [vmem:[#allocation9 + $0x10] sm:$0xff] }
 0x88d   :  { %v1270_v60 = vmul.f32 %v4061_v54, %v1269_v59 }
 0x88f   :  { %v4063_v49 = vpop.eup %4062  ;;  %v1271_v13 = vadd.f32 %v4061_v54, %v1270_v60 }
 0x890   :  { %v1286_v0 = vadd.f32 1.0, %v4063_v49 }
 0x891   :  { %v1275_v5 = vsel %vm1274_vm7, %v4061_v54, %v1271_v13 }
 0x892   :  { %4064 = vrcp.f32 %v1286_v0  ;;  %v1280_v39 = vsel %vm1277_vm8, %v1279_v7, %v1275_v5  ;;  %v1298_v23 = vand.u32 2147483648, %v1286_v0  ;;  %v1296_v25 = vand.u32 2147483647, %v1286_v0 }
 0x893   :  { %v1302_v17 = vmul.f32 %v1280_v39, %v1259_v42  ;;  %vm1292_vm13 = vweird.f32 %v1286_v0 }
 0x894   :  { %v1299_v26 = vor.u32 1.1754944e-38, %v1298_v23  ;;  %vm1297_vm5 = vcmp.eq.f32.partialorder %v1296_v25, 8.507059e+37 }
 0x895   :  { %v1303_v21 = vadd.f32 %v1302_v17, %v1222_v31 }
 0x897   :  { %4066 = vtanh.f32 %v1303_v21 }
 0x898   :  { %v4065_v18 = vpop.eup %4064 }
 0x899   :  { %v1288_v19 = vmul.f32 %v4065_v18, %v1286_v0  ;;  %vm1293_vm9 = vweird.f32 %v4065_v18 }
 0x89a   :  { %vm1294_vm4 = vmor %vm1292_vm13, %vm1293_vm9 }
 0x89b   :  { %v1289_v22 = vsub.f32 1.0, %v1288_v19 }
 0x89d   :  { %v1290_v24 = vmul.f32 %v4065_v18, %v1289_v22  ;;  %v4067_v41 = vpop.eup %4066 }
 0x89f   :  { %v1291_v30 = vadd.f32 %v4065_v18, %v1290_v24 }
 0x8a1   :  { %v1295_v28 = vsel %vm1294_vm4, %v4065_v18, %v1291_v30 }
 0x8a2   :  { %v1300_v29 = vsel %vm1297_vm5, %v1299_v26, %v1295_v28 }
 0x8a3   :  { %v1305_v52 = vsub.f32 1.0, %v1300_v29  ;;  %v1307_v40 = vmul.f32 %v1300_v29, %v4793_v62 }
 0x8a5   :  { %v1306_v43 = vmul.f32 %v4067_v41, %v1305_v52 }
 0x8a7   :  { %v4874_v44 = vadd.f32 %v1307_v40, %v1306_v43 }
 0x8a9   :  { %v4878_v45 = vpack.c.bf16 %v4874_v44, %v4874_v44 }
 0x8ab   :  { %3844 = vmatmul.msk.bf16.vlgmr.msra.gmra.mxu0 %vm204_vm1, %v4878_v45 }
 0x8ac   :  { %1518 = vmatpush.bf16.msra.mxu0 %v4716_v57 }
 0x928   :  { %v1322_v1 = vpop.f32.mrf.mxu0 }
 0x929   :  { %v1326_v47 = vpack.c.bf16 %v1322_v1, %v1322_v1 }
 0x92b   :  { %v1328_v50 = vrot.slane %v1326_v47, 3 }
 0x92d   :  { %v1331_v6 = vsel %vm444_vm10, %v1326_v47, %v1328_v50  ;;  %v1333_v2 = vsel %vm449_vm11, %v1326_v47, %v1328_v50 }
 0x92e   :  { %v1335_v51 = vrot.slane %v1333_v2, 1  ;;  %v1337_v62 = vunpack.i.h.s16 %v1331_v6  ;;  %v3845_v3 = vpack.i.b16 %v1331_v6, %v1331_v6 }
 0x930   :  { %v1339_v10 = vunpack.i.h.s16 %v1335_v51  ;;  %v1341_v63 = vperm.slane %v3845_v3, 0  ;;  %v1358_v53 = vpack.i.b16 %v1337_v62, %v1337_v62  ;;  %v3848_v4 = vpack.i.b16 %v1335_v51, %v1335_v51  ;;  %v1324_v8 = vpop.f32.mrf.mxu0  ;;  %v4914_v62 = vld [vmem:[#allocation9 + $0x28] sm:$0xff] }
 0x931   :  { %v4917_v8 = vld [vmem:[#allocation9 + $0x20] sm:$0xff] }
 0x932   :  { %v1359_v14 = vperm.slane %v1358_v53, 0  ;;  %v1377_v16 = vperm.slane %v3848_v4, 0  ;;  %v1394_v20 = vpack.i.b16 %v1339_v10, %v1339_v10  ;;  %3846 = vmatmul.msk.bf16.vlgmr.msra.gmra.mxu1 %vm204_vm1, %v1341_v63 }
 0x933   :  { %1534 = vmatpush.bf16.msra.mxu1 %v4727_v46  ;;  %v4899_v46 = vld [vmem:[#allocation9] sm:$0xff] }
 0x934   :  { %v1395_v54 = vperm.slane %v1394_v20, 0  ;;  %3847 = vmatmul.msk.bf16.vlgmr.msra.gmra.mxu2 %vm204_vm1, %v1359_v14  ;;  %3849 = vmatmul.msk.bf16.vlgmr.msra.gmra.mxu3 %vm204_vm1, %v1377_v16 }
 0x935   :  { %1565 = vmatpush.bf16.msra.mxu2 %v4757_v27  ;;  %1600 = vmatpush.bf16.msra.mxu3 %v4890_v36 }
 0x936   :  { %3850 = vmatmul.msk.bf16.vlgmr.msrb.gmra.mxu0 %vm204_vm1, %v1395_v54  ;;  %v4922_v54 = vld [vmem:[#allocation10 + $0x8] sm:$0xff] }
 0x937   :  { %1535 = vmatpush.bf16.msra.mxu1 %v4730_v33  ;;  %1616 = vmatpush.bf16.msrb.mxu0 %v4895_v32 }
 0x939   :  { %1566 = vmatpush.bf16.msra.mxu2 %v4763_v38  ;;  %1601 = vmatpush.bf16.msra.mxu3 %v4899_v46 }
 0x93b   :  { %1617 = vmatpush.bf16.msrb.mxu0 %v4902_v34 }
 0x9af   :  { %v1354_v27 = vpop.f32.mrf.mxu1 }
 0x9b0   :  { %v1412_v59 = vsel %vm541_vm12, %v1354_v27, -inf }
 0x9b1   :  { %1413 = vmax.xlane.f32.xlu0 %v1412_v59 }
 0x9b3   :  { %v1408_v60 = vpop.f32.mrf.mxu0 }
 0x9b4   :  { %v1421_v7 = vsel %vm541_vm12, %v1408_v60, -inf }
 0x9b7   :  { %v1356_v33 = vpop.f32.mrf.mxu1  ;;  %v1372_v61 = vpop.f32.mrf.mxu2 }
 0x9b8   :  { %v1390_v9 = vpop.f32.mrf.mxu3  ;;  %v1415_v49 = vsel %vm541_vm12, %v1372_v61, -inf }
 0x9b9   :  { %v1418_v38 = vsel %vm541_vm12, %v1390_v9, -inf  ;;  %1416 = vmax.xlane.f32.xlu1 %v1415_v49 }
 0x9ba   :  { %1419 = vmax.xlane.f32.xlu2 %v1418_v38 }
 0x9bb   :  { %v1410_v13 = vpop.f32.mrf.mxu0 }
 0x9bc   :  { %v4932_v13 = vld [vmem:[#allocation10 + $0x10] sm:$0xff] }
 0x9bf   :  { %v1374_v0 = vpop.f32.mrf.mxu2 }
 0x9c0   :  { %v1392_v5 = vpop.f32.mrf.mxu3 }
 0x9c1   :  { %1422 = vmax.xlane.f32.xlu1 %v1421_v7  ;;  %v4944_v7 = vld [vmem:[#allocation10 + $0x28] sm:$0xff] }
 0xa24   :  { %v1414_v39 = vpop.xlane.xlu0 %1413 }
 0xa25   :  { %v1424_v42 = vsub.f32 %v1354_v27, %v1414_v39  ;;  %v4925_v27 = vld [vmem:[#allocation10 + $0x18] sm:$0xff]  ;;  %v4950_v39 = vld [vmem:[%s5434_s6 + $0x8] sm:$0xff] }
 0xa27   :  { %v1428_v12 = vmul.f32 1.442695, %v1424_v42  ;;  %v4953_v42 = vld [vmem:[#allocation10 + $0x20] sm:$0xff] }
 0xa29   :  { %4068 = vpow2.f32 %v1428_v12  ;;  %v4959_v12 = vld [vmem:[%s5434_s6] sm:$0xff] }
 0xa2c   :  { %v1417_v17 = vpop.xlane.xlu1 %1416 }
 0xa2d   :  { %v1420_v18 = vpop.xlane.xlu2 %1419  ;;  %v1425_v31 = vsub.f32 %v1372_v61, %v1417_v17 }
 0xa2e   :  { %v1426_v19 = vsub.f32 %v1390_v9, %v1420_v18  ;;  %v4929_v9 = vld [vmem:[#allocation10] sm:$0xff] }
 0xa2f   :  { %v4069_v21 = vpop.eup %4068  ;;  %v1430_v22 = vmul.f32 1.442695, %v1425_v31 }
 0xa30   :  { %v1432_v23 = vmul.f32 1.442695, %v1426_v19  ;;  %v1436_v24 = vsel %vm541_vm12, %v4069_v21, 0.0 }
 0xa31   :  { %4070 = vpow2.f32 %v1430_v22  ;;  %1437 = vadd.xlane.f32.xlu1 %v1436_v24 }
 0xa32   :  { %4072 = vpow2.f32 %v1432_v23 }
 0xa34   :  { %v1423_v25 = vpop.xlane.xlu1 %1422 }
 0xa35   :  { %v1427_v30 = vsub.f32 %v1408_v60, %v1423_v25 }
 0xa37   :  { %v4071_v26 = vpop.eup %4070  ;;  %v1434_v28 = vmul.f32 1.442695, %v1427_v30 }
 0xa38   :  { %v4073_v29 = vpop.eup %4072  ;;  %v1439_v52 = vsel %vm541_vm12, %v4071_v26, 0.0 }
 0xa39   :  { %4074 = vpow2.f32 %v1434_v28  ;;  %v1442_v41 = vsel %vm541_vm12, %v4073_v29, 0.0  ;;  %1440 = vadd.xlane.f32.xlu2 %v1439_v52 }
 0xa3a   :  { %1443 = vadd.xlane.f32.xlu0 %v1442_v41 }
 0xa3f   :  { %v4075_v43 = vpop.eup %4074 }
 0xa40   :  { %v1445_v40 = vsel %vm541_vm12, %v4075_v43, 0.0 }
 0xa41   :  { %1446 = vadd.xlane.f32.xlu2 %v1445_v40 }
 0xaa4   :  { %v1438_v1 = vpop.xlane.xlu1 %1437 }
 0xaa5   :  { %4076 = vrcp.f32 %v1438_v1 }
 0xaab   :  { %v4077_v47 = vpop.eup %4076 }
 0xaac   :  { %v1452_v50 = vmul.f32 %v4077_v47, %v4069_v21  ;;  %v1441_v6 = vpop.xlane.xlu2 %1440 }
 0xaad   :  { %v1444_v2 = vpop.xlane.xlu0 %1443  ;;  %4078 = vrcp.f32 %v1441_v6 }
 0xaae   :  { %v1456_v51 = vpack.c.bf16 %v1452_v50, %v1452_v50  ;;  %4080 = vrcp.f32 %v1444_v2 }
 0xab0   :  { %3851 = vmatmul.msk.bf16.vlgmr.msrb.gmra.mxu1 %vm590_vm14, %v1456_v51 }
 0xab1   :  { %1632 = vmatpush.bf16.msrb.mxu1 %v4914_v62 }
 0xab3   :  { %v4079_v3 = vpop.eup %4078 }
 0xab4   :  { %v4081_v10 = vpop.eup %4080  ;;  %v1453_v63 = vmul.f32 %v4079_v3, %v4071_v26  ;;  %v1447_v53 = vpop.xlane.xlu2 %1446 }
 0xab5   :  { %v1454_v4 = vmul.f32 %v4081_v10, %v4073_v29  ;;  %4082 = vrcp.f32 %v1447_v53  ;;  %1633 = vmatpush.bf16.msrb.mxu1 %v4917_v8 }
 0xab6   :  { %v1457_v14 = vpack.c.bf16 %v1453_v63, %v1453_v63  ;;  %v1579_v20 = vrot.slane %v1453_v63, 7 }
 0xab7   :  { %v1458_v16 = vpack.c.bf16 %v1454_v4, %v1454_v4  ;;  %v1581_v60 = vrot.slane %v1454_v4, 6 }
 0xab8   :  { %3852 = vmatmul.msk.bf16.vlgmr.msrb.gmra.mxu2 %vm590_vm14, %v1457_v14  ;;  %v1580_v33 = vsel %vm449_vm11, %v1579_v20, %v1452_v50 }
 0xab9   :  { %3853 = vmatmul.msk.bf16.vlgmr.msrb.gmra.mxu3 %vm590_vm14, %v1458_v16  ;;  %1646 = vmatpush.bf16.msrb.mxu2 %v4922_v54  ;;  %v1582_v0 = vsel %vm704_vm15, %v1581_v60, %v1580_v33 }
 0xaba   :  { %1659 = vmatpush.bf16.msrb.mxu3 %v4925_v27 }
 0xabb   :  { %v4083_v59 = vpop.eup %4082 }
 0xabc   :  { %v1455_v61 = vmul.f32 %v4083_v59, %v4075_v43 }
 0xabd   :  { %1647 = vmatpush.bf16.msrb.mxu2 %v4929_v9 }
 0xabe   :  { %v1459_v49 = vpack.c.bf16 %v1455_v61, %v1455_v61  ;;  %v1583_v38 = vrot.slane %v1455_v61, 5  ;;  %1660 = vmatpush.bf16.msrb.mxu3 %v4932_v13  ;;  %v1590_v61 = vld [vmem:[#allocation4 + $0xc] sm:$0xf] }
 0xac0   :  { %v1584_v5 = vsel %vm707_vm2, %v1583_v38, %v1582_v0  ;;  %3854 = vmatmul.msk.bf16.vlgmr.msra.gmra.mxu0 %vm590_vm14, %v1459_v49  ;;  %3855 = vmatmul.msk.bf16.vlgmr.msra.gmra.mxu1 %vm204_vm1, %v4878_v45  ;;  %v4983_v38 = vld [vmem:[#allocation12] ss:$0 sm:$0xff] }
 0xac1   :  { %3857 = vst.msk [vmem:[%s5438_s10 + $0x8] sm:$0xf] %vm752_vm3, %v1584_v5  ;;  %1672 = vmatpush.bf16.msra.mxu0 %v4944_v7  ;;  %1736 = vmatpush.bf16.msra.mxu1 %v4950_v39 }
 0xac5   :  { %1673 = vmatpush.bf16.msra.mxu0 %v4953_v42  ;;  %1737 = vmatpush.bf16.msra.mxu1 %v4959_v12 }
 0xb2d   :  { %v1472_v17 = vpop.f32.mrf.mxu1 }
 0xb2e   :  { %v1524_v19 = vpack.c.bf16 %v1472_v17, %v1472_v17 }
 0xb30   :  { %v1545_v29 = vunpack.c.l.b16 %v1524_v19 }
 0xb35   :  { %v1474_v18 = vpop.f32.mrf.mxu1 }
 0xb3b   :  { %v1488_v31 = vpop.f32.mrf.mxu2 }
 0xb3c   :  { %v1525_v21 = vpack.c.bf16 %v1488_v31, %v1488_v31  ;;  %v1504_v22 = vpop.f32.mrf.mxu3 }
 0xb3d   :  { %v1526_v23 = vpack.c.bf16 %v1504_v22, %v1504_v22  ;;  %v1520_v24 = vpop.f32.mrf.mxu0  ;;  %v1537_v25 = vpop.f32.mrf.mxu1 }
 0xb3e   :  { %v1546_v30 = vunpack.c.l.b16 %v1525_v21  ;;  %v1527_v26 = vpack.c.bf16 %v1520_v24, %v1520_v24 }
 0xb3f   :  { %v1547_v28 = vunpack.c.l.b16 %v1526_v23  ;;  %v1609_v23 = vld [vmem:[#allocation4 + $0x2c] sm:$0xf] }
 0xb40   :  { %v1549_v52 = vrot.slane %v1546_v30, 7  ;;  %v1548_v41 = vunpack.c.l.b16 %v1527_v26 }
 0xb41   :  { %v1551_v43 = vrot.slane %v1547_v28, 6 }
 0xb42   :  { %v1550_v40 = vsel %vm449_vm11, %v1549_v52, %v1545_v29  ;;  %v1553_v1 = vrot.slane %v1548_v41, 5 }
 0xb43   :  { %v1552_v47 = vsel %vm704_vm15, %v1551_v43, %v1550_v40  ;;  %v1490_v50 = vpop.f32.mrf.mxu2 }
 0xb44   :  { %v1554_v6 = vsel %vm707_vm2, %v1553_v1, %v1552_v47  ;;  %v1506_v2 = vpop.f32.mrf.mxu3 }
 0xb45   :  { %v1555_v51 = vpack.c.b16 %v1554_v6, %v1554_v6  ;;  %v1522_v3 = vpop.f32.mrf.mxu0  ;;  %v1539_v10 = vpop.f32.mrf.mxu1 }
 0xb47   :  { %3856 = vmatmul.msk.bf16.vlgmr.msra.gmra.mxu2 %vm204_vm1, %v1555_v51 }
 0xb48   :  { %1769 = vmatpush.bf16.xpose.msra.mxu2 %v4648_v48 }
 0xb57   :  { %3861 = vmatmul.msk.bf16.vlgmr.msrb.gmra.mxu2 %vm204_vm1, %v4878_v45 }
 0xb58   :  { %1887 = vmatpush.bf16.msrb.mxu2 %v4712_v56 }
 0xbca   :  { %v1568_v63 = vpop.f32.mrf.mxu2 }
 0xbcb   :  { %v1569_v53 = vadd.f32 %v1568_v63, %v1537_v25 }
 0xbcd   :  { %4084 = vtanh.f32 %v1569_v53 }
 0xbd2   :  { %v1570_v4 = vpop.f32.mrf.mxu2 }
 0xbd3   :  { %v4085_v14 = vpop.eup %4084  ;;  %v4987_v4 = vld [vmem:[#allocation12 + $0x2] ss:$0 sm:$0xff] }
 0xbd4   :  { %1574 = vst.msk [vmem:[#allocation15 + $0x8] sm:$0xf] %vm135_vm0, %v4085_v14  ;;  %v1588_v16 = vpack.c.bf16 %v4085_v14, %v4085_v14 }
 0xbd6   :  { %3858 = vmatmul.msk.bf16.vlgmr.msra.gmra.mxu3 %vm204_vm1, %v1588_v16  ;;  %3859 = vmatmul.msk.bf16.vlgmr.msrb.gmra.mxu0 %vm204_vm1, %v1588_v16 }
 0xbd7   :  { %3860 = vmatmul.msk.bf16.vlgmr.msrb.gmra.mxu1 %vm204_vm1, %v1588_v16  ;;  %1787 = vmatpush.bf16.xpose.msra.mxu3 %v4675_v15  ;;  %v1625_v16 = vld [vmem:[#allocation4 + $0x4c] sm:$0xf] }
 0xbd8   :  { %1805 = vmatpush.bf16.xpose.msrb.mxu0 %v4679_v35  ;;  %1823 = vmatpush.bf16.xpose.msrb.mxu1 %v4690_v37 }
 0xbda   :  { %v1649_v20 = vpop.f32.mrf.mxu2 }
 0xbdb   :  { %v1650_v0 = vadd.f32 %v4983_v38, %v1649_v20 }
 0xbe2   :  { %v1651_v59 = vpop.f32.mrf.mxu2 }
 0xbe6   :  { %3862 = vmatmul.msk.bf16.vlgmr.msrb.gmra.mxu3 %vm204_vm1, %v4878_v45  ;;  %3863 = vmatmul.msk.bf16.vlgmr.msra.gmra.mxu0 %vm204_vm1, %v4878_v45 }
 0xbe7   :  { %1903 = vmatpush.bf16.msrb.mxu3 %v4708_v55  ;;  %1919 = vmatpush.bf16.msra.mxu0 %v4721_v58 }
 0xc53   :  { %v1619_v60 = vpop.f32.mrf.mxu0 }
 0xc54   :  { %v1635_v33 = vpop.f32.mrf.mxu1  ;;  %v1623_v30 = vadd.f32 %v1619_v60, %v1609_v23 }
 0xc55   :  { %v1639_v60 = vadd.f32 %v1635_v33, %v1625_v16  ;;  %v5016_v16 = vld [vmem:[#allocation13] sm:$0xff] }
 0xc59   :  { %v1603_v49 = vpop.f32.mrf.mxu3 }
 0xc5a   :  { %v1607_v5 = vadd.f32 %v1603_v49, %v1590_v61 }
 0xc5b   :  { %v1621_v17 = vpop.f32.mrf.mxu0 }
 0xc5c   :  { %v1679_v18 = vadd.f32 %v1650_v0, %v1607_v5  ;;  %v1637_v31 = vpop.f32.mrf.mxu1 }
 0xc5e   :  { %v3864_v19 = vmul.f32 -1.442695, %v1679_v18 }
 0xc60   :  { %4086 = vpow2.f32 %v3864_v19 }
 0xc61   :  { %v1605_v21 = vpop.f32.mrf.mxu3 }
 0xc63   :  { %v1675_v45 = vpop.f32.mrf.mxu0 }
 0xc64   :  { %v1676_v14 = vadd.f32 %v4987_v4, %v1675_v45 }
 0xc66   :  { %v4087_v22 = vpop.eup %4086 }
 0xc67   :  { %v1683_v24 = vadd.f32 1.0, %v4087_v22 }
 0xc69   :  { %4088 = vrcp.f32 %v1683_v24  ;;  %v1662_v25 = vpop.f32.mrf.mxu3  ;;  %v1695_v50 = vand.u32 2147483648, %v1683_v24  ;;  %v1693_v6 = vand.u32 2147483647, %v1683_v24  ;;  %vm1689_vm7 = vweird.f32 %v1683_v24 }
 0xc6a   :  { %v1663_v26 = vadd.f32 %v4869_v11, %v1662_v25 }
 0xc6b   :  { %v1677_v28 = vpop.f32.mrf.mxu0  ;;  %v1696_v63 = vor.u32 1.1754944e-38, %v1695_v50  ;;  %vm1694_vm9 = vcmp.eq.f32.partialorder %v1693_v6, 8.507059e+37 }
 0xc6c   :  { %v1699_v29 = vadd.f32 %v1663_v26, %v1623_v30 }
 0xc6e   :  { %v3865_v52 = vmul.f32 -1.442695, %v1699_v29 }
 0xc6f   :  { %v4089_v41 = vpop.eup %4088 }
 0xc70   :  { %v1685_v43 = vmul.f32 %v4089_v41, %v1683_v24  ;;  %4090 = vpow2.f32 %v3865_v52  ;;  %vm1690_vm6 = vweird.f32 %v4089_v41 }
 0xc71   :  { %v1664_v40 = vpop.f32.mrf.mxu3  ;;  %vm1691_vm8 = vmor %vm1689_vm7, %vm1690_vm6 }
 0xc72   :  { %v1686_v1 = vsub.f32 1.0, %v1685_v43 }
 0xc74   :  { %v1687_v47 = vmul.f32 %v4089_v41, %v1686_v1 }
 0xc76   :  { %v4091_v2 = vpop.eup %4090  ;;  %v1688_v51 = vadd.f32 %v4089_v41, %v1687_v47 }
 0xc77   :  { %v1703_v3 = vadd.f32 1.0, %v4091_v2 }
 0xc78   :  { %v1692_v10 = vsel %vm1691_vm8, %v4089_v41, %v1688_v51 }
 0xc79   :  { %4092 = vrcp.f32 %v1703_v3  ;;  %v1697_v53 = vsel %vm1694_vm9, %v1696_v63, %v1692_v10  ;;  %v1715_v5 = vand.u32 2147483648, %v1703_v3  ;;  %v1713_v18 = vand.u32 2147483647, %v1703_v3  ;;  %v5003_v63 = vld [vmem:[#allocation13 + $0x8] sm:$0xff] }
 0xc7a   :  { %v1719_v20 = vmul.f32 %v1697_v53, %v1676_v14  ;;  %vm1709_vm4 = vweird.f32 %v1703_v3  ;;  %v5011_v14 = vld [vmem:[%s5435_s7 + $0x8] sm:$0xff] }
 0xc7b   :  { %v1716_v19 = vor.u32 1.1754944e-38, %v1715_v5  ;;  %vm1714_vm6 = vcmp.eq.f32.partialorder %v1713_v18, 8.507059e+37 }
 0xc7c   :  { %v1720_v49 = vadd.f32 %v1719_v20, %v1639_v60  ;;  %v5023_v20 = vld [vmem:[%s5435_s7] sm:$0xff] }
 0xc7e   :  { %4094 = vtanh.f32 %v1720_v49 }
 0xc7f   :  { %v4093_v59 = vpop.eup %4092 }
 0xc80   :  { %v1705_v61 = vmul.f32 %v4093_v59, %v1703_v3  ;;  %vm1710_vm13 = vweird.f32 %v4093_v59 }
 0xc81   :  { %vm1711_vm5 = vmor %vm1709_vm4, %vm1710_vm13 }
 0xc82   :  { %v1706_v0 = vsub.f32 1.0, %v1705_v61 }
 0xc84   :  { %v1707_v17 = vmul.f32 %v4093_v59, %v1706_v0  ;;  %v4095_v23 = vpop.eup %4094 }
 0xc86   :  { %v1708_v31 = vadd.f32 %v4093_v59, %v1707_v17 }
 0xc88   :  { %v1712_v21 = vsel %vm1711_vm5, %v4093_v59, %v1708_v31 }
 0xc89   :  { %v1717_v22 = vsel %vm1714_vm6, %v1716_v19, %v1712_v21 }
 0xc8a   :  { %v1722_v45 = vsub.f32 1.0, %v1717_v22  ;;  %v1724_v33 = vmul.f32 %v1717_v22, %v4874_v44 }
 0xc8c   :  { %v1723_v24 = vmul.f32 %v4095_v23, %v1722_v45 }
 0xc8e   :  { %v4991_v25 = vadd.f32 %v1724_v33, %v1723_v24 }
 0xc90   :  { %v4995_v30 = vpack.c.bf16 %v4991_v25, %v4991_v25 }
 0xc92   :  { %3866 = vmatmul.msk.bf16.vlgmr.msra.gmra.mxu1 %vm204_vm1, %v4995_v30 }
 0xc93   :  { %1935 = vmatpush.bf16.msra.mxu1 %v4716_v57 }
 0xd0f   :  { %v1739_v26 = vpop.f32.mrf.mxu1 }
 0xd10   :  { %v1743_v28 = vpack.c.bf16 %v1739_v26, %v1739_v26 }
 0xd12   :  { %v1745_v29 = vrot.slane %v1743_v28, 3 }
 0xd14   :  { %v1748_v52 = vsel %vm444_vm10, %v1743_v28, %v1745_v29  ;;  %v1750_v41 = vsel %vm449_vm11, %v1743_v28, %v1745_v29 }
 0xd15   :  { %v1752_v43 = vrot.slane %v1750_v41, 1  ;;  %v1754_v44 = vunpack.i.h.s16 %v1748_v52  ;;  %v3867_v40 = vpack.i.b16 %v1748_v52, %v1748_v52 }
 0xd17   :  { %v1756_v1 = vunpack.i.h.s16 %v1752_v43  ;;  %v1758_v47 = vperm.slane %v3867_v40, 0  ;;  %v1775_v50 = vpack.i.b16 %v1754_v44, %v1754_v44  ;;  %v3870_v6 = vpack.i.b16 %v1752_v43, %v1752_v43  ;;  %v1741_v2 = vpop.f32.mrf.mxu1 }
 0xd19   :  { %v1776_v51 = vperm.slane %v1775_v50, 0  ;;  %v1794_v3 = vperm.slane %v3870_v6, 0  ;;  %v1811_v10 = vpack.i.b16 %v1756_v1, %v1756_v1  ;;  %3868 = vmatmul.msk.bf16.vlgmr.msra.gmra.mxu2 %vm204_vm1, %v1758_v47 }
 0xd1a   :  { %1951 = vmatpush.bf16.msra.mxu2 %v5003_v63 }
 0xd1b   :  { %v1812_v53 = vperm.slane %v1811_v10, 0  ;;  %3869 = vmatmul.msk.bf16.vlgmr.msra.gmra.mxu3 %vm204_vm1, %v1776_v51  ;;  %3871 = vmatmul.msk.bf16.vlgmr.msrb.gmra.mxu0 %vm204_vm1, %v1794_v3 }
 0xd1c   :  { %1982 = vmatpush.bf16.msra.mxu3 %v5011_v14  ;;  %2017 = vmatpush.bf16.msrb.mxu0 %v4890_v36 }
 0xd1d   :  { %3872 = vmatmul.msk.bf16.vlgmr.msrb.gmra.mxu1 %vm204_vm1, %v1812_v53 }
 0xd1e   :  { %1952 = vmatpush.bf16.msra.mxu2 %v5016_v16  ;;  %2033 = vmatpush.bf16.msrb.mxu1 %v4895_v32 }
 0xd20   :  { %1983 = vmatpush.bf16.msra.mxu3 %v5023_v20  ;;  %2018 = vmatpush.bf16.msrb.mxu0 %v4899_v46 }
 0xd22   :  { %2034 = vmatpush.bf16.msrb.mxu1 %v4902_v34 }
 0xd98   :  { %v1807_v59 = vpop.f32.mrf.mxu0 }
 0xd99   :  { %v1835_v60 = vsel %vm541_vm12, %v1807_v59, -inf }
 0xd9a   :  { %1836 = vmax.xlane.f32.xlu2 %v1835_v60  ;;  %v1825_v61 = vpop.f32.mrf.mxu1 }
 0xd9b   :  { %v1838_v22 = vsel %vm541_vm12, %v1825_v61, -inf }
 0xd9c   :  { %v1771_v49 = vpop.f32.mrf.mxu2 }
 0xd9d   :  { %v1829_v0 = vsel %vm541_vm12, %v1771_v49, -inf }
 0xd9e   :  { %1830 = vmax.xlane.f32.xlu1 %v1829_v0  ;;  %v1789_v5 = vpop.f32.mrf.mxu3 }
 0xd9f   :  { %v1832_v17 = vsel %vm541_vm12, %v1789_v5, -inf }
 0xda0   :  { %v1809_v18 = vpop.f32.mrf.mxu0  ;;  %1833 = vmax.xlane.f32.xlu0 %v1832_v17 }
 0xda2   :  { %v1827_v31 = vpop.f32.mrf.mxu1 }
 0xda4   :  { %v1773_v19 = vpop.f32.mrf.mxu2 }
 0xda6   :  { %v1791_v21 = vpop.f32.mrf.mxu3 }
 0xda8   :  { %1839 = vmax.xlane.f32.xlu0 %v1838_v22 }
 0xe0d   :  { %v1837_v45 = vpop.xlane.xlu2 %1836 }
 0xe0e   :  { %v1843_v23 = vsub.f32 %v1807_v59, %v1837_v45 }
 0xe10   :  { %v1849_v24 = vmul.f32 1.442695, %v1843_v23 }
 0xe11   :  { %v1831_v33 = vpop.xlane.xlu1 %1830 }
 0xe12   :  { %4096 = vpow2.f32 %v1849_v24  ;;  %v1841_v26 = vsub.f32 %v1771_v49, %v1831_v33 }
 0xe13   :  { %v1834_v28 = vpop.xlane.xlu0 %1833 }
 0xe14   :  { %v1845_v29 = vmul.f32 1.442695, %v1841_v26  ;;  %v1842_v52 = vsub.f32 %v1789_v5, %v1834_v28 }
 0xe16   :  { %4098 = vpow2.f32 %v1845_v29  ;;  %v1847_v41 = vmul.f32 1.442695, %v1842_v52 }
 0xe18   :  { %v4097_v43 = vpop.eup %4096  ;;  %4100 = vpow2.f32 %v1847_v41 }
 0xe19   :  { %v1859_v44 = vsel %vm541_vm12, %v4097_v43, 0.0 }
 0xe1a   :  { %1860 = vadd.xlane.f32.xlu0 %v1859_v44 }
 0xe1b   :  { %v1840_v40 = vpop.xlane.xlu0 %1839 }
 0xe1c   :  { %v4099_v1 = vpop.eup %4098  ;;  %v1844_v47 = vsub.f32 %v1825_v61, %v1840_v40 }
 0xe1d   :  { %v1853_v50 = vsel %vm541_vm12, %v4099_v1, 0.0 }
 0xe1e   :  { %v4101_v6 = vpop.eup %4100  ;;  %v1851_v2 = vmul.f32 1.442695, %v1844_v47  ;;  %1854 = vadd.xlane.f32.xlu2 %v1853_v50 }
 0xe1f   :  { %v1856_v51 = vsel %vm541_vm12, %v4101_v6, 0.0 }
 0xe20   :  { %4102 = vpow2.f32 %v1851_v2  ;;  %1857 = vadd.xlane.f32.xlu1 %v1856_v51 }
 0xe26   :  { %v4103_v3 = vpop.eup %4102 }
 0xe27   :  { %v1862_v10 = vsel %vm541_vm12, %v4103_v3, 0.0 }
 0xe28   :  { %1863 = vadd.xlane.f32.xlu1 %v1862_v10 }
 0xe8d   :  { %v1861_v53 = vpop.xlane.xlu0 %1860 }
 0xe8e   :  { %4104 = vrcp.f32 %v1861_v53 }
 0xe91   :  { %v1855_v59 = vpop.xlane.xlu2 %1854 }
 0xe92   :  { %4106 = vrcp.f32 %v1855_v59 }
 0xe93   :  { %v1858_v60 = vpop.xlane.xlu1 %1857 }
 0xe94   :  { %v4105_v49 = vpop.eup %4104  ;;  %4108 = vrcp.f32 %v1858_v60 }
 0xe95   :  { %v1871_v61 = vmul.f32 %v4105_v49, %v4097_v43 }
 0xe97   :  { %v1875_v0 = vpack.c.bf16 %v1871_v61, %v1871_v61  ;;  %v1998_v26 = vrot.slane %v1871_v61, 6 }
 0xe98   :  { %v4107_v5 = vpop.eup %4106 }
 0xe99   :  { %v1869_v17 = vmul.f32 %v4107_v5, %v4099_v1  ;;  %3875 = vmatmul.msk.bf16.vlgmr.msra.gmra.mxu0 %vm590_vm14, %v1875_v0 }
 0xe9a   :  { %v4109_v18 = vpop.eup %4108  ;;  %2076 = vmatpush.bf16.msra.mxu0 %v4925_v27 }
 0xe9b   :  { %v1873_v31 = vpack.c.bf16 %v1869_v17, %v1869_v17  ;;  %v1870_v19 = vmul.f32 %v4109_v18, %v4101_v6  ;;  %v1864_v21 = vpop.xlane.xlu1 %1863 }
 0xe9c   :  { %4110 = vrcp.f32 %v1864_v21 }
 0xe9d   :  { %v1874_v22 = vpack.c.bf16 %v1870_v19, %v1870_v19  ;;  %3873 = vmatmul.msk.bf16.vlgmr.msrb.gmra.mxu2 %vm590_vm14, %v1873_v31  ;;  %v1996_v45 = vrot.slane %v1870_v19, 7 }
 0xe9e   :  { %2049 = vmatpush.bf16.msrb.mxu2 %v4914_v62  ;;  %2077 = vmatpush.bf16.msra.mxu0 %v4932_v13 }
 0xe9f   :  { %3874 = vmatmul.msk.bf16.vlgmr.msrb.gmra.mxu3 %vm590_vm14, %v1874_v22  ;;  %v1997_v24 = vsel %vm449_vm11, %v1996_v45, %v1869_v17 }
 0xea0   :  { %2063 = vmatpush.bf16.msrb.mxu3 %v4922_v54  ;;  %v1999_v52 = vsel %vm704_vm15, %v1998_v26, %v1997_v24 }
 0xea2   :  { %v4111_v23 = vpop.eup %4110  ;;  %2050 = vmatpush.bf16.msrb.mxu2 %v4917_v8 }
 0xea3   :  { %v1872_v33 = vmul.f32 %v4111_v23, %v4103_v3 }
 0xea4   :  { %2064 = vmatpush.bf16.msrb.mxu3 %v4929_v9 }
 0xea5   :  { %v1876_v28 = vpack.c.bf16 %v1872_v33, %v1872_v33  ;;  %v2000_v29 = vrot.slane %v1872_v33, 5 }
 0xea7   :  { %v2001_v41 = vsel %vm707_vm2, %v2000_v29, %v1999_v52  ;;  %3876 = vmatmul.msk.bf16.vlgmr.msra.gmra.mxu1 %vm590_vm14, %v1876_v28 }
 0xea8   :  { %3879 = vst.msk [vmem:[%s5438_s10 + $0xc] sm:$0xf] %vm752_vm3, %v2001_v41  ;;  %2089 = vmatpush.bf16.msra.mxu1 %v4944_v7  ;;  %v2007_v41 = vld [vmem:[#allocation4 + $0x10] sm:$0xf] }
 0xeac   :  { %2090 = vmatpush.bf16.msra.mxu1 %v4953_v42 }
 0xead   :  { %3877 = vmatmul.msk.bf16.vlgmr.msra.gmra.mxu2 %vm204_vm1, %v4995_v30 }
 0xeae   :  { %2153 = vmatpush.bf16.msra.mxu2 %v4950_v39 }
 0xeb2   :  { %2154 = vmatpush.bf16.msra.mxu2 %v4959_v12 }
 0xf16   :  { %v1921_v43 = vpop.f32.mrf.mxu0 }
 0xf17   :  { %v1943_v40 = vpack.c.bf16 %v1921_v43, %v1921_v43 }
 0xf19   :  { %v1964_v2 = vunpack.c.l.b16 %v1943_v40 }
 0xf1b   :  { %v1968_v49 = vrot.slane %v1964_v2, 6 }
 0xf1e   :  { %v1923_v44 = vpop.f32.mrf.mxu0 }
 0xf20   :  { %v1889_v1 = vpop.f32.mrf.mxu2 }
 0xf21   :  { %v1941_v50 = vpack.c.bf16 %v1889_v1, %v1889_v1 }
 0xf22   :  { %v1905_v47 = vpop.f32.mrf.mxu3 }
 0xf23   :  { %v1942_v6 = vpack.c.bf16 %v1905_v47, %v1905_v47  ;;  %v1962_v53 = vunpack.c.l.b16 %v1941_v50 }
 0xf24   :  { %v1937_v51 = vpop.f32.mrf.mxu1 }
 0xf25   :  { %v1963_v3 = vunpack.c.l.b16 %v1942_v6  ;;  %v1944_v10 = vpack.c.bf16 %v1937_v51, %v1937_v51 }
 0xf27   :  { %v1966_v59 = vrot.slane %v1963_v3, 7  ;;  %v1965_v60 = vunpack.c.l.b16 %v1944_v10 }
 0xf28   :  { %v1891_v61 = vpop.f32.mrf.mxu2 }
 0xf29   :  { %v1967_v0 = vsel %vm449_vm11, %v1966_v59, %v1962_v53  ;;  %v1970_v5 = vrot.slane %v1965_v60, 5  ;;  %v2026_v53 = vld [vmem:[#allocation4 + $0x30] sm:$0xf] }
 0xf2a   :  { %v1969_v17 = vsel %vm704_vm15, %v1968_v49, %v1967_v0  ;;  %v1907_v18 = vpop.f32.mrf.mxu3 }
 0xf2b   :  { %v1971_v31 = vsel %vm707_vm2, %v1970_v5, %v1969_v17 }
 0xf2c   :  { %v1972_v19 = vpack.c.b16 %v1971_v31, %v1971_v31  ;;  %v1939_v21 = vpop.f32.mrf.mxu1 }
 0xf2e   :  { %3878 = vmatmul.msk.bf16.vlgmr.msra.gmra.mxu3 %vm204_vm1, %v1972_v19 }
 0xf2f   :  { %2186 = vmatpush.bf16.xpose.msra.mxu3 %v4648_v48 }
 0xf30   :  { %v1954_v22 = vpop.f32.mrf.mxu2 }
 0xf38   :  { %v1956_v45 = vpop.f32.mrf.mxu2 }
 0xf3e   :  { %3883 = vmatmul.msk.bf16.vlgmr.msrb.gmra.mxu3 %vm204_vm1, %v4995_v30 }
 0xf3f   :  { %2304 = vmatpush.bf16.msrb.mxu3 %v4712_v56 }
 0xfb1   :  { %v1985_v23 = vpop.f32.mrf.mxu3 }
 0xfb2   :  { %v1986_v24 = vadd.f32 %v1985_v23, %v1954_v22 }
 0xfb4   :  { %4112 = vtanh.f32 %v1986_v24 }
 0xfb9   :  { %v1987_v33 = vpop.f32.mrf.mxu3 }
 0xfba   :  { %v4113_v26 = vpop.eup %4112 }
 0xfbb   :  { %1991 = vst.msk [vmem:[#allocation15 + $0xc] sm:$0xf] %vm135_vm0, %v4113_v26  ;;  %v2005_v28 = vpack.c.bf16 %v4113_v26, %v4113_v26 }
 0xfbd   :  { %3880 = vmatmul.msk.bf16.vlgmr.msrb.gmra.mxu0 %vm204_vm1, %v2005_v28  ;;  %3881 = vmatmul.msk.bf16.vlgmr.msrb.gmra.mxu1 %vm204_vm1, %v2005_v28 }
 0xfbe   :  { %3882 = vmatmul.msk.bf16.vlgmr.msrb.gmra.mxu2 %vm204_vm1, %v2005_v28  ;;  %2204 = vmatpush.bf16.xpose.msrb.mxu0 %v4675_v15 }
 0xfbf   :  { %2240 = vmatpush.bf16.xpose.msrb.mxu2 %v4690_v37  ;;  %2222 = vmatpush.bf16.xpose.msrb.mxu1 %v4679_v35 }
 0xfc1   :  { %v2066_v29 = vpop.f32.mrf.mxu3 }
 0xfc2   :  { %v2067_v40 = vadd.f32 %v4983_v38, %v2066_v29 }
 0xfc9   :  { %v2068_v52 = vpop.f32.mrf.mxu3 }
 0xfcd   :  { %3884 = vmatmul.msk.bf16.vlgmr.msra.gmra.mxu0 %vm204_vm1, %v4995_v30  ;;  %3885 = vmatmul.msk.bf16.vlgmr.msra.gmra.mxu1 %vm204_vm1, %v4995_v30 }
 0xfce   :  { %2320 = vmatpush.bf16.msra.mxu0 %v4708_v55  ;;  %2336 = vmatpush.bf16.msra.mxu1 %v4721_v58 }
0x103a   :  { %v2020_v43 = vpop.f32.mrf.mxu0  ;;  %v2036_v44 = vpop.f32.mrf.mxu1 }
0x103b   :  { %v2024_v1 = vadd.f32 %v2020_v43, %v2007_v41  ;;  %v2040_v49 = vadd.f32 %v2036_v44, %v2026_v53  ;;  %v2042_v41 = vld [vmem:[#allocation4 + $0x50] sm:$0xf] }
0x103d   :  { %v2096_v47 = vadd.f32 %v2067_v40, %v2024_v1 }
0x103f   :  { %v3886_v50 = vmul.f32 -1.442695, %v2096_v47 }
0x1041   :  { %4114 = vpow2.f32 %v3886_v50  ;;  %v2052_v6 = vpop.f32.mrf.mxu2 }
0x1042   :  { %v2022_v2 = vpop.f32.mrf.mxu0  ;;  %v2038_v51 = vpop.f32.mrf.mxu1  ;;  %v2056_v40 = vadd.f32 %v2052_v6, %v2042_v41 }
0x1047   :  { %v4115_v3 = vpop.eup %4114 }
0x1048   :  { %v2100_v10 = vadd.f32 1.0, %v4115_v3 }
0x1049   :  { %v2054_v30 = vpop.f32.mrf.mxu2 }
0x104a   :  { %4116 = vrcp.f32 %v2100_v10  ;;  %v2079_v59 = vpop.f32.mrf.mxu0  ;;  %v2092_v60 = vpop.f32.mrf.mxu1  ;;  %v2112_v45 = vand.u32 2147483648, %v2100_v10  ;;  %v2110_v23 = vand.u32 2147483647, %v2100_v10  ;;  %vm2106_vm8 = vweird.f32 %v2100_v10 }
0x104b   :  { %v2080_v61 = vadd.f32 %v4869_v11, %v2079_v59  ;;  %v2093_v52 = vadd.f32 %v4987_v4, %v2092_v60 }
0x104c   :  { %v2113_v29 = vor.u32 1.1754944e-38, %v2112_v45  ;;  %vm2111_vm13 = vcmp.eq.f32.partialorder %v2110_v23, 8.507059e+37 }
0x104d   :  { %v2116_v0 = vadd.f32 %v2080_v61, %v2040_v49 }
0x104f   :  { %v3887_v5 = vmul.f32 -1.442695, %v2116_v0 }
0x1050   :  { %v4117_v17 = vpop.eup %4116 }
0x1051   :  { %4118 = vpow2.f32 %v3887_v5  ;;  %v2102_v18 = vmul.f32 %v4117_v17, %v2100_v10  ;;  %vm2107_vm7 = vweird.f32 %v4117_v17 }
0x1052   :  { %v2081_v31 = vpop.f32.mrf.mxu0  ;;  %v2094_v19 = vpop.f32.mrf.mxu1  ;;  %vm2108_vm9 = vmor %vm2106_vm8, %vm2107_vm7 }
0x1053   :  { %v2103_v21 = vsub.f32 1.0, %v2102_v18 }
0x1055   :  { %v2104_v22 = vmul.f32 %v4117_v17, %v2103_v21 }
0x1057   :  { %v4119_v24 = vpop.eup %4118  ;;  %v2105_v33 = vadd.f32 %v4117_v17, %v2104_v22 }
0x1058   :  { %v2120_v26 = vadd.f32 1.0, %v4119_v24 }
0x1059   :  { %v2109_v28 = vsel %vm2108_vm9, %v4117_v17, %v2105_v33 }
0x105a   :  { %4120 = vrcp.f32 %v2120_v26  ;;  %v2114_v11 = vsel %vm2111_vm13, %v2113_v29, %v2109_v28  ;;  %v2132_v2 = vand.u32 2147483648, %v2120_v26  ;;  %v2130_v3 = vand.u32 2147483647, %v2120_v26 }
0x105b   :  { %v2136_v43 = vmul.f32 %v2114_v11, %v2093_v52  ;;  %vm2126_vm5 = vweird.f32 %v2120_v26 }
0x105c   :  { %v2133_v53 = vor.u32 1.1754944e-38, %v2132_v2  ;;  %vm2131_vm7 = vcmp.eq.f32.partialorder %v2130_v3, 8.507059e+37 }
0x105d   :  { %v2137_v47 = vadd.f32 %v2136_v43, %v2056_v40 }
0x105f   :  { %4122 = vtanh.f32 %v2137_v47 }
0x1060   :  { %v4121_v44 = vpop.eup %4120 }
0x1061   :  { %v2122_v1 = vmul.f32 %v4121_v44, %v2120_v26  ;;  %vm2127_vm4 = vweird.f32 %v4121_v44 }
0x1062   :  { %vm2128_vm6 = vmor %vm2126_vm5, %vm2127_vm4 }
0x1063   :  { %v2123_v50 = vsub.f32 1.0, %v2122_v1 }
0x1065   :  { %v2124_v51 = vmul.f32 %v4121_v44, %v2123_v50  ;;  %v4123_v49 = vpop.eup %4122 }
0x1067   :  { %v2125_v10 = vadd.f32 %v4121_v44, %v2124_v51 }
0x1069   :  { %v2129_v30 = vsel %vm2128_vm6, %v4121_v44, %v2125_v10 }
0x106a   :  { %v2134_v59 = vsel %vm2131_vm7, %v2133_v53, %v2129_v30 }
0x106b   :  { %v2139_v60 = vsub.f32 1.0, %v2134_v59  ;;  %v2141_v6 = vmul.f32 %v2134_v59, %v4991_v25 }
0x106d   :  { %v2140_v61 = vmul.f32 %v4123_v49, %v2139_v60 }
0x106f   :  { %v5084_v0 = vadd.f32 %v2141_v6, %v2140_v61 }
0x1071   :  { %v5088_v5 = vpack.c.bf16 %v5084_v0, %v5084_v0 }
0x1073   :  { %3888 = vmatmul.msk.bf16.vlgmr.msra.gmra.mxu2 %vm204_vm1, %v5088_v5 }
0x1074   :  { %2352 = vmatpush.bf16.msra.mxu2 %v4716_v57 }
0x10f6   :  { %v2156_v17 = vpop.f32.mrf.mxu2 }
0x10f7   :  { %v2160_v18 = vpack.c.bf16 %v2156_v17, %v2156_v17 }
0x10f9   :  { %v2162_v31 = vrot.slane %v2160_v18, 3 }
0x10fb   :  { %v2165_v19 = vsel %vm444_vm10, %v2160_v18, %v2162_v31  ;;  %v2167_v21 = vsel %vm449_vm11, %v2160_v18, %v2162_v31 }
0x10fc   :  { %v2169_v22 = vrot.slane %v2167_v21, 1  ;;  %v2171_v25 = vunpack.i.h.s16 %v2165_v19  ;;  %v3889_v45 = vpack.i.b16 %v2165_v19, %v2165_v19 }
0x10fe   :  { %v2173_v23 = vunpack.i.h.s16 %v2169_v22  ;;  %v2175_v24 = vperm.slane %v3889_v45, 0  ;;  %v2192_v33 = vpack.i.b16 %v2171_v25, %v2171_v25  ;;  %v3892_v26 = vpack.i.b16 %v2169_v22, %v2169_v22  ;;  %v2158_v28 = vpop.f32.mrf.mxu2 }
0x1100   :  { %v2193_v29 = vperm.slane %v2192_v33, 0  ;;  %v2211_v11 = vperm.slane %v3892_v26, 0  ;;  %v2228_v52 = vpack.i.b16 %v2173_v23, %v2173_v23  ;;  %3890 = vmatmul.msk.bf16.vlgmr.msra.gmra.mxu3 %vm204_vm1, %v2175_v24 }
0x1101   :  { %2368 = vmatpush.bf16.msra.mxu3 %v5003_v63 }
0x1102   :  { %v2229_v41 = vperm.slane %v2228_v52, 0  ;;  %3891 = vmatmul.msk.bf16.vlgmr.msrb.gmra.mxu0 %vm204_vm1, %v2193_v29  ;;  %3893 = vmatmul.msk.bf16.vlgmr.msrb.gmra.mxu1 %vm204_vm1, %v2211_v11 }
0x1103   :  { %2399 = vmatpush.bf16.msrb.mxu0 %v5011_v14  ;;  %2434 = vmatpush.bf16.msrb.mxu1 %v4890_v36 }
0x1104   :  { %3894 = vmatmul.msk.bf16.vlgmr.msrb.gmra.mxu2 %vm204_vm1, %v2229_v41 }
0x1105   :  { %2369 = vmatpush.bf16.msra.mxu3 %v5016_v16  ;;  %2450 = vmatpush.bf16.msrb.mxu2 %v4895_v32 }
0x1107   :  { %2400 = vmatpush.bf16.msrb.mxu0 %v5023_v20  ;;  %2435 = vmatpush.bf16.msrb.mxu1 %v4899_v46 }
0x1109   :  { %2451 = vmatpush.bf16.msrb.mxu2 %v4902_v34 }
0x117f   :  { %v2206_v43 = vpop.f32.mrf.mxu0  ;;  %v2224_v44 = vpop.f32.mrf.mxu1 }
0x1180   :  { %v2249_v40 = vsel %vm541_vm12, %v2206_v43, -inf  ;;  %v2252_v46 = vsel %vm541_vm12, %v2224_v44, -inf }
0x1181   :  { %2250 = vmax.xlane.f32.xlu1 %v2249_v40 }
0x1183   :  { %v2188_v1 = vpop.f32.mrf.mxu3 }
0x1184   :  { %v2246_v36 = vsel %vm541_vm12, %v2188_v1, -inf }
0x1185   :  { %2247 = vmax.xlane.f32.xlu2 %v2246_v36 }
0x1187   :  { %v2208_v47 = vpop.f32.mrf.mxu0  ;;  %v2226_v50 = vpop.f32.mrf.mxu1 }
0x1188   :  { %v2242_v2 = vpop.f32.mrf.mxu2 }
0x1189   :  { %v2255_v32 = vsel %vm541_vm12, %v2242_v2, -inf }
0x118a   :  { %2256 = vmax.xlane.f32.xlu0 %v2255_v32 }
0x118b   :  { %v2190_v51 = vpop.f32.mrf.mxu3 }
0x118d   :  { %2253 = vmax.xlane.f32.xlu2 %v2252_v46 }
0x1190   :  { %v2244_v34 = vpop.f32.mrf.mxu2 }
0x11f4   :  { %v2251_v3 = vpop.xlane.xlu1 %2250 }
0x11f5   :  { %v2259_v10 = vsub.f32 %v2206_v43, %v2251_v3 }
0x11f7   :  { %v2264_v53 = vmul.f32 1.442695, %v2259_v10 }
0x11f8   :  { %v2248_v30 = vpop.xlane.xlu2 %2247 }
0x11f9   :  { %4124 = vpow2.f32 %v2264_v53  ;;  %v2258_v59 = vsub.f32 %v2188_v1, %v2248_v30 }
0x11fb   :  { %v2262_v60 = vmul.f32 1.442695, %v2258_v59 }
0x11fd   :  { %4126 = vpow2.f32 %v2262_v60  ;;  %v2257_v49 = vpop.xlane.xlu0 %2256 }
0x11fe   :  { %v2261_v61 = vsub.f32 %v2242_v2, %v2257_v49 }
0x11ff   :  { %v4125_v6 = vpop.eup %4124 }
0x1200   :  { %v2268_v17 = vmul.f32 1.442695, %v2261_v61  ;;  %v2254_v18 = vpop.xlane.xlu2 %2253  ;;  %v2273_v31 = vsel %vm541_vm12, %v4125_v6, 0.0 }
0x1201   :  { %v2260_v19 = vsub.f32 %v2224_v44, %v2254_v18  ;;  %2274 = vadd.xlane.f32.xlu2 %v2273_v31 }
0x1202   :  { %4128 = vpow2.f32 %v2268_v17 }
0x1203   :  { %v4127_v21 = vpop.eup %4126  ;;  %v2266_v22 = vmul.f32 1.442695, %v2260_v19 }
0x1204   :  { %v2270_v25 = vsel %vm541_vm12, %v4127_v21, 0.0 }
0x1205   :  { %4130 = vpow2.f32 %v2266_v22  ;;  %2271 = vadd.xlane.f32.xlu0 %v2270_v25 }
0x1208   :  { %v4129_v45 = vpop.eup %4128 }
0x1209   :  { %v2279_v23 = vsel %vm541_vm12, %v4129_v45, 0.0 }
0x120a   :  { %2280 = vadd.xlane.f32.xlu1 %v2279_v23 }
0x120b   :  { %v4131_v24 = vpop.eup %4130 }
0x120c   :  { %v2276_v33 = vsel %vm541_vm12, %v4131_v24, 0.0 }
0x120d   :  { %2277 = vadd.xlane.f32.xlu0 %v2276_v33 }
0x1274   :  { %v2275_v26 = vpop.xlane.xlu2 %2274 }
0x1275   :  { %4132 = vrcp.f32 %v2275_v26 }
0x1278   :  { %v2272_v28 = vpop.xlane.xlu0 %2271 }
0x1279   :  { %4134 = vrcp.f32 %v2272_v28 }
0x127b   :  { %v4133_v29 = vpop.eup %4132 }
0x127c   :  { %v2287_v11 = vmul.f32 %v4133_v29, %v4125_v6 }
0x127d   :  { %v2281_v52 = vpop.xlane.xlu1 %2280 }
0x127e   :  { %v2291_v41 = vpack.c.bf16 %v2287_v11, %v2287_v11  ;;  %4136 = vrcp.f32 %v2281_v52  ;;  %v2413_v51 = vrot.slane %v2287_v11, 7 }
0x127f   :  { %v4135_v43 = vpop.eup %4134 }
0x1280   :  { %v2286_v44 = vmul.f32 %v4135_v43, %v4127_v21  ;;  %3896 = vmatmul.msk.bf16.vlgmr.msra.gmra.mxu0 %vm590_vm14, %v2291_v41  ;;  %v2278_v40 = vpop.xlane.xlu0 %2277  ;;  %v2424_v43 = vld [vmem:[#allocation4 + $0x14] sm:$0xf] }
0x1281   :  { %4138 = vrcp.f32 %v2278_v40  ;;  %2480 = vmatpush.bf16.msra.mxu0 %v4922_v54 }
0x1282   :  { %v2290_v1 = vpack.c.bf16 %v2286_v44, %v2286_v44  ;;  %v2414_v54 = vsel %vm449_vm11, %v2413_v51, %v2286_v44 }
0x1284   :  { %v4137_v36 = vpop.eup %4136  ;;  %3895 = vmatmul.msk.bf16.vlgmr.msrb.gmra.mxu3 %vm590_vm14, %v2290_v1 }
0x1285   :  { %v2289_v47 = vmul.f32 %v4137_v36, %v4129_v45  ;;  %2481 = vmatpush.bf16.msra.mxu0 %v4929_v9  ;;  %2466 = vmatpush.bf16.msrb.mxu3 %v4914_v62 }
0x1287   :  { %v4139_v50 = vpop.eup %4138  ;;  %v2293_v2 = vpack.c.bf16 %v2289_v47, %v2289_v47  ;;  %v2417_v3 = vrot.slane %v2289_v47, 5 }
0x1288   :  { %v2288_v32 = vmul.f32 %v4139_v50, %v4131_v24 }
0x1289   :  { %3898 = vmatmul.msk.bf16.vlgmr.msra.gmra.mxu2 %vm590_vm14, %v2293_v2  ;;  %2467 = vmatpush.bf16.msrb.mxu3 %v4917_v8 }
0x128a   :  { %v2292_v46 = vpack.c.bf16 %v2288_v32, %v2288_v32  ;;  %v2415_v34 = vrot.slane %v2288_v32, 6  ;;  %2506 = vmatpush.bf16.msra.mxu2 %v4944_v7 }
0x128c   :  { %v2416_v10 = vsel %vm704_vm15, %v2415_v34, %v2414_v54  ;;  %3897 = vmatmul.msk.bf16.vlgmr.msra.gmra.mxu1 %vm590_vm14, %v2292_v46  ;;  %v2443_v34 = vld [vmem:[#allocation4 + $0x34] sm:$0xf] }
0x128d   :  { %v2418_v62 = vsel %vm707_vm2, %v2417_v3, %v2416_v10  ;;  %2493 = vmatpush.bf16.msra.mxu1 %v4925_v27 }
0x128e   :  { %3901 = vst.msk [vmem:[%s5438_s10 + $0x10] sm:$0xf] %vm752_vm3, %v2418_v62  ;;  %2507 = vmatpush.bf16.msra.mxu2 %v4953_v42  ;;  %v5160_v62 = vld [vmem:[#allocation12 + $0x1] ss:$0 sm:$0xff] }
0x1291   :  { %2494 = vmatpush.bf16.msra.mxu1 %v4932_v13 }
0x1294   :  { %3899 = vmatmul.msk.bf16.vlgmr.msra.gmra.mxu3 %vm204_vm1, %v5088_v5 }
0x1295   :  { %2570 = vmatpush.bf16.msra.mxu3 %v4950_v39 }
0x1299   :  { %2571 = vmatpush.bf16.msra.mxu3 %v4959_v12 }
0x12fd   :  { %v2322_v8 = vpop.f32.mrf.mxu0 }
0x12fe   :  { %v2359_v9 = vpack.c.bf16 %v2322_v8, %v2322_v8 }
0x1300   :  { %v2380_v30 = vunpack.c.l.b16 %v2359_v9 }
0x1302   :  { %v2383_v6 = vrot.slane %v2380_v30, 7 }
0x1305   :  { %v2324_v7 = vpop.f32.mrf.mxu0 }
0x1307   :  { %v2306_v27 = vpop.f32.mrf.mxu3 }
0x1308   :  { %v2358_v53 = vpack.c.bf16 %v2306_v27, %v2306_v27 }
0x1309   :  { %v2338_v59 = vpop.f32.mrf.mxu1 }
0x130a   :  { %v2360_v60 = vpack.c.bf16 %v2338_v59, %v2338_v59  ;;  %v2379_v49 = vunpack.c.l.b16 %v2358_v53 }
0x130c   :  { %v2381_v61 = vunpack.c.l.b16 %v2360_v60  ;;  %v2354_v42 = vpop.f32.mrf.mxu2  ;;  %v2384_v18 = vsel %vm449_vm11, %v2383_v6, %v2379_v49 }
0x130d   :  { %v2361_v13 = vpack.c.bf16 %v2354_v42, %v2354_v42 }
0x130e   :  { %v2385_v17 = vrot.slane %v2381_v61, 6 }
0x130f   :  { %v2382_v31 = vunpack.c.l.b16 %v2361_v13  ;;  %v2308_v39 = vpop.f32.mrf.mxu3 }
0x1310   :  { %v2386_v12 = vsel %vm704_vm15, %v2385_v17, %v2384_v18 }
0x1311   :  { %v2387_v19 = vrot.slane %v2382_v31, 5  ;;  %v2340_v21 = vpop.f32.mrf.mxu1 }
0x1313   :  { %v2388_v22 = vsel %vm707_vm2, %v2387_v19, %v2386_v12  ;;  %v2459_v19 = vld [vmem:[#allocation4 + $0x54] sm:$0xf] }
0x1314   :  { %v2389_v25 = vpack.c.b16 %v2388_v22, %v2388_v22  ;;  %v2356_v45 = vpop.f32.mrf.mxu2 }
0x1316   :  { %3900 = vmatmul.msk.bf16.vlgmr.msrb.gmra.mxu0 %vm204_vm1, %v2389_v25 }
0x1317   :  { %v2371_v23 = vpop.f32.mrf.mxu3  ;;  %2603 = vmatpush.bf16.xpose.msrb.mxu0 %v4648_v48 }
0x131f   :  { %v2373_v24 = vpop.f32.mrf.mxu3 }
0x1326   :  { %3905 = vmatmul.msk.bf16.vlgmr.msra.gmra.mxu0 %vm204_vm1, %v5088_v5 }
0x1327   :  { %2721 = vmatpush.bf16.msra.mxu0 %v4712_v56 }
0x1393   :  { %v2402_v33 = vpop.f32.mrf.mxu0 }
0x1394   :  { %v2403_v26 = vadd.f32 %v2402_v33, %v2371_v23 }
0x1396   :  { %4140 = vtanh.f32 %v2403_v26 }
0x139b   :  { %v2404_v28 = vpop.f32.mrf.mxu0 }
0x139c   :  { %v4141_v29 = vpop.eup %4140 }
0x139d   :  { %2408 = vst.msk [vmem:[#allocation15 + $0x10] sm:$0xf] %vm135_vm0, %v4141_v29  ;;  %v2422_v11 = vpack.c.bf16 %v4141_v29, %v4141_v29 }
0x139f   :  { %3902 = vmatmul.msk.bf16.vlgmr.msrb.gmra.mxu1 %vm204_vm1, %v2422_v11  ;;  %3903 = vmatmul.msk.bf16.vlgmr.msrb.gmra.mxu2 %vm204_vm1, %v2422_v11 }
0x13a0   :  { %3904 = vmatmul.msk.bf16.vlgmr.msrb.gmra.mxu3 %vm204_vm1, %v2422_v11  ;;  %2639 = vmatpush.bf16.xpose.msrb.mxu2 %v4679_v35 }
0x13a1   :  { %2657 = vmatpush.bf16.xpose.msrb.mxu3 %v4690_v37  ;;  %2621 = vmatpush.bf16.xpose.msrb.mxu1 %v4675_v15 }
0x13a3   :  { %v2483_v52 = vpop.f32.mrf.mxu0 }
0x13a4   :  { %v2484_v40 = vadd.f32 %v4983_v38, %v2483_v52 }
0x13ab   :  { %v2485_v41 = vpop.f32.mrf.mxu0 }
0x13af   :  { %3906 = vmatmul.msk.bf16.vlgmr.msra.gmra.mxu1 %vm204_vm1, %v5088_v5  ;;  %3907 = vmatmul.msk.bf16.vlgmr.msra.gmra.mxu2 %vm204_vm1, %v5088_v5 }
0x13b0   :  { %2753 = vmatpush.bf16.msra.mxu2 %v4721_v58  ;;  %2737 = vmatpush.bf16.msra.mxu1 %v4708_v55 }
0x141c   :  { %v2437_v44 = vpop.f32.mrf.mxu1 }
0x141d   :  { %v2441_v1 = vadd.f32 %v2437_v44, %v2424_v43 }
0x141f   :  { %v2513_v36 = vadd.f32 %v2484_v40, %v2441_v1 }
0x1421   :  { %v3908_v47 = vmul.f32 -1.442695, %v2513_v36 }
0x1422   :  { %v2453_v50 = vpop.f32.mrf.mxu2 }
0x1423   :  { %4142 = vpow2.f32 %v3908_v47  ;;  %v2469_v2 = vpop.f32.mrf.mxu3  ;;  %v2457_v10 = vadd.f32 %v2453_v50, %v2443_v34 }
0x1424   :  { %v2439_v32 = vpop.f32.mrf.mxu1  ;;  %v2473_v25 = vadd.f32 %v2469_v2, %v2459_v19 }
0x1429   :  { %v4143_v51 = vpop.eup %4142 }
0x142a   :  { %v2517_v46 = vadd.f32 1.0, %v4143_v51  ;;  %v2455_v54 = vpop.f32.mrf.mxu2 }
0x142b   :  { %v2471_v5 = vpop.f32.mrf.mxu3 }
0x142c   :  { %4144 = vrcp.f32 %v2517_v46  ;;  %v2496_v3 = vpop.f32.mrf.mxu1  ;;  %v2529_v49 = vand.u32 2147483648, %v2517_v46  ;;  %v2527_v61 = vand.u32 2147483647, %v2517_v46  ;;  %vm2523_vm9 = vweird.f32 %v2517_v46 }
0x142d   :  { %v2497_v8 = vadd.f32 %v5160_v62, %v2496_v3 }
0x142e   :  { %v2530_v31 = vor.u32 1.1754944e-38, %v2529_v49  ;;  %vm2528_vm4 = vcmp.eq.f32.partialorder %v2527_v61, 8.507059e+37 }
0x142f   :  { %v2533_v38 = vadd.f32 %v2497_v8, %v2457_v10 }
0x1431   :  { %v3909_v9 = vmul.f32 -1.442695, %v2533_v38 }
0x1432   :  { %v4145_v7 = vpop.eup %4144  ;;  %v2509_v27 = vpop.f32.mrf.mxu2 }
0x1433   :  { %4146 = vpow2.f32 %v3909_v9  ;;  %v2519_v53 = vmul.f32 %v4145_v7, %v2517_v46  ;;  %vm2524_vm8 = vweird.f32 %v4145_v7  ;;  %v2510_v12 = vadd.f32 %v4987_v4, %v2509_v27 }
0x1434   :  { %v2498_v30 = vpop.f32.mrf.mxu1  ;;  %vm2525_vm13 = vmor %vm2523_vm9, %vm2524_vm8 }
0x1435   :  { %v2520_v59 = vsub.f32 1.0, %v2519_v53  ;;  %v5181_v53 = vld [vmem:[#allocation9 + $0x8] sm:$0xff]  ;;  %v5186_v30 = vld [vmem:[#allocation9 + $0x18] sm:$0xff] }
0x1437   :  { %v2521_v60 = vmul.f32 %v4145_v7, %v2520_v59  ;;  %v5193_v59 = vld [vmem:[#allocation9 + $0x10] sm:$0xff] }
0x1439   :  { %v4147_v42 = vpop.eup %4146  ;;  %v2522_v6 = vadd.f32 %v4145_v7, %v2521_v60 }
0x143a   :  { %v2537_v13 = vadd.f32 1.0, %v4147_v42  ;;  %v2511_v17 = vpop.f32.mrf.mxu2 }
0x143b   :  { %v2526_v18 = vsel %vm2525_vm13, %v4145_v7, %v2522_v6 }
0x143c   :  { %4148 = vrcp.f32 %v2537_v13  ;;  %v2531_v39 = vsel %vm2528_vm4, %v2530_v31, %v2526_v18  ;;  %v2549_v33 = vand.u32 2147483648, %v2537_v13  ;;  %v2547_v28 = vand.u32 2147483647, %v2537_v13 }
0x143d   :  { %v2553_v21 = vmul.f32 %v2531_v39, %v2510_v12  ;;  %vm2543_vm6 = vweird.f32 %v2537_v13 }
0x143e   :  { %v2550_v11 = vor.u32 1.1754944e-38, %v2549_v33  ;;  %vm2548_vm8 = vcmp.eq.f32.partialorder %v2547_v28, 8.507059e+37 }
0x143f   :  { %v2554_v23 = vadd.f32 %v2553_v21, %v2473_v25 }
0x1441   :  { %4150 = vtanh.f32 %v2554_v23 }
0x1442   :  { %v4149_v22 = vpop.eup %4148 }
0x1443   :  { %v2539_v45 = vmul.f32 %v4149_v22, %v2537_v13  ;;  %vm2544_vm5 = vweird.f32 %v4149_v22 }
0x1444   :  { %vm2545_vm7 = vmor %vm2543_vm6, %vm2544_vm5 }
0x1445   :  { %v2540_v24 = vsub.f32 1.0, %v2539_v45 }
0x1447   :  { %v2541_v26 = vmul.f32 %v4149_v22, %v2540_v24  ;;  %v4151_v43 = vpop.eup %4150 }
0x1449   :  { %v2542_v29 = vadd.f32 %v4149_v22, %v2541_v26 }
0x144b   :  { %v2546_v52 = vsel %vm2545_vm7, %v4149_v22, %v2542_v29 }
0x144c   :  { %v2551_v41 = vsel %vm2548_vm8, %v2550_v11, %v2546_v52 }
0x144d   :  { %v2556_v4 = vsub.f32 1.0, %v2551_v41  ;;  %v2558_v40 = vmul.f32 %v2551_v41, %v5084_v0 }
0x144f   :  { %v2557_v44 = vmul.f32 %v4151_v43, %v2556_v4 }
0x1451   :  { %v5165_v1 = vadd.f32 %v2558_v40, %v2557_v44 }
0x1453   :  { %v5169_v36 = vpack.c.bf16 %v5165_v1, %v5165_v1 }
0x1455   :  { %3910 = vmatmul.msk.bf16.vlgmr.msra.gmra.mxu3 %vm204_vm1, %v5169_v36 }
0x1456   :  { %2769 = vmatpush.bf16.msra.mxu3 %v4716_v57 }
0x14d8   :  { %v2573_v47 = vpop.f32.mrf.mxu3 }
0x14d9   :  { %v2577_v50 = vpack.c.bf16 %v2573_v47, %v2573_v47 }
0x14db   :  { %v2579_v2 = vrot.slane %v2577_v50, 3 }
0x14dd   :  { %v2582_v32 = vsel %vm444_vm10, %v2577_v50, %v2579_v2  ;;  %v2584_v51 = vsel %vm449_vm11, %v2577_v50, %v2579_v2 }
0x14de   :  { %v2586_v46 = vrot.slane %v2584_v51, 1  ;;  %v2588_v0 = vunpack.i.h.s16 %v2582_v32  ;;  %v3911_v34 = vpack.i.b16 %v2582_v32, %v2582_v32 }
0x14e0   :  { %v2590_v54 = vunpack.i.h.s16 %v2586_v46  ;;  %v2592_v5 = vperm.slane %v3911_v34, 0  ;;  %v2609_v3 = vpack.i.b16 %v2588_v0, %v2588_v0  ;;  %v3914_v10 = vpack.i.b16 %v2586_v46, %v2586_v46  ;;  %v2575_v8 = vpop.f32.mrf.mxu3  ;;  %v5205_v34 = vld [vmem:[#allocation10 + $0x8] sm:$0xff] }
0x14e2   :  { %v2610_v38 = vperm.slane %v2609_v3, 0  ;;  %v2628_v9 = vperm.slane %v3914_v10, 0  ;;  %v2645_v7 = vpack.i.b16 %v2590_v54, %v2590_v54  ;;  %3912 = vmatmul.msk.bf16.vlgmr.msrb.gmra.mxu0 %vm204_vm1, %v2592_v5 }
0x14e3   :  { %2785 = vmatpush.bf16.msrb.mxu0 %v5003_v63  ;;  %v5190_v63 = vld [vmem:[#allocation9] sm:$0xff] }
0x14e4   :  { %v2646_v27 = vperm.slane %v2645_v7, 0  ;;  %3913 = vmatmul.msk.bf16.vlgmr.msrb.gmra.mxu1 %vm204_vm1, %v2610_v38  ;;  %3915 = vmatmul.msk.bf16.vlgmr.msrb.gmra.mxu2 %vm204_vm1, %v2628_v9  ;;  %v5208_v38 = vld [vmem:[#allocation10] sm:$0xff]  ;;  %v5212_v7 = vld [vmem:[#allocation10 + $0x18] sm:$0xff] }
0x14e5   :  { %2816 = vmatpush.bf16.msrb.mxu1 %v5011_v14  ;;  %2851 = vmatpush.bf16.msrb.mxu2 %v5181_v53 }
0x14e6   :  { %3916 = vmatmul.msk.bf16.vlgmr.msrb.gmra.mxu3 %vm204_vm1, %v2646_v27 }
0x14e7   :  { %2786 = vmatpush.bf16.msrb.mxu0 %v5016_v16  ;;  %2867 = vmatpush.bf16.msrb.mxu3 %v5186_v30 }
0x14e9   :  { %2817 = vmatpush.bf16.msrb.mxu1 %v5023_v20  ;;  %2852 = vmatpush.bf16.msrb.mxu2 %v5190_v63 }
0x14eb   :  { %2868 = vmatpush.bf16.msrb.mxu3 %v5193_v59 }
0x155f   :  { %v2605_v14 = vpop.f32.mrf.mxu0 }
0x1560   :  { %v2663_v18 = vsel %vm541_vm12, %v2605_v14, -inf }
0x1561   :  { %v2623_v60 = vpop.f32.mrf.mxu1 }
0x1562   :  { %v2666_v49 = vsel %vm541_vm12, %v2623_v60, -inf }
0x1563   :  { %2667 = vmax.xlane.f32.xlu0 %v2666_v49 }
0x1567   :  { %v2607_v16 = vpop.f32.mrf.mxu0  ;;  %v2641_v61 = vpop.f32.mrf.mxu2 }
0x1568   :  { %v2669_v42 = vsel %vm541_vm12, %v2641_v61, -inf }
0x1569   :  { %2670 = vmax.xlane.f32.xlu1 %v2669_v42  ;;  %v2625_v6 = vpop.f32.mrf.mxu1  ;;  %v2659_v20 = vpop.f32.mrf.mxu3 }
0x156a   :  { %v2672_v13 = vsel %vm541_vm12, %v2659_v20, -inf }
0x156b   :  { %2673 = vmax.xlane.f32.xlu2 %v2672_v13 }
0x156f   :  { %v2643_v17 = vpop.f32.mrf.mxu2 }
0x1570   :  { %v5224_v17 = vld [vmem:[#allocation10 + $0x20] sm:$0xff] }
0x1571   :  { %2664 = vmax.xlane.f32.xlu1 %v2663_v18  ;;  %v2661_v31 = vpop.f32.mrf.mxu3 }
0x1572   :  { %v5233_v31 = vld [vmem:[#allocation9 + $0x28] sm:$0xff] }
0x15d6   :  { %v2668_v39 = vpop.xlane.xlu0 %2667 }
0x15d7   :  { %v2676_v12 = vsub.f32 %v2623_v60, %v2668_v39  ;;  %v5236_v39 = vld [vmem:[#allocation9 + $0x20] sm:$0xff] }
0x15d9   :  { %v2681_v19 = vmul.f32 1.442695, %v2676_v12  ;;  %v5244_v12 = vld [vmem:[%s5434_s6 + $0x8] sm:$0xff] }
0x15db   :  { %4152 = vpow2.f32 %v2681_v19  ;;  %v5250_v19 = vld [vmem:[%s5434_s6] sm:$0xff] }
0x15dc   :  { %v2671_v21 = vpop.xlane.xlu1 %2670 }
0x15dd   :  { %v2677_v22 = vsub.f32 %v2641_v61, %v2671_v21  ;;  %v5219_v61 = vld [vmem:[#allocation10 + $0x10] sm:$0xff] }
0x15de   :  { %v2674_v25 = vpop.xlane.xlu2 %2673 }
0x15df   :  { %v2683_v45 = vmul.f32 1.442695, %v2677_v22  ;;  %v2678_v23 = vsub.f32 %v2659_v20, %v2674_v25 }
0x15e1   :  { %v4153_v24 = vpop.eup %4152  ;;  %4154 = vpow2.f32 %v2683_v45  ;;  %v2685_v33 = vmul.f32 1.442695, %v2678_v23 }
0x15e2   :  { %v2690_v26 = vsel %vm541_vm12, %v4153_v24, 0.0 }
0x15e3   :  { %4156 = vpow2.f32 %v2685_v33  ;;  %2691 = vadd.xlane.f32.xlu1 %v2690_v26 }
0x15e4   :  { %v2665_v28 = vpop.xlane.xlu1 %2664 }
0x15e5   :  { %v2675_v29 = vsub.f32 %v2605_v14, %v2665_v28  ;;  %v5216_v14 = vld [vmem:[#allocation10 + $0x28] sm:$0xff] }
0x15e7   :  { %v4155_v11 = vpop.eup %4154  ;;  %v2679_v52 = vmul.f32 1.442695, %v2675_v29 }
0x15e8   :  { %v2693_v41 = vsel %vm541_vm12, %v4155_v11, 0.0 }
0x15e9   :  { %v4157_v4 = vpop.eup %4156  ;;  %4158 = vpow2.f32 %v2679_v52  ;;  %2694 = vadd.xlane.f32.xlu2 %v2693_v41 }
0x15ea   :  { %v2696_v43 = vsel %vm541_vm12, %v4157_v4, 0.0 }
0x15eb   :  { %2697 = vadd.xlane.f32.xlu0 %v2696_v43 }
0x15ef   :  { %v4159_v44 = vpop.eup %4158 }
0x15f0   :  { %v2687_v40 = vsel %vm541_vm12, %v4159_v44, 0.0 }
0x15f1   :  { %2688 = vadd.xlane.f32.xlu2 %v2687_v40 }
0x1656   :  { %v2692_v47 = vpop.xlane.xlu1 %2691 }
0x1657   :  { %4160 = vrcp.f32 %v2692_v47 }
0x165c   :  { %v2695_v50 = vpop.xlane.xlu2 %2694 }
0x165d   :  { %v4161_v2 = vpop.eup %4160  ;;  %4162 = vrcp.f32 %v2695_v50 }
0x165e   :  { %v2704_v32 = vmul.f32 %v4161_v2, %v4153_v24  ;;  %v2698_v51 = vpop.xlane.xlu0 %2697 }
0x165f   :  { %4164 = vrcp.f32 %v2698_v51 }
0x1660   :  { %v2708_v46 = vpack.c.bf16 %v2704_v32, %v2704_v32  ;;  %v2830_v60 = vrot.slane %v2704_v32, 7 }
0x1662   :  { %3918 = vmatmul.msk.bf16.vlgmr.msra.gmra.mxu1 %vm590_vm14, %v2708_v46 }
0x1663   :  { %v4163_v0 = vpop.eup %4162  ;;  %2897 = vmatpush.bf16.msra.mxu1 %v5205_v34 }
0x1664   :  { %v2705_v54 = vmul.f32 %v4163_v0, %v4155_v11  ;;  %v2689_v5 = vpop.xlane.xlu2 %2688 }
0x1665   :  { %v4165_v3 = vpop.eup %4164  ;;  %4166 = vrcp.f32 %v2689_v5 }
0x1666   :  { %v2709_v10 = vpack.c.bf16 %v2705_v54, %v2705_v54  ;;  %v2706_v8 = vmul.f32 %v4165_v3, %v4157_v4  ;;  %v2832_v16 = vrot.slane %v2705_v54, 6 }
0x1667   :  { %2898 = vmatpush.bf16.msra.mxu1 %v5208_v38 }
0x1668   :  { %v2710_v9 = vpack.c.bf16 %v2706_v8, %v2706_v8  ;;  %3919 = vmatmul.msk.bf16.vlgmr.msra.gmra.mxu2 %vm590_vm14, %v2709_v10  ;;  %v2834_v42 = vrot.slane %v2706_v8, 5 }
0x1669   :  { %2910 = vmatpush.bf16.msra.mxu2 %v5212_v7 }
0x166a   :  { %3920 = vmatmul.msk.bf16.vlgmr.msra.gmra.mxu3 %vm590_vm14, %v2710_v9 }
0x166b   :  { %v4167_v27 = vpop.eup %4166  ;;  %2923 = vmatpush.bf16.msra.mxu3 %v5216_v14 }
0x166c   :  { %v2703_v49 = vmul.f32 %v4167_v27, %v4159_v44 }
0x166d   :  { %2911 = vmatpush.bf16.msra.mxu2 %v5219_v61 }
0x166e   :  { %v2707_v6 = vpack.c.bf16 %v2703_v49, %v2703_v49  ;;  %v2831_v20 = vsel %vm449_vm11, %v2830_v60, %v2703_v49 }
0x166f   :  { %v2833_v13 = vsel %vm704_vm15, %v2832_v16, %v2831_v20  ;;  %2924 = vmatpush.bf16.msra.mxu3 %v5224_v17  ;;  %v2841_v16 = vld [vmem:[#allocation4 + $0x18] sm:$0xf]  ;;  %v5274_v20 = vld [vmem:[#allocation12] ss:$0 sm:$0xff] }
0x1670   :  { %v2835_v18 = vsel %vm707_vm2, %v2834_v42, %v2833_v13  ;;  %3917 = vmatmul.msk.bf16.vlgmr.msra.gmra.mxu0 %vm590_vm14, %v2707_v6 }
0x1671   :  { %3923 = vst.msk [vmem:[%s5438_s10 + $0x14] sm:$0xf] %vm752_vm3, %v2835_v18  ;;  %2883 = vmatpush.bf16.msra.mxu0 %v5233_v31 }
0x1675   :  { %2884 = vmatpush.bf16.msra.mxu0 %v5236_v39 }
0x1680   :  { %3921 = vmatmul.msk.bf16.vlgmr.msrb.gmra.mxu0 %vm204_vm1, %v5169_v36 }
0x1681   :  { %2987 = vmatpush.bf16.msrb.mxu0 %v5244_v12 }
0x1685   :  { %2988 = vmatpush.bf16.msrb.mxu0 %v5250_v19 }
0x16df   :  { %v2739_v21 = vpop.f32.mrf.mxu1 }
0x16e0   :  { %v2776_v25 = vpack.c.bf16 %v2739_v21, %v2739_v21 }
0x16e2   :  { %v2797_v23 = vunpack.c.l.b16 %v2776_v25 }
0x16e4   :  { %v2800_v52 = vrot.slane %v2797_v23, 7 }
0x16e7   :  { %v2741_v22 = vpop.f32.mrf.mxu1 }
0x16eb   :  { %v2755_v45 = vpop.f32.mrf.mxu2 }
0x16ec   :  { %v2777_v24 = vpack.c.bf16 %v2755_v45, %v2755_v45 }
0x16ed   :  { %v2723_v33 = vpop.f32.mrf.mxu0  ;;  %v2771_v26 = vpop.f32.mrf.mxu3 }
0x16ee   :  { %v2798_v28 = vunpack.c.l.b16 %v2777_v24  ;;  %v2775_v29 = vpack.c.bf16 %v2723_v33, %v2723_v33  ;;  %v2778_v11 = vpack.c.bf16 %v2771_v26, %v2771_v26  ;;  %v2860_v33 = vld [vmem:[#allocation4 + $0x38] sm:$0xf] }
0x16f0   :  { %v2802_v41 = vrot.slane %v2798_v28, 6  ;;  %v2796_v4 = vunpack.c.l.b16 %v2775_v29  ;;  %v2799_v43 = vunpack.c.l.b16 %v2778_v11 }
0x16f2   :  { %v2801_v44 = vsel %vm449_vm11, %v2800_v52, %v2796_v4  ;;  %v2804_v40 = vrot.slane %v2799_v43, 5 }
0x16f3   :  { %v2803_v47 = vsel %vm704_vm15, %v2802_v41, %v2801_v44  ;;  %v2757_v50 = vpop.f32.mrf.mxu2 }
0x16f4   :  { %v2805_v2 = vsel %vm707_vm2, %v2804_v40, %v2803_v47 }
0x16f5   :  { %v2806_v32 = vpack.c.b16 %v2805_v2, %v2805_v2  ;;  %v2725_v51 = vpop.f32.mrf.mxu0  ;;  %v2773_v46 = vpop.f32.mrf.mxu3 }
0x16f7   :  { %3922 = vmatmul.msk.bf16.vlgmr.msrb.gmra.mxu1 %vm204_vm1, %v2806_v32 }
0x16f8   :  { %3020 = vmatpush.bf16.xpose.msrb.mxu1 %v4648_v48 }
0x16fd   :  { %v2788_v0 = vpop.f32.mrf.mxu0 }
0x1705   :  { %v2790_v54 = vpop.f32.mrf.mxu0 }
0x1707   :  { %3927 = vmatmul.msk.bf16.vlgmr.msra.gmra.mxu1 %vm204_vm1, %v5169_v36 }
0x1708   :  { %3138 = vmatpush.bf16.msra.mxu1 %v4712_v56 }
0x1774   :  { %v2819_v5 = vpop.f32.mrf.mxu1 }
0x1775   :  { %v2820_v3 = vadd.f32 %v2819_v5, %v2788_v0 }
0x1777   :  { %4168 = vtanh.f32 %v2820_v3 }
0x177c   :  { %v2821_v10 = vpop.f32.mrf.mxu1 }
0x177d   :  { %v4169_v8 = vpop.eup %4168  ;;  %v5278_v10 = vld [vmem:[#allocation12 + $0x2] ss:$0 sm:$0xff] }
0x177e   :  { %2825 = vst.msk [vmem:[#allocation15 + $0x14] sm:$0xf] %vm135_vm0, %v4169_v8  ;;  %v2839_v9 = vpack.c.bf16 %v4169_v8, %v4169_v8 }
0x1780   :  { %3924 = vmatmul.msk.bf16.vlgmr.msrb.gmra.mxu2 %vm204_vm1, %v2839_v9  ;;  %3925 = vmatmul.msk.bf16.vlgmr.msrb.gmra.mxu3 %vm204_vm1, %v2839_v9 }
0x1781   :  { %3926 = vmatmul.msk.bf16.vlgmr.msra.gmra.mxu0 %vm204_vm1, %v2839_v9  ;;  %3038 = vmatpush.bf16.xpose.msrb.mxu2 %v4675_v15  ;;  %v2876_v9 = vld [vmem:[#allocation4 + $0x58] sm:$0xf] }
0x1782   :  { %3056 = vmatpush.bf16.xpose.msrb.mxu3 %v4679_v35  ;;  %3074 = vmatpush.bf16.xpose.msra.mxu0 %v4690_v37 }
0x1784   :  { %v2900_v27 = vpop.f32.mrf.mxu1 }
0x1785   :  { %v2901_v13 = vadd.f32 %v5274_v20, %v2900_v27 }
0x178c   :  { %v2902_v60 = vpop.f32.mrf.mxu1 }
0x1790   :  { %3928 = vmatmul.msk.bf16.vlgmr.msra.gmra.mxu2 %vm204_vm1, %v5169_v36  ;;  %3929 = vmatmul.msk.bf16.vlgmr.msra.gmra.mxu3 %vm204_vm1, %v5169_v36 }
0x1791   :  { %3154 = vmatpush.bf16.msra.mxu2 %v4708_v55  ;;  %3170 = vmatpush.bf16.msra.mxu3 %v4721_v58 }
0x17fe   :  { %v2886_v49 = vpop.f32.mrf.mxu0 }
0x1803   :  { %v2854_v42 = vpop.f32.mrf.mxu2  ;;  %v2870_v6 = vpop.f32.mrf.mxu3 }
0x1804   :  { %v2858_v18 = vadd.f32 %v2854_v42, %v2841_v16  ;;  %v2874_v29 = vadd.f32 %v2870_v6, %v2860_v33  ;;  %v2890_v16 = vadd.f32 %v2886_v49, %v2876_v9  ;;  %v5307_v9 = vld [vmem:[#allocation13] sm:$0xff] }
0x1806   :  { %v2930_v21 = vadd.f32 %v2901_v13, %v2858_v18  ;;  %v2888_v22 = vpop.f32.mrf.mxu0 }
0x1808   :  { %v3930_v25 = vmul.f32 -1.442695, %v2930_v21 }
0x180a   :  { %4170 = vpow2.f32 %v3930_v25 }
0x180b   :  { %v2856_v45 = vpop.f32.mrf.mxu2  ;;  %v2872_v23 = vpop.f32.mrf.mxu3 }
0x1810   :  { %v4171_v36 = vpop.eup %4170 }
0x1811   :  { %v2934_v24 = vadd.f32 1.0, %v4171_v36 }
0x1813   :  { %4172 = vrcp.f32 %v2934_v24  ;;  %v2913_v26 = vpop.f32.mrf.mxu2  ;;  %v2926_v28 = vpop.f32.mrf.mxu3  ;;  %v2946_v2 = vand.u32 2147483648, %v2934_v24  ;;  %v2944_v32 = vand.u32 2147483647, %v2934_v24  ;;  %vm2940_vm13 = vweird.f32 %v2934_v24 }
0x1814   :  { %v2914_v11 = vadd.f32 %v5160_v62, %v2913_v26  ;;  %v2927_v8 = vadd.f32 %v5278_v10, %v2926_v28 }
0x1815   :  { %v2947_v5 = vor.u32 1.1754944e-38, %v2946_v2  ;;  %vm2945_vm5 = vcmp.eq.f32.partialorder %v2944_v32, 8.507059e+37 }
0x1816   :  { %v2950_v52 = vadd.f32 %v2914_v11, %v2874_v29 }
0x1818   :  { %v3931_v41 = vmul.f32 -1.442695, %v2950_v52 }
0x1819   :  { %v4173_v4 = vpop.eup %4172 }
0x181a   :  { %4174 = vpow2.f32 %v3931_v41  ;;  %v2936_v43 = vmul.f32 %v4173_v4, %v2934_v24  ;;  %vm2941_vm9 = vweird.f32 %v4173_v4 }
0x181b   :  { %v2915_v44 = vpop.f32.mrf.mxu2  ;;  %v2928_v40 = vpop.f32.mrf.mxu3  ;;  %vm2942_vm4 = vmor %vm2940_vm13, %vm2941_vm9 }
0x181c   :  { %v2937_v47 = vsub.f32 1.0, %v2936_v43 }
0x181e   :  { %v2938_v50 = vmul.f32 %v4173_v4, %v2937_v47 }
0x1820   :  { %v4175_v51 = vpop.eup %4174  ;;  %v2939_v46 = vadd.f32 %v4173_v4, %v2938_v50 }
0x1821   :  { %v2954_v0 = vadd.f32 1.0, %v4175_v51 }
0x1822   :  { %v2943_v54 = vsel %vm2942_vm4, %v4173_v4, %v2939_v46 }
0x1823   :  { %4176 = vrcp.f32 %v2954_v0  ;;  %v2948_v3 = vsel %vm2945_vm5, %v2947_v5, %v2943_v54  ;;  %v2966_v18 = vand.u32 2147483648, %v2954_v0  ;;  %v2964_v22 = vand.u32 2147483647, %v2954_v0  ;;  %v5294_v5 = vld [vmem:[#allocation13 + $0x8] sm:$0xff] }
0x1824   :  { %v2970_v27 = vmul.f32 %v2948_v3, %v2927_v8  ;;  %vm2960_vm7 = vweird.f32 %v2954_v0  ;;  %v5302_v8 = vld [vmem:[%s5435_s7 + $0x8] sm:$0xff] }
0x1825   :  { %v2967_v45 = vor.u32 1.1754944e-38, %v2966_v18  ;;  %vm2965_vm9 = vcmp.eq.f32.partialorder %v2964_v22, 8.507059e+37 }
0x1826   :  { %v2971_v6 = vadd.f32 %v2970_v27, %v2890_v16  ;;  %v5314_v27 = vld [vmem:[%s5435_s7] sm:$0xff] }
0x1828   :  { %4178 = vtanh.f32 %v2971_v6 }
0x1829   :  { %v4177_v60 = vpop.eup %4176 }
0x182a   :  { %v2956_v42 = vmul.f32 %v4177_v60, %v2954_v0  ;;  %vm2961_vm6 = vweird.f32 %v4177_v60 }
0x182b   :  { %vm2962_vm8 = vmor %vm2960_vm7, %vm2961_vm6 }
0x182c   :  { %v2957_v13 = vsub.f32 1.0, %v2956_v42 }
0x182e   :  { %v2958_v21 = vmul.f32 %v4177_v60, %v2957_v13  ;;  %v4179_v33 = vpop.eup %4178 }
0x1830   :  { %v2959_v25 = vadd.f32 %v4177_v60, %v2958_v21 }
0x1832   :  { %v2963_v23 = vsel %vm2962_vm8, %v4177_v60, %v2959_v25 }
0x1833   :  { %v2968_v36 = vsel %vm2965_vm9, %v2967_v45, %v2963_v23 }
0x1834   :  { %v2973_v24 = vsub.f32 1.0, %v2968_v36  ;;  %v2975_v49 = vmul.f32 %v2968_v36, %v5165_v1 }
0x1836   :  { %v2974_v26 = vmul.f32 %v4179_v33, %v2973_v24 }
0x1838   :  { %v5282_v28 = vadd.f32 %v2975_v49, %v2974_v26 }
0x183a   :  { %v5286_v29 = vpack.c.bf16 %v5282_v28, %v5282_v28 }
0x183c   :  { %3932 = vmatmul.msk.bf16.vlgmr.msrb.gmra.mxu0 %vm204_vm1, %v5286_v29 }
0x183d   :  { %3186 = vmatpush.bf16.msrb.mxu0 %v4716_v57 }
0x18b9   :  { %v2990_v11 = vpop.f32.mrf.mxu0 }
0x18ba   :  { %v2994_v52 = vpack.c.bf16 %v2990_v11, %v2990_v11 }
0x18bc   :  { %v2996_v41 = vrot.slane %v2994_v52, 3 }
0x18be   :  { %v2999_v4 = vsel %vm444_vm10, %v2994_v52, %v2996_v41  ;;  %v3001_v43 = vsel %vm449_vm11, %v2994_v52, %v2996_v41 }
0x18bf   :  { %v3003_v44 = vrot.slane %v3001_v43, 1  ;;  %v3005_v1 = vunpack.i.h.s16 %v2999_v4  ;;  %v3933_v40 = vpack.i.b16 %v2999_v4, %v2999_v4 }
0x18c1   :  { %v3007_v47 = vunpack.i.h.s16 %v3003_v44  ;;  %v3009_v50 = vperm.slane %v3933_v40, 0  ;;  %v3026_v2 = vpack.i.b16 %v3005_v1, %v3005_v1  ;;  %v3936_v32 = vpack.i.b16 %v3003_v44, %v3003_v44  ;;  %v2992_v51 = vpop.f32.mrf.mxu0 }
0x18c3   :  { %v3027_v46 = vperm.slane %v3026_v2, 0  ;;  %v3045_v0 = vperm.slane %v3936_v32, 0  ;;  %v3062_v54 = vpack.i.b16 %v3007_v47, %v3007_v47  ;;  %3934 = vmatmul.msk.bf16.vlgmr.msrb.gmra.mxu1 %vm204_vm1, %v3009_v50 }
0x18c4   :  { %3202 = vmatpush.bf16.msrb.mxu1 %v5294_v5 }
0x18c5   :  { %v3063_v3 = vperm.slane %v3062_v54, 0  ;;  %3935 = vmatmul.msk.bf16.vlgmr.msrb.gmra.mxu2 %vm204_vm1, %v3027_v46  ;;  %3937 = vmatmul.msk.bf16.vlgmr.msrb.gmra.mxu3 %vm204_vm1, %v3045_v0 }
0x18c6   :  { %3233 = vmatpush.bf16.msrb.mxu2 %v5302_v8  ;;  %3268 = vmatpush.bf16.msrb.mxu3 %v5181_v53 }
0x18c7   :  { %3938 = vmatmul.msk.bf16.vlgmr.msra.gmra.mxu0 %vm204_vm1, %v3063_v3 }
0x18c8   :  { %3203 = vmatpush.bf16.msrb.mxu1 %v5307_v9  ;;  %3284 = vmatpush.bf16.msra.mxu0 %v5186_v30 }
0x18ca   :  { %3234 = vmatpush.bf16.msrb.mxu2 %v5314_v27  ;;  %3269 = vmatpush.bf16.msrb.mxu3 %v5190_v63 }
0x18cc   :  { %3285 = vmatpush.bf16.msra.mxu0 %v5193_v59 }
0x1940   :  { %v3022_v53 = vpop.f32.mrf.mxu1 }
0x1941   :  { %v3080_v60 = vsel %vm541_vm12, %v3022_v53, -inf }
0x1942   :  { %3081 = vmax.xlane.f32.xlu2 %v3080_v60 }
0x1944   :  { %v3076_v16 = vpop.f32.mrf.mxu0 }
0x1945   :  { %v3089_v63 = vsel %vm541_vm12, %v3076_v16, -inf }
0x1948   :  { %v3024_v42 = vpop.f32.mrf.mxu1  ;;  %v3040_v6 = vpop.f32.mrf.mxu2 }
0x1949   :  { %v3058_v13 = vpop.f32.mrf.mxu3  ;;  %v3083_v30 = vsel %vm541_vm12, %v3040_v6, -inf }
0x194a   :  { %v3086_v18 = vsel %vm541_vm12, %v3058_v13, -inf  ;;  %3084 = vmax.xlane.f32.xlu0 %v3083_v30 }
0x194b   :  { %3087 = vmax.xlane.f32.xlu1 %v3086_v18 }
0x194c   :  { %v3078_v21 = vpop.f32.mrf.mxu0 }
0x1950   :  { %v3042_v22 = vpop.f32.mrf.mxu2 }
0x1951   :  { %v3060_v25 = vpop.f32.mrf.mxu3 }
0x1952   :  { %3090 = vmax.xlane.f32.xlu0 %v3089_v63 }
0x19b5   :  { %v3082_v59 = vpop.xlane.xlu2 %3081 }
0x19b6   :  { %v3092_v45 = vsub.f32 %v3022_v53, %v3082_v59 }
0x19b8   :  { %v3096_v23 = vmul.f32 1.442695, %v3092_v45 }
0x19ba   :  { %4180 = vpow2.f32 %v3096_v23 }
0x19bd   :  { %v3085_v36 = vpop.xlane.xlu0 %3084 }
0x19be   :  { %v3088_v24 = vpop.xlane.xlu1 %3087  ;;  %v3093_v33 = vsub.f32 %v3040_v6, %v3085_v36 }
0x19bf   :  { %v3094_v26 = vsub.f32 %v3058_v13, %v3088_v24 }
0x19c0   :  { %v4181_v49 = vpop.eup %4180  ;;  %v3098_v11 = vmul.f32 1.442695, %v3093_v33 }
0x19c1   :  { %v3100_v52 = vmul.f32 1.442695, %v3094_v26  ;;  %v3104_v41 = vsel %vm541_vm12, %v4181_v49, 0.0 }
0x19c2   :  { %4182 = vpow2.f32 %v3098_v11  ;;  %3105 = vadd.xlane.f32.xlu0 %v3104_v41 }
0x19c3   :  { %4184 = vpow2.f32 %v3100_v52 }
0x19c5   :  { %v3091_v4 = vpop.xlane.xlu0 %3090 }
0x19c6   :  { %v3095_v43 = vsub.f32 %v3076_v16, %v3091_v4 }
0x19c8   :  { %v4183_v44 = vpop.eup %4182  ;;  %v3102_v1 = vmul.f32 1.442695, %v3095_v43 }
0x19c9   :  { %v4185_v40 = vpop.eup %4184  ;;  %v3107_v47 = vsel %vm541_vm12, %v4183_v44, 0.0 }
0x19ca   :  { %4186 = vpow2.f32 %v3102_v1  ;;  %v3110_v50 = vsel %vm541_vm12, %v4185_v40, 0.0  ;;  %3108 = vadd.xlane.f32.xlu1 %v3107_v47 }
0x19cb   :  { %3111 = vadd.xlane.f32.xlu2 %v3110_v50 }
0x19d0   :  { %v4187_v2 = vpop.eup %4186 }
0x19d1   :  { %v3113_v32 = vsel %vm541_vm12, %v4187_v2, 0.0 }
0x19d2   :  { %3114 = vadd.xlane.f32.xlu1 %v3113_v32 }
0x1a35   :  { %v3106_v51 = vpop.xlane.xlu0 %3105 }
0x1a36   :  { %4188 = vrcp.f32 %v3106_v51 }
0x1a3c   :  { %v4189_v46 = vpop.eup %4188 }
0x1a3d   :  { %v3120_v0 = vmul.f32 %v4189_v46, %v4181_v49  ;;  %v3109_v54 = vpop.xlane.xlu1 %3108 }
0x1a3e   :  { %v3112_v3 = vpop.xlane.xlu2 %3111  ;;  %4190 = vrcp.f32 %v3109_v54 }
0x1a3f   :  { %v3124_v53 = vpack.c.bf16 %v3120_v0, %v3120_v0  ;;  %4192 = vrcp.f32 %v3112_v3 }
0x1a41   :  { %3939 = vmatmul.msk.bf16.vlgmr.msra.gmra.mxu1 %vm590_vm14, %v3124_v53 }
0x1a42   :  { %3300 = vmatpush.bf16.msra.mxu1 %v5233_v31 }
0x1a44   :  { %v4191_v60 = vpop.eup %4190 }
0x1a45   :  { %v4193_v16 = vpop.eup %4192  ;;  %v3121_v42 = vmul.f32 %v4191_v60, %v4183_v44  ;;  %v3115_v6 = vpop.xlane.xlu1 %3114 }
0x1a46   :  { %v3122_v13 = vmul.f32 %v4193_v16, %v4185_v40  ;;  %4194 = vrcp.f32 %v3115_v6  ;;  %3301 = vmatpush.bf16.msra.mxu1 %v5236_v39  ;;  %v3258_v16 = vld [vmem:[#allocation4 + $0x1c] sm:$0xf] }
0x1a47   :  { %v3125_v30 = vpack.c.bf16 %v3121_v42, %v3121_v42  ;;  %v3247_v21 = vrot.slane %v3121_v42, 7 }
0x1a48   :  { %v3126_v18 = vpack.c.bf16 %v3122_v13, %v3122_v13  ;;  %v3249_v22 = vrot.slane %v3122_v13, 6 }
0x1a49   :  { %3940 = vmatmul.msk.bf16.vlgmr.msra.gmra.mxu2 %vm590_vm14, %v3125_v30  ;;  %v3248_v25 = vsel %vm449_vm11, %v3247_v21, %v3120_v0 }
0x1a4a   :  { %3941 = vmatmul.msk.bf16.vlgmr.msra.gmra.mxu3 %vm590_vm14, %v3126_v18  ;;  %3314 = vmatpush.bf16.msra.mxu2 %v5205_v34  ;;  %v3250_v45 = vsel %vm704_vm15, %v3249_v22, %v3248_v25 }
0x1a4b   :  { %3327 = vmatpush.bf16.msra.mxu3 %v5212_v7 }
0x1a4c   :  { %v4195_v31 = vpop.eup %4194 }
0x1a4d   :  { %v3123_v63 = vmul.f32 %v4195_v31, %v4187_v2 }
0x1a4e   :  { %3315 = vmatpush.bf16.msra.mxu2 %v5208_v38 }
0x1a4f   :  { %v3127_v59 = vpack.c.bf16 %v3123_v63, %v3123_v63  ;;  %v3251_v39 = vrot.slane %v3123_v63, 5  ;;  %3328 = vmatpush.bf16.msra.mxu3 %v5219_v61 }
0x1a51   :  { %v3252_v23 = vsel %vm707_vm2, %v3251_v39, %v3250_v45  ;;  %3942 = vmatmul.msk.bf16.vlgmr.msrb.gmra.mxu0 %vm590_vm14, %v3127_v59  ;;  %3943 = vmatmul.msk.bf16.vlgmr.msrb.gmra.mxu1 %vm204_vm1, %v5286_v29 }
0x1a52   :  { %3945 = vst.msk [vmem:[%s5438_s10 + $0x18] sm:$0xf] %vm752_vm3, %v3252_v23  ;;  %3340 = vmatpush.bf16.msrb.mxu0 %v5216_v14  ;;  %3404 = vmatpush.bf16.msrb.mxu1 %v5244_v12 }
0x1a56   :  { %3341 = vmatpush.bf16.msrb.mxu0 %v5224_v17  ;;  %3405 = vmatpush.bf16.msrb.mxu1 %v5250_v19 }
0x1abe   :  { %v3140_v34 = vpop.f32.mrf.mxu1 }
0x1abf   :  { %v3192_v61 = vpack.c.bf16 %v3140_v34, %v3140_v34 }
0x1ac1   :  { %v3213_v4 = vunpack.c.l.b16 %v3192_v61 }
0x1ac6   :  { %v3142_v38 = vpop.f32.mrf.mxu1 }
0x1acc   :  { %v3156_v7 = vpop.f32.mrf.mxu2 }
0x1acd   :  { %v3193_v36 = vpack.c.bf16 %v3156_v7, %v3156_v7  ;;  %v3172_v24 = vpop.f32.mrf.mxu3 }
0x1ace   :  { %v3194_v33 = vpack.c.bf16 %v3172_v24, %v3172_v24  ;;  %v3188_v26 = vpop.f32.mrf.mxu0  ;;  %v3205_v49 = vpop.f32.mrf.mxu1 }
0x1acf   :  { %v3214_v11 = vunpack.c.l.b16 %v3193_v36  ;;  %v3195_v52 = vpack.c.bf16 %v3188_v26, %v3188_v26 }
0x1ad0   :  { %v3215_v41 = vunpack.c.l.b16 %v3194_v33 }
0x1ad1   :  { %v3217_v14 = vrot.slane %v3214_v11, 7  ;;  %v3216_v43 = vunpack.c.l.b16 %v3195_v52  ;;  %v3293_v52 = vld [vmem:[#allocation4 + $0x5c] sm:$0xf] }
0x1ad2   :  { %v3219_v12 = vrot.slane %v3215_v41, 6 }
0x1ad3   :  { %v3218_v17 = vsel %vm449_vm11, %v3217_v14, %v3213_v4  ;;  %v3221_v44 = vrot.slane %v3216_v43, 5 }
0x1ad4   :  { %v3220_v19 = vsel %vm704_vm15, %v3219_v12, %v3218_v17  ;;  %v3158_v1 = vpop.f32.mrf.mxu2 }
0x1ad5   :  { %v3222_v40 = vsel %vm707_vm2, %v3221_v44, %v3220_v19  ;;  %v3174_v47 = vpop.f32.mrf.mxu3 }
0x1ad6   :  { %v3223_v50 = vpack.c.b16 %v3222_v40, %v3222_v40  ;;  %v3190_v2 = vpop.f32.mrf.mxu0  ;;  %v3207_v32 = vpop.f32.mrf.mxu1 }
0x1ad8   :  { %3944 = vmatmul.msk.bf16.vlgmr.msrb.gmra.mxu2 %vm204_vm1, %v3223_v50 }
0x1ad9   :  { %3437 = vmatpush.bf16.xpose.msrb.mxu2 %v4648_v48 }
0x1ae8   :  { %3949 = vmatmul.msk.bf16.vlgmr.msra.gmra.mxu2 %vm204_vm1, %v5286_v29 }
0x1ae9   :  { %3555 = vmatpush.bf16.msra.mxu2 %v4712_v56 }
0x1b5b   :  { %v3236_v51 = vpop.f32.mrf.mxu2 }
0x1b5c   :  { %v3237_v46 = vadd.f32 %v3236_v51, %v3205_v49 }
0x1b5e   :  { %4196 = vtanh.f32 %v3237_v46 }
0x1b63   :  { %v3238_v0 = vpop.f32.mrf.mxu2 }
0x1b64   :  { %v4197_v54 = vpop.eup %4196 }
0x1b65   :  { %3242 = vst.msk [vmem:[#allocation15 + $0x18] sm:$0xf] %vm135_vm0, %v4197_v54  ;;  %v3256_v3 = vpack.c.bf16 %v4197_v54, %v4197_v54 }
0x1b67   :  { %3946 = vmatmul.msk.bf16.vlgmr.msrb.gmra.mxu3 %vm204_vm1, %v3256_v3  ;;  %3947 = vmatmul.msk.bf16.vlgmr.msra.gmra.mxu0 %vm204_vm1, %v3256_v3 }
0x1b68   :  { %3948 = vmatmul.msk.bf16.vlgmr.msra.gmra.mxu1 %vm204_vm1, %v3256_v3  ;;  %3455 = vmatpush.bf16.xpose.msrb.mxu3 %v4675_v15 }
0x1b69   :  { %3473 = vmatpush.bf16.xpose.msra.mxu0 %v4679_v35  ;;  %3491 = vmatpush.bf16.xpose.msra.mxu1 %v4690_v37 }
0x1b6b   :  { %v3317_v48 = vpop.f32.mrf.mxu2 }
0x1b6c   :  { %v3318_v35 = vadd.f32 %v5274_v20, %v3317_v48 }
0x1b73   :  { %v3319_v56 = vpop.f32.mrf.mxu2 }
0x1b77   :  { %3950 = vmatmul.msk.bf16.vlgmr.msra.gmra.mxu3 %vm204_vm1, %v5286_v29  ;;  %3951 = vmatmul.msk.bf16.vlgmr.msrb.gmra.mxu0 %vm204_vm1, %v5286_v29  ;;  %v3277_v29 = vld [vmem:[#allocation4 + $0x3c] sm:$0xf] }
0x1b78   :  { %3571 = vmatpush.bf16.msra.mxu3 %v4708_v55  ;;  %3587 = vmatpush.bf16.msrb.mxu0 %v4721_v58 }
0x1be4   :  { %v3287_v53 = vpop.f32.mrf.mxu0 }
0x1be5   :  { %v3303_v60 = vpop.f32.mrf.mxu1  ;;  %v3291_v58 = vadd.f32 %v3287_v53, %v3277_v29 }
0x1be6   :  { %v3307_v14 = vadd.f32 %v3303_v60, %v3293_v52 }
0x1bea   :  { %v3271_v15 = vpop.f32.mrf.mxu3 }
0x1beb   :  { %v3275_v42 = vadd.f32 %v3271_v15, %v3258_v16 }
0x1bec   :  { %v3289_v37 = vpop.f32.mrf.mxu0 }
0x1bed   :  { %v3347_v6 = vadd.f32 %v3318_v35, %v3275_v42  ;;  %v3305_v13 = vpop.f32.mrf.mxu1 }
0x1bef   :  { %v3952_v30 = vmul.f32 -1.442695, %v3347_v6 }
0x1bf1   :  { %4198 = vpow2.f32 %v3952_v30 }
0x1bf2   :  { %v3273_v18 = vpop.f32.mrf.mxu3 }
0x1bf4   :  { %v3343_v21 = vpop.f32.mrf.mxu0 }
0x1bf5   :  { %v3344_v11 = vadd.f32 %v5278_v10, %v3343_v21 }
0x1bf7   :  { %v4199_v31 = vpop.eup %4198 }
0x1bf8   :  { %v3351_v22 = vadd.f32 1.0, %v4199_v31 }
0x1bfa   :  { %4200 = vrcp.f32 %v3351_v22  ;;  %v3330_v55 = vpop.f32.mrf.mxu3  ;;  %v3363_v7 = vand.u32 2147483648, %v3351_v22  ;;  %v3361_v61 = vand.u32 2147483647, %v3351_v22  ;;  %vm3357_vm4 = vweird.f32 %v3351_v22 }
0x1bfb   :  { %v3331_v25 = vadd.f32 %v5160_v62, %v3330_v55 }
0x1bfc   :  { %v3345_v63 = vpop.f32.mrf.mxu0  ;;  %v3364_v49 = vor.u32 1.1754944e-38, %v3363_v7  ;;  %vm3362_vm6 = vcmp.eq.f32.partialorder %v3361_v61, 8.507059e+37 }
0x1bfd   :  { %v3367_v59 = vadd.f32 %v3331_v25, %v3291_v58 }
0x1bff   :  { %v3953_v39 = vmul.f32 -1.442695, %v3367_v59 }
0x1c00   :  { %v4201_v20 = vpop.eup %4200 }
0x1c01   :  { %v3353_v45 = vmul.f32 %v4201_v20, %v3351_v22  ;;  %4202 = vpow2.f32 %v3953_v39  ;;  %vm3358_vm13 = vweird.f32 %v4201_v20 }
0x1c02   :  { %v3332_v23 = vpop.f32.mrf.mxu3  ;;  %vm3359_vm5 = vmor %vm3357_vm4, %vm3358_vm13 }
0x1c03   :  { %v3354_v34 = vsub.f32 1.0, %v3353_v45 }
0x1c05   :  { %v3355_v38 = vmul.f32 %v4201_v20, %v3354_v34 }
0x1c07   :  { %v4203_v36 = vpop.eup %4202  ;;  %v3356_v24 = vadd.f32 %v4201_v20, %v3355_v38 }
0x1c08   :  { %v3371_v33 = vadd.f32 1.0, %v4203_v36 }
0x1c09   :  { %v3360_v26 = vsel %vm3359_vm5, %v4201_v20, %v3356_v24 }
0x1c0a   :  { %4204 = vrcp.f32 %v3371_v33  ;;  %v3365_v62 = vsel %vm3362_vm6, %v3364_v49, %v3360_v26  ;;  %v3383_v44 = vand.u32 2147483648, %v3371_v33  ;;  %v3381_v1 = vand.u32 2147483647, %v3371_v33 }
0x1c0b   :  { %v3387_v41 = vmul.f32 %v3365_v62, %v3344_v11  ;;  %vm3377_vm8 = vweird.f32 %v3371_v33 }
0x1c0c   :  { %v3384_v47 = vor.u32 1.1754944e-38, %v3383_v44  ;;  %vm3382_vm13 = vcmp.eq.f32.partialorder %v3381_v1, 8.507059e+37 }
0x1c0d   :  { %v3388_v12 = vadd.f32 %v3387_v41, %v3307_v14 }
0x1c0f   :  { %4206 = vtanh.f32 %v3388_v12 }
0x1c10   :  { %v4205_v4 = vpop.eup %4204 }
0x1c11   :  { %v3373_v43 = vmul.f32 %v4205_v4, %v3371_v33  ;;  %vm3378_vm7 = vweird.f32 %v4205_v4 }
0x1c12   :  { %vm3379_vm9 = vmor %vm3377_vm8, %vm3378_vm7 }
0x1c13   :  { %v3374_v17 = vsub.f32 1.0, %v3373_v43 }
0x1c15   :  { %v3375_v19 = vmul.f32 %v4205_v4, %v3374_v17  ;;  %v4207_v32 = vpop.eup %4206 }
0x1c17   :  { %v3376_v40 = vadd.f32 %v4205_v4, %v3375_v19 }
0x1c19   :  { %v3380_v50 = vsel %vm3379_vm9, %v4205_v4, %v3376_v40 }
0x1c1a   :  { %v3385_v2 = vsel %vm3382_vm13, %v3384_v47, %v3380_v50 }
0x1c1b   :  { %v3390_v10 = vsub.f32 1.0, %v3385_v2  ;;  %v3392_v46 = vmul.f32 %v3385_v2, %v5282_v28 }
0x1c1d   :  { %v3391_v51 = vmul.f32 %v4207_v32, %v3390_v10 }
0x1c1f   :  { %v3393_v0 = vadd.f32 %v3392_v46, %v3391_v51 }
0x1c21   :  { %v5375_v54 = vpack.c.bf16 %v3393_v0, %v3393_v0  ;;  %3673 = vst.msk [vmem:[#allocation2] sm:$0xf] %vm135_vm0, %v3393_v0 }
0x1c22   :  { %3678 = vst.msk [vmem:[#allocation16] sm:$0xf] %vm135_vm0, %v3393_v0 }
0x1c23   :  { %3954 = vmatmul.msk.bf16.vlgmr.msrb.gmra.mxu1 %vm204_vm1, %v5375_v54 }
0x1c24   :  { %3603 = vmatpush.bf16.msrb.mxu1 %v4716_v57 }
0x1ca0   :  { %v3407_v3 = vpop.f32.mrf.mxu1 }
0x1ca1   :  { %v3411_v48 = vpack.c.bf16 %v3407_v3, %v3407_v3 }
0x1ca3   :  { %v3413_v56 = vrot.slane %v3411_v48, 3 }
0x1ca5   :  { %v3416_v53 = vsel %vm444_vm10, %v3411_v48, %v3413_v56  ;;  %v3418_v60 = vsel %vm449_vm11, %v3411_v48, %v3413_v56 }
0x1ca6   :  { %v3420_v28 = vrot.slane %v3418_v60, 1  ;;  %v3422_v16 = vunpack.i.h.s16 %v3416_v53  ;;  %v3955_v15 = vpack.i.b16 %v3416_v53, %v3416_v53 }
0x1ca8   :  { %v3424_v35 = vunpack.i.h.s16 %v3420_v28  ;;  %v3426_v42 = vperm.slane %v3955_v15, 0  ;;  %v3443_v37 = vpack.i.b16 %v3422_v16, %v3422_v16  ;;  %v3958_v6 = vpack.i.b16 %v3420_v28, %v3420_v28  ;;  %v3409_v13 = vpop.f32.mrf.mxu1 }
0x1caa   :  { %v3444_v30 = vperm.slane %v3443_v37, 0  ;;  %v3462_v18 = vperm.slane %v3958_v6, 0  ;;  %v3479_v21 = vpack.i.b16 %v3424_v35, %v3424_v35  ;;  %3956 = vmatmul.msk.bf16.vlgmr.msrb.gmra.mxu2 %vm204_vm1, %v3426_v42 }
0x1cab   :  { %3619 = vmatpush.bf16.msrb.mxu2 %v5294_v5 }
0x1cac   :  { %v3480_v57 = vperm.slane %v3479_v21, 0  ;;  %3957 = vmatmul.msk.bf16.vlgmr.msrb.gmra.mxu3 %vm204_vm1, %v3444_v30  ;;  %3959 = vmatmul.msk.bf16.vlgmr.msra.gmra.mxu0 %vm204_vm1, %v3462_v18 }
0x1cad   :  { %3650 = vmatpush.bf16.msrb.mxu3 %v5302_v8 }
0x1cae   :  { %3960 = vmatmul.msk.bf16.vlgmr.msra.gmra.mxu1 %vm204_vm1, %v3480_v57 }
0x1caf   :  { %3620 = vmatpush.bf16.msrb.mxu2 %v5307_v9 }
0x1cb1   :  { %3651 = vmatpush.bf16.msrb.mxu3 %v5314_v27 }
0x1d29   :  { %v3475_v31 = vpop.f32.mrf.mxu0 }
0x1d2a   :  { %v3503_v29 = vsel %vm541_vm12, %v3475_v31, -inf }
0x1d2b   :  { %3504 = vmax.xlane.f32.xlu1 %v3503_v29  ;;  %v3493_v22 = vpop.f32.mrf.mxu1 }
0x1d2c   :  { %v3506_v9 = vsel %vm541_vm12, %v3493_v22, -inf }
0x1d2d   :  { %v3439_v55 = vpop.f32.mrf.mxu2 }
0x1d2e   :  { %v3497_v5 = vsel %vm541_vm12, %v3439_v55, -inf }
0x1d2f   :  { %3498 = vmax.xlane.f32.xlu0 %v3497_v5  ;;  %v3457_v58 = vpop.f32.mrf.mxu3 }
0x1d30   :  { %v3500_v25 = vsel %vm541_vm12, %v3457_v58, -inf }
0x1d31   :  { %v3477_v63 = vpop.f32.mrf.mxu0  ;;  %3501 = vmax.xlane.f32.xlu2 %v3500_v25 }
0x1d33   :  { %v3495_v8 = vpop.f32.mrf.mxu1 }
0x1d35   :  { %v3441_v59 = vpop.f32.mrf.mxu2 }
0x1d37   :  { %v3459_v39 = vpop.f32.mrf.mxu3 }
0x1d39   :  { %3507 = vmax.xlane.f32.xlu2 %v3506_v9 }
0x1d9e   :  { %v3505_v27 = vpop.xlane.xlu1 %3504 }
0x1d9f   :  { %v3511_v20 = vsub.f32 %v3475_v31, %v3505_v27 }
0x1da1   :  { %v3517_v45 = vmul.f32 1.442695, %v3511_v20 }
0x1da2   :  { %v3499_v23 = vpop.xlane.xlu0 %3498 }
0x1da3   :  { %4208 = vpow2.f32 %v3517_v45  ;;  %v3509_v34 = vsub.f32 %v3439_v55, %v3499_v23 }
0x1da4   :  { %v3502_v38 = vpop.xlane.xlu2 %3501 }
0x1da5   :  { %v3513_v7 = vmul.f32 1.442695, %v3509_v34  ;;  %v3510_v61 = vsub.f32 %v3457_v58, %v3502_v38 }
0x1da7   :  { %4210 = vpow2.f32 %v3513_v7  ;;  %v3515_v36 = vmul.f32 1.442695, %v3510_v61 }
0x1da9   :  { %v4209_v24 = vpop.eup %4208  ;;  %4212 = vpow2.f32 %v3515_v36 }
0x1daa   :  { %v3527_v33 = vsel %vm541_vm12, %v4209_v24, 0.0 }
0x1dab   :  { %3528 = vadd.xlane.f32.xlu2 %v3527_v33 }
0x1dac   :  { %v3508_v26 = vpop.xlane.xlu2 %3507 }
0x1dad   :  { %v4211_v49 = vpop.eup %4210  ;;  %v3512_v62 = vsub.f32 %v3493_v22, %v3508_v26 }
0x1dae   :  { %v3521_v11 = vsel %vm541_vm12, %v4211_v49, 0.0 }
0x1daf   :  { %v4213_v52 = vpop.eup %4212  ;;  %v3519_v41 = vmul.f32 1.442695, %v3512_v62  ;;  %3522 = vadd.xlane.f32.xlu1 %v3521_v11 }
0x1db0   :  { %v3524_v4 = vsel %vm541_vm12, %v4213_v52, 0.0 }
0x1db1   :  { %4214 = vpow2.f32 %v3519_v41  ;;  %3525 = vadd.xlane.f32.xlu0 %v3524_v4 }
0x1db7   :  { %v4215_v14 = vpop.eup %4214 }
0x1db8   :  { %v3530_v43 = vsel %vm541_vm12, %v4215_v14, 0.0 }
0x1db9   :  { %3531 = vadd.xlane.f32.xlu0 %v3530_v43 }
0x1e1e   :  { %v3529_v12 = vpop.xlane.xlu2 %3528 }
0x1e1f   :  { %4216 = vrcp.f32 %v3529_v12 }
0x1e22   :  { %v3523_v17 = vpop.xlane.xlu1 %3522 }
0x1e23   :  { %4218 = vrcp.f32 %v3523_v17 }
0x1e24   :  { %v3526_v44 = vpop.xlane.xlu0 %3525 }
0x1e25   :  { %v4217_v19 = vpop.eup %4216  ;;  %4220 = vrcp.f32 %v3526_v44 }
0x1e26   :  { %v3539_v1 = vmul.f32 %v4217_v19, %v4209_v24 }
0x1e28   :  { %v3543_v40 = vpack.c.bf16 %v3539_v1, %v3539_v1  ;;  %v3666_v53 = vrot.slane %v3539_v1, 6 }
0x1e29   :  { %v4219_v47 = vpop.eup %4218 }
0x1e2a   :  { %v3537_v50 = vmul.f32 %v4219_v47, %v4211_v49  ;;  %3963 = vmatmul.msk.bf16.vlgmr.msrb.gmra.mxu0 %vm590_vm14, %v3543_v40 }
0x1e2b   :  { %v4221_v2 = vpop.eup %4220 }
0x1e2c   :  { %v3541_v10 = vpack.c.bf16 %v3537_v50, %v3537_v50  ;;  %v3538_v32 = vmul.f32 %v4221_v2, %v4213_v52  ;;  %v3532_v51 = vpop.xlane.xlu0 %3531 }
0x1e2d   :  { %4222 = vrcp.f32 %v3532_v51 }
0x1e2e   :  { %v3542_v46 = vpack.c.bf16 %v3538_v32, %v3538_v32  ;;  %3961 = vmatmul.msk.bf16.vlgmr.msra.gmra.mxu2 %vm590_vm14, %v3541_v10  ;;  %v3664_v0 = vrot.slane %v3538_v32, 7 }
0x1e30   :  { %3962 = vmatmul.msk.bf16.vlgmr.msra.gmra.mxu3 %vm590_vm14, %v3542_v46  ;;  %v3665_v48 = vsel %vm449_vm11, %v3664_v0, %v3537_v50 }
0x1e31   :  { %v3667_v16 = vsel %vm704_vm15, %v3666_v53, %v3665_v48 }
0x1e33   :  { %v4223_v3 = vpop.eup %4222 }
0x1e34   :  { %v3540_v56 = vmul.f32 %v4223_v3, %v4215_v14 }
0x1e36   :  { %v3544_v60 = vpack.c.bf16 %v3540_v56, %v3540_v56  ;;  %v3668_v28 = vrot.slane %v3540_v56, 5 }
0x1e38   :  { %v3669_v15 = vsel %vm707_vm2, %v3668_v28, %v3667_v16  ;;  %3964 = vmatmul.msk.bf16.vlgmr.msrb.gmra.mxu1 %vm590_vm14, %v3544_v60 }
0x1e39   :  { %3967 = vst.msk [vmem:[%s5438_s10 + $0x1c] sm:$0xf] %vm752_vm3, %v3669_v15  ;;  %s4483_s10 = smov [#allocation16]  }
0x1e3a   :  { %s3699_s26 = sshll.u32 %s4483_s10, 4  ;;  %s3700_s26 = int_to_ptr.vmem [resolvable:$true] %s3699_s26 }
0x1e3b   :  { %3704 = dma.vmem_to_hbm [thread:$0]  %s3700_s26, 64, %s3702_s8, [#allocation17]  }
0x1e3e   :  { %3965 = vmatmul.msk.bf16.vlgmr.msrb.gmra.mxu2 %vm204_vm1, %v5375_v54 }
0x1ea7   :  { %v3589_v35 = vpop.f32.mrf.mxu0 }
0x1ea8   :  { %v3611_v37 = vpack.c.bf16 %v3589_v35, %v3589_v35 }
0x1eaa   :  { %v3632_v21 = vunpack.c.l.b16 %v3611_v37 }
0x1eac   :  { %v3636_v58 = vrot.slane %v3632_v21, 6 }
0x1eaf   :  { %v3591_v42 = vpop.f32.mrf.mxu0 }
0x1eb1   :  { %v3557_v6 = vpop.f32.mrf.mxu2 }
0x1eb2   :  { %v3609_v30 = vpack.c.bf16 %v3557_v6, %v3557_v6 }
0x1eb3   :  { %v3573_v13 = vpop.f32.mrf.mxu3 }
0x1eb4   :  { %v3610_v18 = vpack.c.bf16 %v3573_v13, %v3573_v13  ;;  %v3630_v22 = vunpack.c.l.b16 %v3609_v30 }
0x1eb5   :  { %v3605_v57 = vpop.f32.mrf.mxu1 }
0x1eb6   :  { %v3631_v31 = vunpack.c.l.b16 %v3610_v18  ;;  %v3612_v29 = vpack.c.bf16 %v3605_v57, %v3605_v57 }
0x1eb8   :  { %v3634_v55 = vrot.slane %v3631_v31, 7  ;;  %v3633_v5 = vunpack.c.l.b16 %v3612_v29 }
0x1eb9   :  { %v3559_v25 = vpop.f32.mrf.mxu2 }
0x1eba   :  { %v3635_v63 = vsel %vm449_vm11, %v3634_v55, %v3630_v22  ;;  %v3638_v8 = vrot.slane %v3633_v5, 5 }
0x1ebb   :  { %v3637_v54 = vsel %vm704_vm15, %v3636_v58, %v3635_v63  ;;  %v3575_v59 = vpop.f32.mrf.mxu3 }
0x1ebc   :  { %v3639_v39 = vsel %vm707_vm2, %v3638_v8, %v3637_v54 }
0x1ebd   :  { %v3640_v9 = vpack.c.b16 %v3639_v39, %v3639_v39  ;;  %v3607_v27 = vpop.f32.mrf.mxu1 }
0x1ebf   :  { %3966 = vmatmul.msk.bf16.vlgmr.msrb.gmra.mxu3 %vm204_vm1, %v3640_v9 }
0x1ec1   :  { %v3622_v20 = vpop.f32.mrf.mxu2 }
0x1ec9   :  { %v3624_v45 = vpop.f32.mrf.mxu2 }
0x1f42   :  { %v3653_v23 = vpop.f32.mrf.mxu3 }
0x1f43   :  { %v3654_v34 = vadd.f32 %v3653_v23, %v3622_v20 }
0x1f45   :  { %4224 = vtanh.f32 %v3654_v34 }
0x1f4a   :  { %v3655_v38 = vpop.f32.mrf.mxu3 }
0x1f4b   :  { %v4225_v7 = vpop.eup %4224 }
0x1f4c   :  { %3659 = vst.msk [vmem:[#allocation15 + $0x1c] sm:$0xf] %vm135_vm0, %v4225_v7 }
0x1f4d   :  { %3674 = vst.msk [vmem:[#allocation3] sm:$0xf] %vm135_vm0, %v4225_v7  ;;  %3691 = dma.vmem_to_hbm [thread:$0]  %s3684_s29, 512, %s3686_s14, [#allocation6], %s4474_s2, %s4474_s2, %s4475_s30  }
0x1f4e   :  { %4468 = dma.done.wait [#allocation6], 512  }
0x1f4f   :  { %4469 = vsyncadd [#allocation6], 4294966784 }
0x1f50   :  { %4470 = dma.done.wait [#allocation17], 64  }
0x1f51   :  { %4471 = vsyncadd [#allocation17], 4294967232 }
0x1f52   :  { %3715 = vsyncpa [#allocation5], 1 }
0x1f53   :  { %3716 = vsyncpa [#allocation8], 1 }
0x1f54   :  { %3717 = vsyncpa [#allocation11], 1 }
0x1f55   :  { %3718 = vsyncpa [#allocation14], 1 }
0x1f56   :  { %3719 = vsyncpa [#allocation6], 1 }
0x1f57   :  { %3720 = vsyncpa [#allocation17], 1 }

</bundles_post_ra>
